<compile_context>
chip_gen: v7x
topology: tpu7x:2x2x1
jax: 0.10.0
libtpu: 0.0.40
codegen_flags: <defaults>
</compile_context>

<pallas_src>
import functools

import jax
import jax.numpy as jnp
from jax.experimental import pallas as pl
from jax.experimental.pallas import tpu as pltpu


def _round_up(x, m):
    return ((x + m - 1) // m) * m


def _l2_normalize(x, eps=1e-12):
    # F.normalize(x, p=2, dim=1): x / clamp_min(||x||_2, eps)
    n = jnp.sqrt(jnp.sum(jnp.square(x), axis=1, keepdims=True))
    return x / jnp.maximum(n, eps)


def _topk_pos(v, lane_f, k):
    """Top-k along lanes.  Returns (values, lane positions), each (R, k) f32.

    Only lane *positions* are produced (2 cross-lane reductions per k); the caller
    reconstructs the global column index as `pos + column_offset`, eliminating the
    id-carry reduction entirely for the full-width slab scans.
    """
    vs, ps = [], []
    for t in range(k):
        vmax = jnp.max(v, axis=1, keepdims=True)
        pos = jnp.min(jnp.where(v >= vmax, lane_f, jnp.float32(1e30)),
                      axis=1, keepdims=True)
        vs.append(vmax)
        ps.append(pos)
        if t + 1 < k:
            v = jnp.where(lane_f == pos, -jnp.inf, v)
    if k == 1:
        return vs[0], ps[0]
    return jnp.concatenate(vs, axis=1), jnp.concatenate(ps, axis=1)


def _topk_with_ids(v, ids, k):
    """Top-k with explicit id carry; only used on tiny (R, 2k) state merges."""
    r, m = v.shape
    lane_f = jax.lax.broadcasted_iota(jnp.int32, (r, m), 1).astype(jnp.float32)
    vs, is_ = [], []
    for t in range(k):
        vmax = jnp.max(v, axis=1, keepdims=True)
        pos = jnp.min(jnp.where(v >= vmax, lane_f, jnp.float32(1e30)),
                      axis=1, keepdims=True)
        hit = lane_f == pos
        vs.append(vmax)
        is_.append(jnp.max(jnp.where(hit, ids, jnp.float32(-1.0)),
                           axis=1, keepdims=True))
        if t + 1 < k:
            v = jnp.where(hit, -jnp.inf, v)
    return jnp.concatenate(vs, axis=1), jnp.concatenate(is_, axis=1)


def _mine_kernel(e1_ref, e2_ref, lab1_ref, lab2_ref, sq2_ref,
                 ap_ref, an_ref,
                 pval, pidx, nval, nidx,
                 *, topk, block_m, scan_m, n_valid, mask_cols):
    """One (row_block, col_block) tile: update the running top-K hardest pos/neg ids."""
    j = pl.program_id(1)

    @pl.when(j == 0)
    def _init():
        pval[...] = jnp.full_like(pval, -jnp.inf)
        pidx[...] = jnp.zeros_like(pidx)
        nval[...] = jnp.full_like(nval, -jnp.inf)
        nidx[...] = jnp.zeros_like(nidx)

    # Full-tile matmul on the MXU: bf16 (default) operands, f32 accumulation;
    # contraction over the D axis of both operands -> no transposes anywhere.
    gram = jax.lax.dot_general(e1_ref[...], e2_ref[...], (((1,), (1,)), ((), ())),
                               preferred_element_type=jnp.float32)      # (bn, bm) f32

    lab1 = lab1_ref[...]                                                # (bn, 1)
    bn = gram.shape[0]
    # Single lane-iota per tile, reused by every slab / polarity / top-k iteration.
    lane_f = jax.lax.broadcasted_iota(jnp.int32, (bn, scan_m), 1).astype(jnp.float32)
    col_base = (j * block_m).astype(jnp.float32)

    # Scan the score in scan_m-lane slabs: keeps the masked-score live set small while
    # the MXU matmul above stays at the full tile size.
    for c in range(block_m // scan_m):
        lo = c * scan_m
        col0_f = col_base + jnp.float32(lo)
        # score[i, c] = ||e2_c||^2 - 2<e1_i, e2_c>   (row const / sqrt dropped: rank-equal)
        score = sq2_ref[:, lo:lo + scan_m] - 2.0 * gram[:, lo:lo + scan_m]
        sim = lab1 == lab2_ref[:, lo:lo + scan_m]                       # (bn, scan_m)
        if mask_cols:
            valid = (lane_f + col0_f) < jnp.float32(n_valid)
            pmask = jnp.logical_and(sim, valid)
            nmask = jnp.logical_and(jnp.logical_not(sim), valid)
        else:
            pmask = sim
            nmask = jnp.logical_not(sim)

        # Hardest positives: largest distance among same-label columns.
        tv, tp = _topk_pos(jnp.where(pmask, score, -jnp.inf), lane_f, topk)
        ti = tp + col0_f
        if topk == 1:
            better = tv > pval[...]
            pval[...] = jnp.where(better, tv, pval[...])
            pidx[...] = jnp.where(better, ti, pidx[...])
        else:
            mv, mi = _topk_with_ids(jnp.concatenate([pval[...], tv], axis=1),
                                    jnp.concatenate([pidx[...], ti], axis=1), topk)
            pval[...] = mv
            pidx[...] = mi

        # Hardest negatives: smallest distance among different-label columns.
        tv, tp = _topk_pos(jnp.where(nmask, -score, -jnp.inf), lane_f, topk)
        ti = tp + col0_f
        if topk == 1:
            better = tv > nval[...]
            nval[...] = jnp.where(better, tv, nval[...])
            nidx[...] = jnp.where(better, ti, nidx[...])
        else:
            mv, mi = _topk_with_ids(jnp.concatenate([nval[...], tv], axis=1),
                                    jnp.concatenate([nidx[...], ti], axis=1), topk)
            nval[...] = mv
            nidx[...] = mi

    @pl.when(j == pl.num_programs(1) - 1)
    def _final():
        # Clip here so kernel 2's dynamic VMEM row gather can never go out of bounds
        # (anchors with no valid positives/negatives fall back to index 0).
        hi = jnp.float32(n_valid - 1)
        ap_ref[...] = jnp.clip(pidx[...], 0.0, hi).astype(jnp.int32)
        an_ref[...] = jnp.clip(nidx[...], 0.0, hi).astype(jnp.int32)


def _gather_loss_kernel(ap_sref, an_sref, e1_ref, e2_ref, out_ref, gp, gn,
                        *, topk, block_n, margin):
    """Fused gather(top-K rows of emb2) + mean + per-anchor 2-way log-softmax loss."""
    i = pl.program_id(0)
    d = e2_ref.shape[1]
    inv_k = jnp.float32(1.0 / topk)

    def body(r, carry):
        base = (i * block_n + r) * topk
        accp = jnp.zeros((1, d), jnp.float32)
        accn = jnp.zeros((1, d), jnp.float32)
        for t in range(topk):                           # static, tiny
            accp = accp + e2_ref[pl.ds(ap_sref[base + t], 1), :]
            accn = accn + e2_ref[pl.ds(an_sref[base + t], 1), :]
        gp[pl.ds(r, 1), :] = accp * inv_k
        gn[pl.ds(r, 1), :] = accn * inv_k
        return carry

    jax.lax.fori_loop(0, block_n, body, 0)

    e1 = e1_ref[...]
    dp = e1 - gp[...]
    dn = e1 - gn[...]
    d_ap = jnp.sqrt(jnp.sum(dp * dp, axis=1, keepdims=True))            # (bn, 1)
    d_an = jnp.sqrt(jnp.sum(dn * dn, axis=1, keepdims=True))
    m = jnp.maximum(d_ap, d_an)
    lse = m + jnp.log(jnp.exp(d_ap - m) + jnp.exp(d_an - m))
    out_ref[...] = -margin * (d_ap - lse) - (1.0 - margin) * (d_an - lse)


def topk_triplet_loss(emb1, emb2, label, *, margin=0.0, normalize_feature=False,
                      skip_mean=False, topk=1, block_n=128, block_m=512, scan_m=128,
                      gram_dtype=jnp.bfloat16):
    """Pallas implementation of TopKTripletLoss.forward(emb1, emb2, label).

    gram_dtype: dtype of the mining-matmul operands (accumulation is always f32).
      bf16 (default) runs natively on the MXU of v5e/v6e/v7x and halves DMA/VMEM bytes;
      pass jnp.float32 for bit-level ranking parity with an f32 reference.
    Note: anchors with fewer than `topk` positives (or negatives) fall back to index 0,
    whereas PyTorch's argsort returns arbitrary real indices for those rows.
    """
    N, D = emb1.shape
    assert emb2.shape == (N, D) and label.shape[0] == N

    emb1 = emb1.astype(jnp.float32)
    emb2 = emb2.astype(jnp.float32)
    if normalize_feature:
        emb1 = _l2_normalize(emb1)
        emb2 = _l2_normalize(emb2)

    # ---- tile sizes ----------------------------------------------------------------
    # block_n=128 keeps >=2 row blocks for moderate N so the "parallel" row axis can
    # shard across both v7x TensorCores; block_m defaults to 512 (v6e/v7x-sized) and is
    # clamped to the padded problem; scan_m bounds the live top-k working set (~16 vregs).
    scan_m = _round_up(min(max(scan_m, 128), 512), 128)
    block_m = _round_up(max(scan_m, min(block_m, _round_up(N, scan_m))), scan_m)
    block_n = max(16, min(block_n, _round_up(N, 16)))

    d_pad = _round_up(D, 128)          # zero lane padding: dot products unchanged
    nr = _round_up(N, block_n)
    nc = _round_up(N, block_m)

    def _pad2(x, rows, cols):
        r, c = x.shape
        if r == rows and c == cols:
            return x
        return jnp.pad(x, ((0, rows - r), (0, cols - c)))

    # Mining operands (bf16 by default); per-column stats stay f32 and pre-laid-out as
    # (1, N) so the kernel never transposes.
    e1k = _pad2(emb1, nr, d_pad).astype(gram_dtype)
    e2k = _pad2(emb2, nc, d_pad).astype(gram_dtype)
    lab = label.astype(jnp.int32)
    lab_col = _pad2(lab.reshape(N, 1), nr, 1)
    lab_row = _pad2(lab.reshape(1, N), 1, nc)
    sq2_row = _pad2(jnp.sum(jnp.square(emb2), axis=1).reshape(1, N), 1, nc)

    # ---- kernel 1: tiled top-K hardest positive / negative mining -------------------
    grid = (nr // block_n, nc // block_m)
    ap_idx, an_idx = pl.pallas_call(
        functools.partial(_mine_kernel, topk=topk, block_m=block_m, scan_m=scan_m,
                          n_valid=N, mask_cols=(nc != N)),
        grid=grid,
        in_specs=[
            pl.BlockSpec((block_n, d_pad), lambda i, j: (i, 0)),   # emb1 row tile
            pl.BlockSpec((block_m, d_pad), lambda i, j: (j, 0)),   # emb2 column tile
            pl.BlockSpec((block_n, 1), lambda i, j: (i, 0)),       # labels (N, 1)
            pl.BlockSpec((1, block_m), lambda i, j: (0, j)),       # labels (1, N)
            pl.BlockSpec((1, block_m), lambda i, j: (0, j)),       # ||emb2||^2 (1, N)
        ],
        out_specs=[
            pl.BlockSpec((block_n, topk), lambda i, j: (i, 0)),
            pl.BlockSpec((block_n, topk), lambda i, j: (i, 0)),
        ],
        out_shape=[
            jax.ShapeDtypeStruct((nr, topk), jnp.int32),
            jax.ShapeDtypeStruct((nr, topk), jnp.int32),
        ],
        scratch_shapes=[
            pltpu.VMEM((block_n, topk), jnp.float32),   # running top-K positive scores
            pltpu.VMEM((block_n, topk), jnp.float32),   # ... their column ids
            pltpu.VMEM((block_n, topk), jnp.float32),   # running top-K negative scores
            pltpu.VMEM((block_n, topk), jnp.float32),   # ... their column ids
        ],
        compiler_params=pltpu.CompilerParams(
            dimension_semantics=("parallel", "arbitrary")),
    )(e1k, e2k, lab_col, lab_row, sq2_row)

    # ---- kernel 2: fused gather(emb2 rows) + mean + log-softmax loss ----------------
    # Indices were clipped to [0, N-1] inside kernel 1, so the in-kernel gather never
    # leaves the resident emb2 block.  Indices are flattened to 1-D so the SMEM image
    # stays small (2-D SMEM pads the lane dim to 128).
    ap_flat = ap_idx.reshape(-1)
    an_flat = an_idx.reshape(-1)
    e1p = _pad2(emb1, nr, d_pad)
    e2p = _pad2(emb2, N, d_pad)
    # TODO(synk): emb2 is kept fully resident in VMEM for the gather; very large N*D
    # would need a manual make_async_copy gather from HBM instead.

    loss_rows = pl.pallas_call(
        functools.partial(_gather_loss_kernel, topk=topk, block_n=block_n,
                          margin=float(margin)),
        grid_spec=pltpu.PrefetchScalarGridSpec(
            num_scalar_prefetch=2,
            grid=(nr // block_n,),
            in_specs=[
                pl.BlockSpec((block_n, d_pad), lambda i, ap, an: (i, 0)),  # emb1 rows
                pl.BlockSpec((N, d_pad), lambda i, ap, an: (0, 0)),        # emb2 resident
            ],
            out_specs=pl.BlockSpec((block_n, 1), lambda i, ap, an: (i, 0)),
            scratch_shapes=[pltpu.VMEM((block_n, d_pad), jnp.float32),
                            pltpu.VMEM((block_n, d_pad), jnp.float32)],
        ),
        out_shape=jax.ShapeDtypeStruct((nr, 1), jnp.float32),
        compiler_params=pltpu.CompilerParams(dimension_semantics=("parallel",)),
    )(ap_flat, an_flat, e1p, e2p)

    loss = loss_rows[:N, 0]
    return loss if skip_mean else jnp.mean(loss)


def _reference(emb1, emb2, label, *, margin, normalize_feature, skip_mean, topk):
    """Pure-JAX transcription of the PyTorch forward (for verification)."""
    if normalize_feature:
        emb1 = _l2_normalize(emb1)
        emb2 = _l2_normalize(emb2)
    xx = jnp.sum(jnp.square(emb1), axis=1, keepdims=True)
    yy = jnp.sum(jnp.square(emb2), axis=1, keepdims=True).T
    dist = jnp.sqrt(jnp.clip(xx + yy - 2.0 * emb1 @ emb2.T, 1e-12, None))
    sim = (label[:, None] == label[None, :]).astype(jnp.float32)
    ap_idx = jnp.argsort(-(dist - 9999999.0 * (1.0 - sim)), axis=1)[:, :topk]
    an_idx = jnp.argsort(dist + 9999999.0 * sim, axis=1)[:, :topk]
    mean_p = jnp.mean(emb2[ap_idx], axis=1)
    mean_n = jnp.mean(emb2[an_idx], axis=1)
    d_ap = jnp.sqrt(jnp.sum(jnp.square(emb1 - mean_p), axis=1))
    d_an = jnp.sqrt(jnp.sum(jnp.square(emb1 - mean_n), axis=1))
    lsm = jax.nn.log_softmax(jnp.stack([d_ap, d_an], axis=1), axis=1)
    loss = -margin * lsm[:, 0] - (1.0 - margin) * lsm[:, 1]
    return loss if skip_mean else jnp.mean(loss)


if __name__ == "__main__":
    key = jax.random.PRNGKey(0)
    k1, k2 = jax.random.split(key)
    N, D = 256, 64                                 # small, still exercises a 2x1 mining grid
    emb1 = jax.random.normal(k1, (N, D), dtype=jnp.float32)
    emb2 = emb1 + 0.1 * jax.random.normal(k2, (N, D), dtype=jnp.float32)
    label = jnp.arange(N, dtype=jnp.int32) % 4     # 4 identities, 64 samples each

    cases = [
        # (margin, normalize_feature, topk, gram_dtype, rel-tolerance)
        (0.0, False, 1, jnp.bfloat16, 5e-3),   # default bf16-gram fast path
        (0.3, True, 2, jnp.bfloat16, 1e-2),    # bf16 ranking may flip near-tied picks
        (0.3, True, 2, jnp.float32, 1e-3),     # f32 gram: tight check vs f32 reference
    ]
    for margin, nf, topk, gdt, tol in cases:
        got = topk_triplet_loss(emb1, emb2, label, margin=margin,
                                normalize_feature=nf, topk=topk, gram_dtype=gdt)
        want = _reference(emb1, emb2, label, margin=margin,
                          normalize_feature=nf, skip_mean=False, topk=topk)
        got, want = jax.block_until_ready((got, want))
        err = abs(float(got) - float(want))
        assert err <= tol * max(1.0, abs(float(want))), (
            margin, nf, topk, str(gdt), float(got), float(want), err)
    print("KERNEL_OK")
</pallas_src>

<mosaic_0001>
module attributes {stable_mosaic.version = 11 : i64} {
  func.func @_mine_kernel(%arg0: i32, %arg1: i32, %arg2: memref<128x128xbf16, #tpu.memory_space<vmem>>, %arg3: memref<256x128xbf16, #tpu.memory_space<vmem>>, %arg4: memref<128x1xi32, #tpu.memory_space<vmem>>, %arg5: memref<1x256xi32, #tpu.memory_space<vmem>>, %arg6: memref<1x256xf32, #tpu.memory_space<vmem>>, %arg7: memref<128x1xi32, #tpu.memory_space<vmem>>, %arg8: memref<128x1xi32, #tpu.memory_space<vmem>>, %arg9: memref<128x1xf32, #tpu.memory_space<vmem>>, %arg10: memref<128x1xf32, #tpu.memory_space<vmem>>, %arg11: memref<128x1xf32, #tpu.memory_space<vmem>>, %arg12: memref<128x1xf32, #tpu.memory_space<vmem>>) attributes {dimension_semantics = [#tpu.dimension_semantics<parallel>, #tpu.dimension_semantics<arbitrary>], iteration_bounds = array<i64: 2, 1>, scalar_prefetch = 0 : i64, scratch_operands = 4 : i64, tpu.core_type = #tpu.core_type<tc>, window_params = [{transform_indices = @transform_0, window_bounds = array<i64: 128, 128>}, {transform_indices = @transform_1, window_bounds = array<i64: 256, 128>}, {transform_indices = @transform_2, window_bounds = array<i64: 128, 1>}, {transform_indices = @transform_3, window_bounds = array<i64: 1, 256>}, {transform_indices = @transform_4, window_bounds = array<i64: 1, 256>}, {transform_indices = @transform_5, window_bounds = array<i64: 128, 1>}, {transform_indices = @transform_6, window_bounds = array<i64: 128, 1>}]} {
    %c0_i32 = arith.constant 0 : i32
    %0 = arith.cmpi eq, %arg1, %c0_i32 : i32
    %1 = arith.extui %0 : i1 to i32
    %c0_i32_0 = arith.constant 0 : i32
    %2 = arith.cmpi ne, %1, %c0_i32_0 : i32
    scf.if %2 {
      %cst_79 = arith.constant 0xFF800000 : f32
      %122 = vector.broadcast %cst_79 : f32 to vector<128x1xf32>
      %c0_80 = arith.constant 0 : index
      %c0_81 = arith.constant 0 : index
      %123 = vector.load %arg9[%c0_80, %c0_81] : memref<128x1xf32, #tpu.memory_space<vmem>>, vector<128x1xf32>
      tpu.vector_store %arg9[%c0_80, %c0_81], %122 {strides = array<i32>} : memref<128x1xf32, #tpu.memory_space<vmem>>, vector<128x1xf32>,
      %cst_82 = arith.constant 0.000000e+00 : f32
      %124 = vector.broadcast %cst_82 : f32 to vector<128x1xf32>
      %c0_83 = arith.constant 0 : index
      %c0_84 = arith.constant 0 : index
      %125 = vector.load %arg10[%c0_83, %c0_84] : memref<128x1xf32, #tpu.memory_space<vmem>>, vector<128x1xf32>
      tpu.vector_store %arg10[%c0_83, %c0_84], %124 {strides = array<i32>} : memref<128x1xf32, #tpu.memory_space<vmem>>, vector<128x1xf32>,
      %cst_85 = arith.constant 0xFF800000 : f32
      %126 = vector.broadcast %cst_85 : f32 to vector<128x1xf32>
      %c0_86 = arith.constant 0 : index
      %c0_87 = arith.constant 0 : index
      %127 = vector.load %arg11[%c0_86, %c0_87] : memref<128x1xf32, #tpu.memory_space<vmem>>, vector<128x1xf32>
      tpu.vector_store %arg11[%c0_86, %c0_87], %126 {strides = array<i32>} : memref<128x1xf32, #tpu.memory_space<vmem>>, vector<128x1xf32>,
      %cst_88 = arith.constant 0.000000e+00 : f32
      %128 = vector.broadcast %cst_88 : f32 to vector<128x1xf32>
      %c0_89 = arith.constant 0 : index
      %c0_90 = arith.constant 0 : index
      %129 = vector.load %arg12[%c0_89, %c0_90] : memref<128x1xf32, #tpu.memory_space<vmem>>, vector<128x1xf32>
      tpu.vector_store %arg12[%c0_89, %c0_90], %128 {strides = array<i32>} : memref<128x1xf32, #tpu.memory_space<vmem>>, vector<128x1xf32>,
    } else {
    }
    %c0 = arith.constant 0 : index
    %c0_1 = arith.constant 0 : index
    %3 = vector.load %arg2[%c0, %c0_1] : memref<128x128xbf16, #tpu.memory_space<vmem>>, vector<128x128xbf16>
    %c0_2 = arith.constant 0 : index
    %c0_3 = arith.constant 0 : index
    %4 = vector.load %arg3[%c0_2, %c0_3] : memref<256x128xbf16, #tpu.memory_space<vmem>>, vector<256x128xbf16>
    %cst = arith.constant dense<0.000000e+00> : vector<128x256xf32>
    %5 = tpu.matmul %3, %4, %cst {dimension_numbers = #tpu.dot_dimension_numbers<[1], [1], [0], [0], [0, 0, 1, 0], [], []>} : vector<128x128xbf16>, vector<256x128xbf16>, vector<128x256xf32> -> vector<128x256xf32>
    %c0_4 = arith.constant 0 : index
    %c0_5 = arith.constant 0 : index
    %6 = vector.load %arg4[%c0_4, %c0_5] : memref<128x1xi32, #tpu.memory_space<vmem>>, vector<128x1xi32>
    %7 = tpu.iota {dimensions = array<i32: 1>} : vector<128x128xi32>
    %8 = arith.sitofp %7 : vector<128x128xi32> to vector<128x128xf32>
    %c256_i32 = arith.constant 256 : i32
    %9 = arith.muli %arg1, %c256_i32 : i32
    %10 = arith.sitofp %9 : i32 to f32
    %cst_6 = arith.constant 0.000000e+00 : f32
    %11 = arith.addf %10, %cst_6 : f32
    %c0_7 = arith.constant 0 : index
    %c0_8 = arith.constant 0 : index
    %12 = vector.load %arg6[%c0_7, %c0_8] : memref<1x256xf32, #tpu.memory_space<vmem>>, vector<1x128xf32>
    %13 = vector.extract_strided_slice %5 {offsets = [0, 0], sizes = [128, 128], strides = [1, 1]} : vector<128x256xf32> to vector<128x128xf32>
    %cst_9 = arith.constant 2.000000e+00 : f32
    %14 = vector.broadcast %cst_9 : f32 to vector<128x128xf32>
    %15 = arith.mulf %14, %13 : vector<128x128xf32>
    %16 = vector.broadcast %12 : vector<1x128xf32> to vector<128x128xf32>
    %17 = arith.subf %16, %15 : vector<128x128xf32>
    %c0_10 = arith.constant 0 : index
    %c0_11 = arith.constant 0 : index
    %18 = vector.load %arg5[%c0_10, %c0_11] : memref<1x256xi32, #tpu.memory_space<vmem>>, vector<1x128xi32>
    %19 = vector.broadcast %6 : vector<128x1xi32> to vector<128x128xi32>
    %20 = vector.broadcast %18 : vector<1x128xi32> to vector<128x128xi32>
    %21 = arith.cmpi eq, %19, %20 : vector<128x128xi32>
    %cst_12 = arith.constant dense<true> : vector<128x128xi1>
    %22 = arith.xori %21, %cst_12 : vector<128x128xi1>
    %cst_13 = arith.constant 0xFF800000 : f32
    %23 = vector.broadcast %cst_13 : f32 to vector<128x128xf32>
    %24 = arith.select %21, %17, %23 : vector<128x128xi1>, vector<128x128xf32>
    %cst_14 = arith.constant dense<0xFF800000> : vector<128xf32>
    %25 = vector.multi_reduction <maximumf>, %24, %cst_14 [1] : vector<128x128xf32> to vector<128xf32>
    %26 = vector.shape_cast %25 : vector<128xf32> to vector<128x1xf32>
    %27 = vector.broadcast %26 : vector<128x1xf32> to vector<128x128xf32>
    %28 = arith.cmpf oge, %24, %27 : vector<128x128xf32>
    %cst_15 = arith.constant 1.000000e+30 : f32
    %29 = vector.broadcast %cst_15 : f32 to vector<128x128xf32>
    %30 = arith.select %28, %8, %29 : vector<128x128xi1>, vector<128x128xf32>
    %cst_16 = arith.constant dense<0x7F800000> : vector<128xf32>
    %31 = vector.multi_reduction <minimumf>, %30, %cst_16 [1] : vector<128x128xf32> to vector<128xf32>
    %32 = vector.shape_cast %31 : vector<128xf32> to vector<128x1xf32>
    %33 = vector.broadcast %11 : f32 to vector<128x1xf32>
    %34 = arith.addf %32, %33 : vector<128x1xf32>
    %c0_17 = arith.constant 0 : index
    %c0_18 = arith.constant 0 : index
    %35 = vector.load %arg9[%c0_17, %c0_18] : memref<128x1xf32, #tpu.memory_space<vmem>>, vector<128x1xf32>
    %36 = arith.cmpf ogt, %26, %35 : vector<128x1xf32>
    %c0_19 = arith.constant 0 : index
    %c0_20 = arith.constant 0 : index
    %37 = vector.load %arg9[%c0_19, %c0_20] : memref<128x1xf32, #tpu.memory_space<vmem>>, vector<128x1xf32>
    %38 = arith.select %36, %26, %37 : vector<128x1xi1>, vector<128x1xf32>
    %c0_21 = arith.constant 0 : index
    %c0_22 = arith.constant 0 : index
    %39 = vector.load %arg9[%c0_21, %c0_22] : memref<128x1xf32, #tpu.memory_space<vmem>>, vector<128x1xf32>
    tpu.vector_store %arg9[%c0_21, %c0_22], %38 {strides = array<i32>} : memref<128x1xf32, #tpu.memory_space<vmem>>, vector<128x1xf32>,
    %c0_23 = arith.constant 0 : index
    %c0_24 = arith.constant 0 : index
    %40 = vector.load %arg10[%c0_23, %c0_24] : memref<128x1xf32, #tpu.memory_space<vmem>>, vector<128x1xf32>
    %41 = arith.select %36, %34, %40 : vector<128x1xi1>, vector<128x1xf32>
    %c0_25 = arith.constant 0 : index
    %c0_26 = arith.constant 0 : index
    %42 = vector.load %arg10[%c0_25, %c0_26] : memref<128x1xf32, #tpu.memory_space<vmem>>, vector<128x1xf32>
    tpu.vector_store %arg10[%c0_25, %c0_26], %41 {strides = array<i32>} : memref<128x1xf32, #tpu.memory_space<vmem>>, vector<128x1xf32>,
    %cst_27 = arith.constant 0.000000e+00 : f32
    %43 = vector.broadcast %cst_27 : f32 to vector<128x128xf32>
    %44 = arith.subf %43, %17 : vector<128x128xf32>
    %cst_28 = arith.constant 0xFF800000 : f32
    %45 = vector.broadcast %cst_28 : f32 to vector<128x128xf32>
    %46 = arith.select %22, %44, %45 : vector<128x128xi1>, vector<128x128xf32>
    %cst_29 = arith.constant dense<0xFF800000> : vector<128xf32>
    %47 = vector.multi_reduction <maximumf>, %46, %cst_29 [1] : vector<128x128xf32> to vector<128xf32>
    %48 = vector.shape_cast %47 : vector<128xf32> to vector<128x1xf32>
    %49 = vector.broadcast %48 : vector<128x1xf32> to vector<128x128xf32>
    %50 = arith.cmpf oge, %46, %49 : vector<128x128xf32>
    %cst_30 = arith.constant 1.000000e+30 : f32
    %51 = vector.broadcast %cst_30 : f32 to vector<128x128xf32>
    %52 = arith.select %50, %8, %51 : vector<128x128xi1>, vector<128x128xf32>
    %cst_31 = arith.constant dense<0x7F800000> : vector<128xf32>
    %53 = vector.multi_reduction <minimumf>, %52, %cst_31 [1] : vector<128x128xf32> to vector<128xf32>
    %54 = vector.shape_cast %53 : vector<128xf32> to vector<128x1xf32>
    %55 = vector.broadcast %11 : f32 to vector<128x1xf32>
    %56 = arith.addf %54, %55 : vector<128x1xf32>
    %c0_32 = arith.constant 0 : index
    %c0_33 = arith.constant 0 : index
    %57 = vector.load %arg11[%c0_32, %c0_33] : memref<128x1xf32, #tpu.memory_space<vmem>>, vector<128x1xf32>
    %58 = arith.cmpf ogt, %48, %57 : vector<128x1xf32>
    %c0_34 = arith.constant 0 : index
    %c0_35 = arith.constant 0 : index
    %59 = vector.load %arg11[%c0_34, %c0_35] : memref<128x1xf32, #tpu.memory_space<vmem>>, vector<128x1xf32>
    %60 = arith.select %58, %48, %59 : vector<128x1xi1>, vector<128x1xf32>
    %c0_36 = arith.constant 0 : index
    %c0_37 = arith.constant 0 : index
    %61 = vector.load %arg11[%c0_36, %c0_37] : memref<128x1xf32, #tpu.memory_space<vmem>>, vector<128x1xf32>
    tpu.vector_store %arg11[%c0_36, %c0_37], %60 {strides = array<i32>} : memref<128x1xf32, #tpu.memory_space<vmem>>, vector<128x1xf32>,
    %c0_38 = arith.constant 0 : index
    %c0_39 = arith.constant 0 : index
    %62 = vector.load %arg12[%c0_38, %c0_39] : memref<128x1xf32, #tpu.memory_space<vmem>>, vector<128x1xf32>
    %63 = arith.select %58, %56, %62 : vector<128x1xi1>, vector<128x1xf32>
    %c0_40 = arith.constant 0 : index
    %c0_41 = arith.constant 0 : index
    %64 = vector.load %arg12[%c0_40, %c0_41] : memref<128x1xf32, #tpu.memory_space<vmem>>, vector<128x1xf32>
    tpu.vector_store %arg12[%c0_40, %c0_41], %63 {strides = array<i32>} : memref<128x1xf32, #tpu.memory_space<vmem>>, vector<128x1xf32>,
    %cst_42 = arith.constant 1.280000e+02 : f32
    %65 = arith.addf %10, %cst_42 : f32
    %c0_43 = arith.constant 0 : index
    %c128 = arith.constant 128 : index
    %66 = vector.load %arg6[%c0_43, %c128] : memref<1x256xf32, #tpu.memory_space<vmem>>, vector<1x128xf32>
    %67 = vector.extract_strided_slice %5 {offsets = [0, 128], sizes = [128, 128], strides = [1, 1]} : vector<128x256xf32> to vector<128x128xf32>
    %cst_44 = arith.constant 2.000000e+00 : f32
    %68 = vector.broadcast %cst_44 : f32 to vector<128x128xf32>
    %69 = arith.mulf %68, %67 : vector<128x128xf32>
    %70 = vector.broadcast %66 : vector<1x128xf32> to vector<128x128xf32>
    %71 = arith.subf %70, %69 : vector<128x128xf32>
    %c0_45 = arith.constant 0 : index
    %c128_46 = arith.constant 128 : index
    %72 = vector.load %arg5[%c0_45, %c128_46] : memref<1x256xi32, #tpu.memory_space<vmem>>, vector<1x128xi32>
    %73 = vector.broadcast %6 : vector<128x1xi32> to vector<128x128xi32>
    %74 = vector.broadcast %72 : vector<1x128xi32> to vector<128x128xi32>
    %75 = arith.cmpi eq, %73, %74 : vector<128x128xi32>
    %cst_47 = arith.constant dense<true> : vector<128x128xi1>
    %76 = arith.xori %75, %cst_47 : vector<128x128xi1>
    %cst_48 = arith.constant 0xFF800000 : f32
    %77 = vector.broadcast %cst_48 : f32 to vector<128x128xf32>
    %78 = arith.select %75, %71, %77 : vector<128x128xi1>, vector<128x128xf32>
    %cst_49 = arith.constant dense<0xFF800000> : vector<128xf32>
    %79 = vector.multi_reduction <maximumf>, %78, %cst_49 [1] : vector<128x128xf32> to vector<128xf32>
    %80 = vector.shape_cast %79 : vector<128xf32> to vector<128x1xf32>
    %81 = vector.broadcast %80 : vector<128x1xf32> to vector<128x128xf32>
    %82 = arith.cmpf oge, %78, %81 : vector<128x128xf32>
    %cst_50 = arith.constant 1.000000e+30 : f32
    %83 = vector.broadcast %cst_50 : f32 to vector<128x128xf32>
    %84 = arith.select %82, %8, %83 : vector<128x128xi1>, vector<128x128xf32>
    %cst_51 = arith.constant dense<0x7F800000> : vector<128xf32>
    %85 = vector.multi_reduction <minimumf>, %84, %cst_51 [1] : vector<128x128xf32> to vector<128xf32>
    %86 = vector.shape_cast %85 : vector<128xf32> to vector<128x1xf32>
    %87 = vector.broadcast %65 : f32 to vector<128x1xf32>
    %88 = arith.addf %86, %87 : vector<128x1xf32>
    %c0_52 = arith.constant 0 : index
    %c0_53 = arith.constant 0 : index
    %89 = vector.load %arg9[%c0_52, %c0_53] : memref<128x1xf32, #tpu.memory_space<vmem>>, vector<128x1xf32>
    %90 = arith.cmpf ogt, %80, %89 : vector<128x1xf32>
    %c0_54 = arith.constant 0 : index
    %c0_55 = arith.constant 0 : index
    %91 = vector.load %arg9[%c0_54, %c0_55] : memref<128x1xf32, #tpu.memory_space<vmem>>, vector<128x1xf32>
    %92 = arith.select %90, %80, %91 : vector<128x1xi1>, vector<128x1xf32>
    %c0_56 = arith.constant 0 : index
    %c0_57 = arith.constant 0 : index
    %93 = vector.load %arg9[%c0_56, %c0_57] : memref<128x1xf32, #tpu.memory_space<vmem>>, vector<128x1xf32>
    tpu.vector_store %arg9[%c0_56, %c0_57], %92 {strides = array<i32>} : memref<128x1xf32, #tpu.memory_space<vmem>>, vector<128x1xf32>,
    %c0_58 = arith.constant 0 : index
    %c0_59 = arith.constant 0 : index
    %94 = vector.load %arg10[%c0_58, %c0_59] : memref<128x1xf32, #tpu.memory_space<vmem>>, vector<128x1xf32>
    %95 = arith.select %90, %88, %94 : vector<128x1xi1>, vector<128x1xf32>
    %c0_60 = arith.constant 0 : index
    %c0_61 = arith.constant 0 : index
    %96 = vector.load %arg10[%c0_60, %c0_61] : memref<128x1xf32, #tpu.memory_space<vmem>>, vector<128x1xf32>
    tpu.vector_store %arg10[%c0_60, %c0_61], %95 {strides = array<i32>} : memref<128x1xf32, #tpu.memory_space<vmem>>, vector<128x1xf32>,
    %cst_62 = arith.constant 0.000000e+00 : f32
    %97 = vector.broadcast %cst_62 : f32 to vector<128x128xf32>
    %98 = arith.subf %97, %71 : vector<128x128xf32>
    %cst_63 = arith.constant 0xFF800000 : f32
    %99 = vector.broadcast %cst_63 : f32 to vector<128x128xf32>
    %100 = arith.select %76, %98, %99 : vector<128x128xi1>, vector<128x128xf32>
    %cst_64 = arith.constant dense<0xFF800000> : vector<128xf32>
    %101 = vector.multi_reduction <maximumf>, %100, %cst_64 [1] : vector<128x128xf32> to vector<128xf32>
    %102 = vector.shape_cast %101 : vector<128xf32> to vector<128x1xf32>
    %103 = vector.broadcast %102 : vector<128x1xf32> to vector<128x128xf32>
    %104 = arith.cmpf oge, %100, %103 : vector<128x128xf32>
    %cst_65 = arith.constant 1.000000e+30 : f32
    %105 = vector.broadcast %cst_65 : f32 to vector<128x128xf32>
    %106 = arith.select %104, %8, %105 : vector<128x128xi1>, vector<128x128xf32>
    %cst_66 = arith.constant dense<0x7F800000> : vector<128xf32>
    %107 = vector.multi_reduction <minimumf>, %106, %cst_66 [1] : vector<128x128xf32> to vector<128xf32>
    %108 = vector.shape_cast %107 : vector<128xf32> to vector<128x1xf32>
    %109 = vector.broadcast %65 : f32 to vector<128x1xf32>
    %110 = arith.addf %108, %109 : vector<128x1xf32>
    %c0_67 = arith.constant 0 : index
    %c0_68 = arith.constant 0 : index
    %111 = vector.load %arg11[%c0_67, %c0_68] : memref<128x1xf32, #tpu.memory_space<vmem>>, vector<128x1xf32>
    %112 = arith.cmpf ogt, %102, %111 : vector<128x1xf32>
    %c0_69 = arith.constant 0 : index
    %c0_70 = arith.constant 0 : index
    %113 = vector.load %arg11[%c0_69, %c0_70] : memref<128x1xf32, #tpu.memory_space<vmem>>, vector<128x1xf32>
    %114 = arith.select %112, %102, %113 : vector<128x1xi1>, vector<128x1xf32>
    %c0_71 = arith.constant 0 : index
    %c0_72 = arith.constant 0 : index
    %115 = vector.load %arg11[%c0_71, %c0_72] : memref<128x1xf32, #tpu.memory_space<vmem>>, vector<128x1xf32>
    tpu.vector_store %arg11[%c0_71, %c0_72], %114 {strides = array<i32>} : memref<128x1xf32, #tpu.memory_space<vmem>>, vector<128x1xf32>,
    %c0_73 = arith.constant 0 : index
    %c0_74 = arith.constant 0 : index
    %116 = vector.load %arg12[%c0_73, %c0_74] : memref<128x1xf32, #tpu.memory_space<vmem>>, vector<128x1xf32>
    %117 = arith.select %112, %110, %116 : vector<128x1xi1>, vector<128x1xf32>
    %c0_75 = arith.constant 0 : index
    %c0_76 = arith.constant 0 : index
    %118 = vector.load %arg12[%c0_75, %c0_76] : memref<128x1xf32, #tpu.memory_space<vmem>>, vector<128x1xf32>
    tpu.vector_store %arg12[%c0_75, %c0_76], %117 {strides = array<i32>} : memref<128x1xf32, #tpu.memory_space<vmem>>, vector<128x1xf32>,
    %c0_i32_77 = arith.constant 0 : i32
    %119 = arith.cmpi eq, %arg1, %c0_i32_77 : i32
    %120 = arith.extui %119 : i1 to i32
    %c0_i32_78 = arith.constant 0 : i32
    %121 = arith.cmpi ne, %120, %c0_i32_78 : i32
    scf.if %121 {
      %c0_79 = arith.constant 0 : index
      %c0_80 = arith.constant 0 : index
      %122 = vector.load %arg10[%c0_79, %c0_80] : memref<128x1xf32, #tpu.memory_space<vmem>>, vector<128x1xf32>
      %cst_81 = arith.constant 0.000000e+00 : f32
      %cst_82 = arith.constant 2.550000e+02 : f32
      %123 = vector.broadcast %cst_81 : f32 to vector<128x1xf32>
      %124 = arith.maximumf %123, %122 : vector<128x1xf32>
      %125 = vector.broadcast %cst_82 : f32 to vector<128x1xf32>
      %126 = arith.minimumf %125, %124 : vector<128x1xf32>
      %127 = arith.fptosi %126 : vector<128x1xf32> to vector<128x1xi32>
      %c0_83 = arith.constant 0 : index
      %c0_84 = arith.constant 0 : index
      %128 = vector.load %arg7[%c0_83, %c0_84] : memref<128x1xi32, #tpu.memory_space<vmem>>, vector<128x1xi32>
      tpu.vector_store %arg7[%c0_83, %c0_84], %127 {strides = array<i32>} : memref<128x1xi32, #tpu.memory_space<vmem>>, vector<128x1xi32>,
      %c0_85 = arith.constant 0 : index
      %c0_86 = arith.constant 0 : index
      %129 = vector.load %arg12[%c0_85, %c0_86] : memref<128x1xf32, #tpu.memory_space<vmem>>, vector<128x1xf32>
      %cst_87 = arith.constant 0.000000e+00 : f32
      %cst_88 = arith.constant 2.550000e+02 : f32
      %130 = vector.broadcast %cst_87 : f32 to vector<128x1xf32>
      %131 = arith.maximumf %130, %129 : vector<128x1xf32>
      %132 = vector.broadcast %cst_88 : f32 to vector<128x1xf32>
      %133 = arith.minimumf %132, %131 : vector<128x1xf32>
      %134 = arith.fptosi %133 : vector<128x1xf32> to vector<128x1xi32>
      %c0_89 = arith.constant 0 : index
      %c0_90 = arith.constant 0 : index
      %135 = vector.load %arg8[%c0_89, %c0_90] : memref<128x1xi32, #tpu.memory_space<vmem>>, vector<128x1xi32>
      tpu.vector_store %arg8[%c0_89, %c0_90], %134 {strides = array<i32>} : memref<128x1xi32, #tpu.memory_space<vmem>>, vector<128x1xi32>,
    } else {
    }
    return
  }
  func.func @transform_0(%arg0: i32, %arg1: i32) -> (i32, i32) {
    %c0_i32 = arith.constant 0 : i32
    %c0_i32_0 = arith.constant 0 : i32
    return %arg0, %c0_i32 : i32, i32
  }
  func.func @transform_1(%arg0: i32, %arg1: i32) -> (i32, i32) {
    %c0_i32 = arith.constant 0 : i32
    %c0_i32_0 = arith.constant 0 : i32
    return %arg1, %c0_i32 : i32, i32
  }
  func.func @transform_2(%arg0: i32, %arg1: i32) -> (i32, i32) {
    %c0_i32 = arith.constant 0 : i32
    %c0_i32_0 = arith.constant 0 : i32
    return %arg0, %c0_i32 : i32, i32
  }
  func.func @transform_3(%arg0: i32, %arg1: i32) -> (i32, i32) {
    %c0_i32 = arith.constant 0 : i32
    %c0_i32_0 = arith.constant 0 : i32
    return %c0_i32, %arg1 : i32, i32
  }
  func.func @transform_4(%arg0: i32, %arg1: i32) -> (i32, i32) {
    %c0_i32 = arith.constant 0 : i32
    %c0_i32_0 = arith.constant 0 : i32
    return %c0_i32, %arg1 : i32, i32
  }
  func.func @transform_5(%arg0: i32, %arg1: i32) -> (i32, i32) {
    %c0_i32 = arith.constant 0 : i32
    %c0_i32_0 = arith.constant 0 : i32
    return %arg0, %c0_i32 : i32, i32
  }
  func.func @transform_6(%arg0: i32, %arg1: i32) -> (i32, i32) {
    %c0_i32 = arith.constant 0 : i32
    %c0_i32_0 = arith.constant 0 : i32
    return %arg0, %c0_i32 : i32, i32
  }
}

</mosaic_0001>

<bundles_post_ra>
// kernel: tpu_custom_call.1
= control target key start
LH: loop header
LB: loop body
LE: loop exit
PB: predicated region body
PF: predicated region fallthrough
CT: control target
= control target key end

     0   :  { %s2544_s21 = smov 0   ;;  %s2546_s22 = smov 0   ;;  %s4747_s0 = inlined_call_operand.vmem [shape: bf16[256,128], index: 0, kind: input, shape index: {}]   ;;  %s4748_s1 = inlined_call_operand.vmem [shape: bf16[256,128], index: 1, kind: input, shape index: {}]   ;;  %s4749_s2 = inlined_call_operand.vmem [shape: s32[256,1], index: 2, kind: input, shape index: {}]   ;;  %s4750_s3 = inlined_call_operand.vmem [shape: s32[1,256], index: 3, kind: input, shape index: {}]   ;;  %s4751_s4 = inlined_call_operand.vmem [shape: f32[1,256], index: 4, kind: input, shape index: {}]   ;;  %s4752_s5 = inlined_call_operand.vmem [shape: s32[256,1], index: 5, kind: output, shape index: {0}]   ;;  %s4753_s6 = inlined_call_operand.vmem [shape: s32[256,1], index: 6, kind: output, shape index: {1}]  }
   0x1   :  { %s2548_s23 = smov 0  }
   0x2 LB: > { %s29_s24 = sadd.s32 1, %s2499_s22  ;;  %p2276_p0 = scmp.ge.s32.totalorder %s2503_s23, 1  ;;  %s2503_s23 = sphi %s2548_s23, %s17_s23   ;;  %s2499_s22 = sphi %s2546_s22, %s5278_s22   ;;  %s2495_s21 = sphi %s2544_s21, %s5277_s21  }
   0x3   : > { %p31_p1 = scmp.ge.s32.totalorder %s29_s24, 2  ;;  %p270_p2 = scmp.lt.s32.totalorder %s2503_s23, 3 }
   0x5   : > { %s5280_s24 = smov (%p31_p1, %s29_s24), 0  ;;  %p271_p3 = pnand %p2276_p0, %p270_p2 }
   0x7   : > { %274 = sbr.rel (%p271_p3) target bundleno = 751 (0x2ef), region = 40 }
   0xe   : > { %v2457_v0 = vld [vmem:[%s4748_s1 + $0x40] sm:$0xff]   ;;  %s2277_s27 = sshll.u32 %s2495_s21, 4  ;;  %v2459_v2 = vld [vmem:[%s4748_s1 + $0x48] sm:$0xff]   ;;  %v2505_v3 = vmov 0   ;;  %v2461_v5 = vld [vmem:[%s4748_s1 + $0x50] sm:$0xff]   ;;  %vm2506_vm3 = vmmov 1  }
   0xf   : > { %v2458_v1 = vld [vmem:[%s4748_s1] sm:$0xff]   ;;  %p324_p4 = scmp.lt.s32.totalorder %s2277_s27, 31  ;;  %2315 = vmatprep.subr.bf16.mxu0 %v2457_v0  ;;  %2347 = vmatprep.subr.bf16.mxu1 %v2457_v0  ;;  %v2460_v4 = vld [vmem:[%s4748_s1 + $0x8] sm:$0xff]   ;;  %v2462_v6 = vld [vmem:[%s4748_s1 + $0x10] sm:$0xff]   ;;  %v4947_v55 = vmov 0  ;;  %v4949_v57 = vmov 0 }
  0x10   : > { %2316 = vmatpush3.bf16.xpose.msra.mxu0 %v2458_v1  ;;  %2355 = vmatpush3.bf16.xpose.msra.mxu1 %v2458_v1  ;;  %v2463_v7 = vld [vmem:[%s4748_s1 + $0x58] sm:$0xff]   ;;  %v2465_v11 = vld [vmem:[%s4748_s1 + $0x60] sm:$0xff]   ;;  %v2467_v19 = vld [vmem:[%s4748_s1 + $0x68] sm:$0xff]   ;;  %v4951_v59 = vmov 0 }
  0x11   : > { %2317 = vmatprep.subr.bf16.mxu0 %v2459_v2  ;;  %2348 = vmatprep.subr.bf16.mxu1 %v2459_v2  ;;  %s5282_s27 = smov (!%p324_p4, %s2277_s27), 31  ;;  %v2464_v10 = vld [vmem:[%s4748_s1 + $0x18] sm:$0xff]   ;;  %v2466_v17 = vld [vmem:[%s4748_s1 + $0x20] sm:$0xff]   ;;  %v2468_v23 = vld [vmem:[%s4748_s1 + $0x28] sm:$0xff]  }
  0x12   : > { %2455 = vset.pattern.permute.xlu0 %v2505_v3  ;;  %2456 = vset.pattern.permute.xlu1 %v2505_v3  ;;  %s2278_s12 = sshll.u32 %s5282_s27, 2  ;;  %s2595_s20 = sshll.u32 %s5282_s27, 3  ;;  %v2469_v25 = vld [vmem:[%s4748_s1 + $0x70] sm:$0xff]   ;;  %v2471_v31 = vld [vmem:[%s4748_s1 + $0x78] sm:$0xff]   ;;  %v2666_v45 = vld [vmem:[%s4750_s3 + $0x1] ss:$0 sm:$0xff] }
  0x13   : > { %s2580_s15 = scalar_lea.vmem %s4747_s0, %s2278_s12  ;;  %s2602_s26 = scalar_lea.vmem %s4749_s2, %s2595_s20  ;;  %v2470_v29 = vld [vmem:[%s4748_s1 + $0x30] sm:$0xff]   ;;  %v2472_v34 = vld [vmem:[%s4748_s1 + $0x38] sm:$0xff]   ;;  %v2675_v48 = vld [vmem:[%s4750_s3] ss:$0 sm:$0xff] }
  0x14   : > { %v2589_v8 = vld [vmem:[%s2580_s15] sm:$0xff]   ;;  %v740_v13 = vld [vmem:[%s2602_s26 + $0x10] sm:$0xff]  ;;  %v739_v14 = vld [vmem:[%s2602_s26 + $0x8] sm:$0xff]  ;;  %s4446_s11 = scalar_lea.vmem %s4752_s5, %s2595_s20  ;;  %s4490_s14 = scalar_lea.vmem %s4753_s6, %s2595_s20 }
  0x15   : > { %v2592_v9 = vld [vmem:[%s2580_s15 + $0x20] sm:$0xff]   ;;  %2331 = vmatprep.mubr.bf16.mxu0 %v2589_v8  ;;  %807 = vperm.xlu1 %2456, %v740_v13   ;;  %v741_v15 = vld [vmem:[%s2602_s26 + $0x18] sm:$0xff]  ;;  %v743_v18 = vld [vmem:[%s2602_s26 + $0x28] sm:$0xff] }
  0x16   : > { %2339 = vmatprep.mubr.bf16.mxu1 %v2592_v9  ;;  %v738_v12 = vld [vmem:[%s2602_s26] sm:$0xff]  ;;  %v744_v20 = vld [vmem:[%s2602_s26 + $0x30] sm:$0xff]  ;;  %v745_v21 = vld [vmem:[%s2602_s26 + $0x38] sm:$0xff] }
  0x17   : > { %801 = vperm.xlu0 %2455, %v738_v12   ;;  %v742_v16 = vld [vmem:[%s2602_s26 + $0x20] sm:$0xff]  ;;  %v747_v24 = vld [vmem:[%s2602_s26 + $0x48] sm:$0xff]  ;;  %v748_v26 = vld [vmem:[%s2602_s26 + $0x50] sm:$0xff] }
  0x18   : > { %2318 = vmatpush3.bf16.xpose.msra.mxu0 %v2460_v4  ;;  %2356 = vmatpush3.bf16.xpose.msra.mxu1 %v2460_v4  ;;  %v746_v22 = vld [vmem:[%s2602_s26 + $0x40] sm:$0xff]  ;;  %v749_v27 = vld [vmem:[%s2602_s26 + $0x58] sm:$0xff]  ;;  %v751_v30 = vld [vmem:[%s2602_s26 + $0x68] sm:$0xff] }
  0x19   : > { %2319 = vmatprep.subr.bf16.mxu0 %v2461_v5  ;;  %2349 = vmatprep.subr.bf16.mxu1 %v2461_v5  ;;  %v750_v28 = vld [vmem:[%s2602_s26 + $0x60] sm:$0xff]  ;;  %v752_v32 = vld [vmem:[%s2602_s26 + $0x70] sm:$0xff]  ;;  %v753_v33 = vld [vmem:[%s2602_s26 + $0x78] sm:$0xff] }
  0x1a   : > { %810 = vperm.xlu1 %2456, %v741_v15   ;;  %v2475_v35 = vld [vmem:[%s2580_s15 + $0x8] sm:$0xff]   ;;  %v2477_v37 = vld [vmem:[%s2580_s15 + $0x10] sm:$0xff]   ;;  %v2479_v39 = vld [vmem:[%s2580_s15 + $0x18] sm:$0xff]  }
  0x1b   : > { %804 = vperm.xlu0 %2455, %v739_v14   ;;  %v2476_v36 = vld [vmem:[%s2580_s15 + $0x28] sm:$0xff]   ;;  %v2478_v38 = vld [vmem:[%s2580_s15 + $0x30] sm:$0xff]   ;;  %v2480_v40 = vld [vmem:[%s2580_s15 + $0x38] sm:$0xff]  }
  0x1c   : > { %v2850_v12 = vld [vmem:[%s4751_s4] ss:$0 sm:$0xff] }
  0x1e   : > { %816 = vperm.xlu1 %2456, %v743_v18  }
  0x1f   : > { %813 = vperm.xlu0 %2455, %v742_v16  }
  0x20   : > { %2320 = vmatpush3.bf16.xpose.msra.mxu0 %v2462_v6  ;;  %2357 = vmatpush3.bf16.xpose.msra.mxu1 %v2462_v6  ;;  %v4962_v6 = vmov 0 }
  0x21   : > { %2321 = vmatprep.subr.bf16.mxu0 %v2463_v7  ;;  %2350 = vmatprep.subr.bf16.mxu1 %v2463_v7  ;;  %v4964_v7 = vmov 0 }
  0x22   : > { %822 = vperm.xlu1 %2456, %v745_v21  }
  0x23   : > { %819 = vperm.xlu0 %2455, %v744_v20   ;;  %v2855_v20 = vld [vmem:[%s4751_s4 + $0x1] ss:$0 sm:$0xff] }
  0x26   : > { %828 = vperm.xlu1 %2456, %v747_v24  }
  0x27   : > { %825 = vperm.xlu0 %2455, %v746_v22  }
  0x28   : > { %2322 = vmatpush3.bf16.xpose.msra.mxu0 %v2464_v10  ;;  %2358 = vmatpush3.bf16.xpose.msra.mxu1 %v2464_v10 }
  0x29   : > { %2323 = vmatprep.subr.bf16.mxu0 %v2465_v11  ;;  %2351 = vmatprep.subr.bf16.mxu1 %v2465_v11 }
  0x2a   : > { %834 = vperm.xlu1 %2456, %v749_v27  }
  0x2b   : > { %831 = vperm.xlu0 %2455, %v748_v26  }
  0x2e   : > { %840 = vperm.xlu1 %2456, %v751_v30  }
  0x2f   : > { %837 = vperm.xlu0 %2455, %v750_v28  }
  0x30   : > { %2324 = vmatpush3.bf16.xpose.msra.mxu0 %v2466_v17  ;;  %2359 = vmatpush3.bf16.xpose.msra.mxu1 %v2466_v17 }
  0x31   : > { %2325 = vmatprep.subr.bf16.mxu0 %v2467_v19  ;;  %2352 = vmatprep.subr.bf16.mxu1 %v2467_v19 }
  0x32   : > { %846 = vperm.xlu1 %2456, %v753_v33  }
  0x33   : > { %843 = vperm.xlu0 %2455, %v752_v32  }
  0x38   : > { %2326 = vmatpush3.bf16.xpose.msra.mxu0 %v2468_v23  ;;  %2360 = vmatpush3.bf16.xpose.msra.mxu1 %v2468_v23 }
  0x39   : > { %2327 = vmatprep.subr.bf16.mxu0 %v2469_v25  ;;  %2353 = vmatprep.subr.bf16.mxu1 %v2469_v25 }
  0x40   : > { %2328 = vmatpush3.bf16.xpose.msra.mxu0 %v2470_v29  ;;  %2361 = vmatpush3.bf16.xpose.msra.mxu1 %v2470_v29 }
  0x41   : > { %2329 = vmatprep.subr.bf16.mxu0 %v2471_v31  ;;  %2354 = vmatprep.subr.bf16.mxu1 %v2471_v31 }
  0x48   : > { %2330 = vmatpush3.bf16.xpose.msra.mxu0 %v2472_v34  ;;  %2362 = vmatpush3.bf16.xpose.msra.mxu1 %v2472_v34 }
  0x4f   : > { %2332 = vmatmul.mubr.bf16.vlgmr.msra.gmra.mrb[0].mxu0 %v2589_v8  ;;  %2340 = vmatmul.mubr.bf16.vlgmr.msra.gmra.mrb[0].mxu1 %v2592_v9  ;;  %v4966_v8 = vmov 0  ;;  %v4968_v9 = vmov 0 }
  0x50   : > { %2333 = vmatprep.mubr.bf16.mxu0 %v2475_v35  ;;  %2341 = vmatprep.mubr.bf16.mxu1 %v2476_v36 }
  0x57   : > { %2334 = vmatmul.mubr.bf16.gmra.mrb[4].mxu0 %v2475_v35  ;;  %2342 = vmatmul.mubr.bf16.gmra.mrb[4].mxu1 %v2476_v36 }
  0x58   : > { %2335 = vmatprep.mubr.bf16.mxu0 %v2477_v37  ;;  %2343 = vmatprep.mubr.bf16.mxu1 %v2478_v38 }
  0x5f   : > { %2336 = vmatmul.mubr.bf16.gmra.mrb[8].mxu0 %v2477_v37  ;;  %2344 = vmatmul.mubr.bf16.gmra.mrb[8].mxu1 %v2478_v38 }
  0x60   : > { %2337 = vmatprep.mubr.bf16.mxu0 %v2479_v39  ;;  %2345 = vmatprep.mubr.bf16.mxu1 %v2480_v40 }
  0x67   : > { %2338 = vmatmul.mubr.bf16.gmra.mrb[12].mxu0 %v2479_v39  ;;  %2346 = vmatmul.mubr.bf16.gmra.mrb[12].mxu1 %v2480_v40 }
  0x94   : > { %v2657_v42 = vpop.permute.xlu1 %807 }
  0x95   : > { %4937 = vst [vmem:[#allocation6_spill] sm:$0xff] %v2657_v42 }
  0x96   : > { %v2655_v41 = vpop.permute.xlu0 %801 }
  0x99   : > { %v2661_v44 = vpop.permute.xlu1 %810 }
  0x9a   : > { %v2659_v43 = vpop.permute.xlu0 %804 }
  0x9d   : > { %v2670_v47 = vpop.permute.xlu1 %816 }
  0x9e   : > { %v2668_v46 = vpop.permute.xlu0 %813  ;;  %vm4759_vm1 = vcmp.eq.s32.totalorder %v2670_v47, %v2675_v48  ;;  %vm4758_vm2 = vcmp.eq.s32.totalorder %v2670_v47, %v2666_v45 }
  0x9f   : > { %4938 = vst [vmem:[#allocation7_spill] sm:$0xff] %v2668_v46  ;;  %vm4761_vm0 = vcmp.eq.s32.totalorder %v2668_v46, %v2666_v45  ;;  %vm2697_vm5 = vmxor %vm4759_vm1, %vm2506_vm3 }
  0xa0   : > { %vm2687_vm4 = vmxor %vm4761_vm0, %vm2506_vm3 }
  0xa1   : > { %v2701_v52 = vpop.permute.xlu1 %822  ;;  %vm2707_vm6 = vmxor %vm4758_vm2, %vm2506_vm3 }
  0xa2   : > { %v2691_v50 = vpop.permute.xlu0 %819  ;;  %vm4754_vm9 = vcmp.eq.s32.totalorder %v2701_v52, %v2675_v48  ;;  %vm4756_vm11 = vcmp.eq.s32.totalorder %v2701_v52, %v2666_v45 }
  0xa3   : > { %vm4757_vm7 = vcmp.eq.s32.totalorder %v2691_v50, %v2675_v48  ;;  %vm4755_vm8 = vcmp.eq.s32.totalorder %v2691_v50, %v2666_v45  ;;  %vm2741_vm13 = vmxor %vm4754_vm9, %vm2506_vm3 }
  0xa4   : > { %vm2721_vm10 = vmxor %vm4757_vm7, %vm2506_vm3  ;;  %v4950_v57 = vsel %vm2741_vm13, 4294967295, %v4949_v57 }
  0xa5   : > { %vm2731_vm12 = vmxor %vm4755_vm8, %vm2506_vm3  ;;  %v2745_v58 = vpop.permute.xlu1 %828 }
  0xa6   : > { %v4948_v55 = vsel %vm2731_vm12, 4294967295, %v4947_v55  ;;  %v2735_v56 = vpop.permute.xlu0 %825  ;;  %vm2751_vm14 = vmxor %vm4756_vm11, %vm2506_vm3 }
  0xa7   : > { %v4952_v59 = vsel %vm2751_vm14, 4294967295, %v4951_v59 }
  0xa9   : > { %v2757_v61 = vpop.permute.xlu1 %834 }
  0xaa   : > { %v2755_v60 = vpop.permute.xlu0 %831  ;;  %4953 = vst [vmem:[#allocation8_spill] sm:$0xff] %v2757_v61 }
  0xad   : > { %v2761_v63 = vpop.permute.xlu1 %840 }
  0xae   : > { %v2759_v62 = vpop.permute.xlu0 %837  ;;  %vm4763_vm8 = vcmp.eq.s32.totalorder %v2761_v63, %v2675_v48  ;;  %vm4764_vm7 = vcmp.eq.s32.totalorder %v2761_v63, %v2666_v45 }
  0xaf   : > { %vm4762_vm15 = vcmp.eq.s32.totalorder %v2759_v62, %v2675_v48  ;;  %vm4760_vm9 = vcmp.eq.s32.totalorder %v2759_v62, %v2666_v45  ;;  %vm2793_vm1 = vmxor %vm4763_vm8, %vm2506_vm3 }
  0xb0   : > { %vm2773_vm11 = vmxor %vm4762_vm15, %vm2506_vm3 }
  0xb1   : > { %vm2783_vm2 = vmxor %vm4760_vm9, %vm2506_vm3  ;;  %v2797_v4 = vpop.permute.xlu1 %846 }
  0xb2   : > { %v2787_v2 = vpop.permute.xlu0 %843  ;;  %vm2803_vm9 = vmxor %vm4764_vm7, %vm2506_vm3  ;;  %vm4766_vm8 = vcmp.eq.s32.totalorder %v2797_v4, %v2675_v48  ;;  %vm4768_vm7 = vcmp.eq.s32.totalorder %v2797_v4, %v2666_v45 }
  0xb3   : > { %vm4765_vm0 = vcmp.eq.s32.totalorder %v2787_v2, %v2675_v48  ;;  %vm4767_vm15 = vcmp.eq.s32.totalorder %v2787_v2, %v2666_v45  ;;  %vm2835_vm12 = vmxor %vm4766_vm8, %vm2506_vm3  ;;  %vm4772_vm8 = vcmp.eq.s32.totalorder %v2655_v41, %v2675_v48 }
  0xb4   : > { %vm2817_vm14 = vmxor %vm4765_vm0, %vm2506_vm3  ;;  %v4967_v8 = vsel %vm2835_vm12, 4294967295, %v4966_v8  ;;  %vm4983_vm12 = vcmp.eq.s32.totalorder %v2659_v43, %v2675_v48 }
  0xb5   : > { %v4963_v6 = vsel %vm2817_vm14, 4294967295, %v4962_v6  ;;  %vm2827_vm13 = vmxor %vm4767_vm15, %vm2506_vm3  ;;  %vm4769_vm15 = vcmp.eq.s32.totalorder %v2735_v56, %v2675_v48 }
  0xb6   : > { %v4965_v7 = vsel %vm2827_vm13, 4294967295, %v4964_v7  ;;  %vm2843_vm0 = vmxor %vm4768_vm7, %vm2506_vm3  ;;  %vm4770_vm7 = vcmp.eq.s32.totalorder %v2745_v58, %v2675_v48 }
  0xb7   : > { %v4969_v9 = vsel %vm2843_vm0, 4294967295, %v4968_v9 }
  0xb8   : > { %4970 = vst [vmem:[#allocation9_spill] sm:$0xff] %v4969_v9 }
 0x122   : > { %v659_v10 = vpop.f32.mrb[0].mxu0  ;;  %v699_v11 = vpop.f32.mrb[0].mxu1 }
 0x123   : > { %v761_v13 = vmul.f32 2.0, %v659_v10  ;;  %v769_v14 = vmul.f32 2.0, %v699_v11  ;;  %v661_v15 = vpop.f32.mrb[1].mxu0  ;;  %v701_v16 = vpop.f32.mrb[1].mxu1 }
 0x124   : > { %v1384_v17 = vmul.f32 2.0, %v661_v15  ;;  %v663_v18 = vpop.f32.mrb[2].mxu0  ;;  %v703_v19 = vpop.f32.mrb[2].mxu1  ;;  %v1392_v26 = vmul.f32 2.0, %v701_v16 }
 0x125   : > { %v770_v21 = vmul.f32 2.0, %v703_v19  ;;  %v665_v22 = vpop.f32.mrb[3].mxu0  ;;  %v705_v23 = vpop.f32.mrb[3].mxu1  ;;  %v2858_v24 = vsub.f32 %v2850_v12, %v769_v14  ;;  %v783_v25 = vsub.f32 %v2850_v12, %v761_v13  ;;  %v762_v27 = vmul.f32 2.0, %v663_v18 }
 0x126   : > { %v1385_v28 = vmul.f32 2.0, %v665_v22  ;;  %v2880_v32 = vsub.f32 %v2855_v20, %v1384_v17  ;;  %v1393_v33 = vmul.f32 2.0, %v705_v23  ;;  %v2889_v36 = vsub.f32 %v2855_v20, %v1392_v26 }
 0x127   : > { %v2869_v29 = vsel %vm4769_vm15, %v2858_v24, -inf  ;;  %v2874_v30 = vsel %vm4772_vm8, %v783_v25, -inf  ;;  %v2877_v31 = vsub.f32 %v2850_v12, %v770_v21  ;;  %vm4771_vm15 = vcmp.eq.s32.totalorder %v2655_v41, %v2666_v45 }
 0x128   : > { %4971 = vst [vmem:[#allocation10_spill] sm:$0xff] %v2869_v29  ;;  %4972 = vst [vmem:[#allocation11_spill] sm:$0xff] %v2874_v30  ;;  %916 = vmax.xlane.f32.xlu1 %v2869_v29  ;;  %900 = vmax.xlane.f32.xlu0 %v2874_v30  ;;  %v2901_v40 = vsel %vm4771_vm15, %v2880_v32, -inf  ;;  %v2904_v10 = vsub.f32 %v2855_v20, %v1385_v28  ;;  %v784_v11 = vsub.f32 %v2850_v12, %v762_v27 }
 0x129   : > { %v2895_v39 = vsel %vm4770_vm7, %v2877_v31, -inf  ;;  %4974 = vst [vmem:[#allocation13_spill] sm:$0xff] %v2901_v40  ;;  %vm4773_vm7 = vcmp.eq.s32.totalorder %v2735_v56, %v2666_v45  ;;  %vm4774_vm15 = vcmp.eq.s32.totalorder %v2659_v43, %v2666_v45  ;;  %v1415_v17 = vsub.f32 %v2855_v20, %v1393_v33 }
 0x12a   : > { %v669_v34 = vpop.f32.mrb[4].mxu0  ;;  %v709_v35 = vpop.f32.mrb[4].mxu1  ;;  %4973 = vst [vmem:[#allocation12_spill] sm:$0xff] %v2895_v39  ;;  %v1126_v18 = vsub.f32 0.0, %v783_v25  ;;  %v2920_v19 = vsel %vm4773_vm7, %v2889_v36, -inf  ;;  %v2926_v21 = vsel %vm4774_vm15, %v2904_v10, -inf  ;;  %vm4978_vm7 = vcmp.eq.s32.totalorder %v2655_v41, %v2675_v48 }
 0x12b   : > { %v671_v37 = vpop.f32.mrb[5].mxu0  ;;  %v711_v38 = vpop.f32.mrb[5].mxu1  ;;  %4976 = vst [vmem:[#allocation15_spill] sm:$0xff] %v2920_v19  ;;  %4977 = vst [vmem:[#allocation16_spill] sm:$0xff] %v2926_v21  ;;  %v1127_v22 = vsub.f32 0.0, %v784_v11  ;;  %v771_v23 = vmul.f32 2.0, %v709_v35  ;;  %vm4786_vm15 = vcmp.eq.s32.totalorder %v2745_v58, %v2666_v45  ;;  %vm4979_vm8 = vcmp.eq.s32.totalorder %v2655_v41, %v2666_v45 }
 0x12c   : > { %v713_v13 = vpop.f32.mrb[6].mxu1  ;;  %918 = vmax.xlane.f32.xlu0 %v2895_v39  ;;  %1475 = vmax.xlane.f32.xlu1 %v2901_v40  ;;  %v673_v14 = vpop.f32.mrb[6].mxu0  ;;  %vm868_vm0 = vmxor %vm4978_vm7, %vm2506_vm3  ;;  %v763_v25 = vmul.f32 2.0, %v669_v34  ;;  %v1134_v26 = vsub.f32 0.0, %v2858_v24  ;;  %v2956_v34 = vsel %vm4983_vm12, %v784_v11, -inf  ;;  %v2961_v24 = vsel %vm4786_vm15, %v1415_v17, -inf }
 0x12d   : > { %v675_v15 = vpop.f32.mrb[7].mxu0  ;;  %v2909_v16 = vpop.f32.mrb[7].mxu1  ;;  %vm2945_vm13 = vmxor %vm4979_vm8, %vm2506_vm3  ;;  %4984 = vst [vmem:[#allocation18_spill] sm:$0xff] %v2956_v34  ;;  %v2963_v41 = vsel %vm868_vm0, %v1126_v18, -inf  ;;  %v1135_v35 = vsub.f32 0.0, %v2877_v31  ;;  %v1700_v40 = vsub.f32 0.0, %v2880_v32  ;;  %vm4989_vm0 = vcmp.eq.s32.totalorder %v2659_v43, %v2666_v45 }
 0x12e   : > { %4975 = vst [vmem:[#allocation14_spill] sm:$0xff] %v2909_v16  ;;  %4985 = vst [vmem:[#allocation19_spill] sm:$0xff] %v2961_v24  ;;  %v1701_v31 = vsub.f32 0.0, %v2904_v10  ;;  %v764_v29 = vmul.f32 2.0, %v673_v14  ;;  %v1708_v43 = vsub.f32 0.0, %v2889_v36  ;;  %v1709_v32 = vsub.f32 0.0, %v1415_v17 }
 0x12f   : > { %4986 = vst [vmem:[#allocation20_spill] sm:$0xff] %v2963_v41  ;;  %vm4987_vm8 = vmmov %vm4983_vm12 }
 0x130   : > { %1491 = vmax.xlane.f32.xlu1 %v2920_v19  ;;  %1477 = vmax.xlane.f32.xlu0 %v2926_v21  ;;  %vm869_vm7 = vmxor %vm4987_vm8, %vm2506_vm3  ;;  %v1386_v21 = vmul.f32 2.0, %v671_v37 }
 0x131   : > { %v2972_v19 = vsel %vm869_vm7, %v1127_v22, -inf  ;;  %vm2979_vm12 = vmxor %vm4989_vm0, %vm2506_vm3  ;;  %vm4992_vm7 = vcmp.eq.s32.totalorder %v2735_v56, %v2675_v48  ;;  %v2992_v22 = vsub.f32 %v2850_v12, %v771_v23  ;;  %vm4995_vm0 = vcmp.eq.s32.totalorder %v2745_v58, %v2675_v48 }
 0x132   : > { %v2951_v28 = vpop.f32.mrb[8].mxu0  ;;  %v719_v33 = vpop.f32.mrb[8].mxu1  ;;  %4988 = vst [vmem:[#allocation21_spill] sm:$0xff] %v2972_v19  ;;  %vm876_vm8 = vmxor %vm4992_vm7, %vm2506_vm3  ;;  %vm4997_vm7 = vcmp.eq.s32.totalorder %v2735_v56, %v2666_v45  ;;  %v3013_v23 = vsel %vm2945_vm13, %v1700_v40, -inf  ;;  %vm5000_vm13 = vcmp.eq.s32.totalorder %v2755_v60, %v2675_v48 }
 0x133   : > { %4982 = vst [vmem:[#allocation17_spill] sm:$0xff] %v2951_v28  ;;  %v681_v11 = vpop.f32.mrb[9].mxu0  ;;  %v721_v39 = vpop.f32.mrb[9].mxu1  ;;  %4993 = vst [vmem:[#allocation22_spill] sm:$0xff] %v2992_v22  ;;  %v1394_v28 = vmul.f32 2.0, %v711_v38  ;;  %v773_v10 = vmul.f32 2.0, %v719_v33 }
 0x134   : > { %v723_v30 = vpop.f32.mrb[10].mxu1  ;;  %902 = vmax.xlane.f32.xlu1 %v2956_v34  ;;  %1493 = vmax.xlane.f32.xlu0 %v2961_v24  ;;  %v683_v37 = vpop.f32.mrb[10].mxu0  ;;  %v2994_v16 = vsel %vm876_vm8, %v1134_v26, -inf  ;;  %vm877_vm14 = vmxor %vm4995_vm0, %vm2506_vm3  ;;  %v3001_v24 = vsub.f32 %v2850_v12, %v763_v25  ;;  %v772_v34 = vmul.f32 2.0, %v713_v13  ;;  %v1388_v36 = vmul.f32 2.0, %v681_v11 }
 0x135   : > { %v685_v14 = vpop.f32.mrb[11].mxu0  ;;  %v725_v61 = vpop.f32.mrb[11].mxu1  ;;  %4994 = vst [vmem:[#allocation23_spill] sm:$0xff] %v2994_v16  ;;  %v766_v17 = vmul.f32 2.0, %v683_v37  ;;  %v3003_v9 = vsel %vm877_vm14, %v1135_v35, -inf  ;;  %vm1451_vm15 = vmxor %vm4997_vm7, %vm2506_vm3  ;;  %v3009_v38 = vmul.f32 2.0, %v675_v15  ;;  %vm4998_vm14 = vcmp.eq.s32.totalorder %v2745_v58, %v2666_v45 }
 0x136   : > { %4996 = vst [vmem:[#allocation24_spill] sm:$0xff] %v3003_v9  ;;  %v3017_v25 = vsel %vm2979_vm12, %v1701_v31, -inf  ;;  %vm1452_vm8 = vmxor %vm4998_vm14, %vm2506_vm3  ;;  %v3024_v13 = vsub.f32 %v2855_v20, %v1386_v21  ;;  %v3028_v56 = vsel %vm1451_vm15, %v1708_v43, -inf  ;;  %v3036_v15 = vsel %vm5000_vm13, %v2992_v22, -inf }
 0x137   : > { %v3030_v40 = vsel %vm1452_vm8, %v1709_v32, -inf  ;;  %v3039_v58 = vsub.f32 %v2850_v12, %v764_v29  ;;  %v1396_v26 = vmul.f32 2.0, %v721_v39  ;;  %v774_v21 = vmul.f32 2.0, %v723_v30 }
 0x138   : > { %4999 = vst [vmem:[#allocation25_spill] sm:$0xff] %v3024_v13  ;;  %1158 = vmax.xlane.f32.xlu1 %v2963_v41  ;;  %1160 = vmax.xlane.f32.xlu0 %v2972_v19  ;;  %vm5001_vm12 = vcmp.eq.s32.totalorder %v2657_v42, %v2675_v48  ;;  %v795_v33 = vsub.f32 %v2850_v12, %v773_v10  ;;  %v1389_v35 = vmul.f32 2.0, %v685_v14  ;;  %v1397_v39 = vmul.f32 2.0, %v725_v61 }
 0x139   : > { %v3045_v27 = vsel %vm5001_vm12, %v3001_v24, -inf  ;;  %v3049_v31 = vsub.f32 %v2855_v20, %v1394_v28  ;;  %v1410_v37 = vsub.f32 %v2855_v20, %v1388_v36  ;;  %v788_v29 = vsub.f32 %v2850_v12, %v766_v17 }
 0x13a   : > { %v689_v11 = vpop.f32.mrb[12].mxu0  ;;  %v729_v18 = vpop.f32.mrb[12].mxu1  ;;  %vm5002_vm15 = vcmp.eq.s32.totalorder %v2657_v42, %v2666_v45  ;;  %v3060_v10 = vsub.f32 %v2850_v12, %v772_v34  ;;  %vm5003_vm0 = vcmp.eq.s32.totalorder %v2759_v62, %v2675_v48  ;;  %vm5005_vm7 = vcmp.eq.s32.totalorder %v2668_v46, %v2666_v45 }
 0x13b   : > { %v691_v30 = vpop.f32.mrb[13].mxu0  ;;  %v731_v43 = vpop.f32.mrb[13].mxu1  ;;  %v3057_v32 = vsel %vm5002_vm15, %v3024_v13, -inf  ;;  %v3065_v28 = vsel %vm5003_vm0, %v795_v33, -inf  ;;  %v767_v14 = vmul.f32 2.0, %v689_v11  ;;  %v775_v36 = vmul.f32 2.0, %v729_v18 }
 0x13c   : > { %5004 = vst [vmem:[#allocation26_spill] sm:$0xff] %v3065_v28  ;;  %v733_v17 = vpop.f32.mrb[14].mxu1  ;;  %1174 = vmax.xlane.f32.xlu1 %v2994_v16  ;;  %1176 = vmax.xlane.f32.xlu0 %v3003_v9  ;;  %v693_v61 = vpop.f32.mrb[14].mxu0  ;;  %v3072_v19 = vsel %vm5005_vm7, %v1410_v37, -inf  ;;  %vm5007_vm14 = vcmp.eq.s32.totalorder %v2670_v47, %v2675_v48  ;;  %v1390_v41 = vmul.f32 2.0, %v691_v30  ;;  %v1398_v28 = vmul.f32 2.0, %v731_v43 }
 0x13d   : > { %5006 = vst [vmem:[#allocation27_spill] sm:$0xff] %v3072_v19  ;;  %v3077_v34 = vsel %vm5007_vm14, %v788_v29, -inf  ;;  %v695_v11 = vpop.f32.mrb[15].mxu0  ;;  %v735_v18 = vpop.f32.mrb[15].mxu1  ;;  %v1418_v13 = vsub.f32 %v2855_v20, %v1396_v26  ;;  %v796_v16 = vsub.f32 %v2850_v12, %v774_v21  ;;  %v776_v9 = vmul.f32 2.0, %v733_v17 }
 0x13e   : > { %5008 = vst [vmem:[#allocation28_spill] sm:$0xff] %v3077_v34  ;;  %v1391_v22 = vmul.f32 2.0, %v695_v11  ;;  %v1399_v42 = vmul.f32 2.0, %v735_v18  ;;  %v1411_v46 = vsub.f32 %v2855_v20, %v1389_v35  ;;  %vm5009_vm8 = vcmp.eq.s32.totalorder %v2759_v62, %v2666_v45 }
 0x13f   : > { %v3085_v19 = vsel %vm5009_vm8, %v1418_v13, -inf  ;;  %vm5010_vm13 = vcmp.eq.s32.totalorder %v2761_v63, %v2675_v48  ;;  %v1138_v43 = vsub.f32 0.0, %v795_v33  ;;  %v1419_v26 = vsub.f32 %v2855_v20, %v1397_v39 }
 0x140   : > { %v3090_v30 = vsel %vm5010_vm13, %v796_v16, -inf  ;;  %v768_v34 = vmul.f32 2.0, %v693_v61  ;;  %v1413_v21 = vsub.f32 %v2855_v20, %v1391_v22  ;;  %v1421_v17 = vsub.f32 %v2855_v20, %v1399_v42  ;;  %1732 = vmax.xlane.f32.xlu1 %v3013_v23  ;;  %1734 = vmax.xlane.f32.xlu0 %v3017_v25 }
 0x141   : > { %vm5011_vm12 = vcmp.eq.s32.totalorder %v2670_v47, %v2666_v45  ;;  %vm855_vm15 = vcmp.eq.s32.totalorder %v2661_v44, %v2675_v48  ;;  %v3106_v33 = vsel %vm2773_vm11, %v1138_v43, -inf  ;;  %vm5012_vm0 = vcmp.eq.s32.totalorder %v2761_v63, %v2666_v45 }
 0x142   : > { %v3100_v62 = vsel %vm5011_vm12, %v1411_v46, -inf  ;;  %v3111_v42 = vsel %vm5012_vm0, %v1419_v26, -inf  ;;  %v1704_v22 = vsub.f32 0.0, %v1410_v37  ;;  %v1131_v35 = vsub.f32 0.0, %v788_v29 }
 0x143   : > { %v1712_v39 = vsub.f32 0.0, %v1418_v13  ;;  %v1139_v61 = vsub.f32 0.0, %v796_v16  ;;  %v1705_v11 = vsub.f32 0.0, %v1411_v46  ;;  %v789_v47 = vsub.f32 %v2850_v12, %v767_v14 }
 0x144   : > { %v3116_v18 = vsel %vm2687_vm4, %v1704_v22, -inf  ;;  %v3120_v0 = vsel %vm2697_vm5, %v1131_v35, -inf  ;;  %v1713_v43 = vsub.f32 0.0, %v1419_v26  ;;  %v797_v63 = vsub.f32 %v2850_v12, %v775_v36  ;;  %1748 = vmax.xlane.f32.xlu1 %v3028_v56  ;;  %1750 = vmax.xlane.f32.xlu0 %v3030_v40 }
 0x145   : > { %v3127_v46 = vsel %vm2783_vm2, %v1712_v39, -inf  ;;  %v3131_v49 = vsel %vm2793_vm1, %v1139_v61, -inf  ;;  %v3135_v51 = vsel %vm2707_vm6, %v1705_v11, -inf  ;;  %vm5013_vm4 = vcmp.eq.s32.totalorder %v2691_v50, %v2675_v48 }
 0x146   : > { %v3140_v16 = vsel %vm5013_vm4, %v789_v47, -inf  ;;  %v3144_v13 = vsel %vm2803_vm9, %v1713_v43, -inf  ;;  %vm5014_vm2 = vcmp.eq.s32.totalorder %v2787_v2, %v2675_v48  ;;  %v1412_v3 = vsub.f32 %v2855_v20, %v1390_v41 }
 0x147   : > { %v3149_v1 = vsel %vm5014_vm2, %v797_v63, -inf  ;;  %v790_v53 = vsub.f32 %v2850_v12, %v768_v34  ;;  %v1420_v37 = vsub.f32 %v2855_v20, %v1398_v28  ;;  %v798_v29 = vsub.f32 %v2850_v12, %v776_v9 }
 0x148   : > { %v1132_v14 = vsub.f32 0.0, %v789_v47  ;;  %vm5015_vm1 = vcmp.eq.s32.totalorder %v2701_v52, %v2666_v45  ;;  %vm5016_vm5 = vcmp.eq.s32.totalorder %v2691_v50, %v2666_v45  ;;  %vm5017_vm6 = vcmp.eq.s32.totalorder %v2701_v52, %v2675_v48  ;;  %920 = vmax.xlane.f32.xlu1 %v3036_v15  ;;  %904 = vmax.xlane.f32.xlu0 %v3045_v27 }
 0x149   : > { %v3158_v5 = vsel %vm5015_vm1, %v1413_v21, -inf  ;;  %v3163_v36 = vsel %vm5016_vm5, %v1412_v3, -inf  ;;  %v3168_v41 = vsel %vm5017_vm6, %v790_v53, -inf  ;;  %v1140_v34 = vsub.f32 0.0, %v797_v63 }
 0x14a   : > { %vm5018_vm9 = vcmp.eq.s32.totalorder %v2797_v4, %v2666_v45  ;;  %vm5019_vm11 = vcmp.eq.s32.totalorder %v2787_v2, %v2666_v45  ;;  %vm5020_vm7 = vcmp.eq.s32.totalorder %v2797_v4, %v2675_v48  ;;  %v3189_v28 = vsel %vm2721_vm10, %v1132_v14, -inf }
 0x14b   : > { %v3173_v9 = vsel %vm5018_vm9, %v1421_v17, -inf  ;;  %v3180_v50 = vsel %vm5019_vm11, %v1420_v37, -inf  ;;  %v3185_v52 = vsel %vm5020_vm7, %v798_v29, -inf  ;;  %v1706_v26 = vsub.f32 0.0, %v1412_v3 }
 0x14c   : > { %vm5021_vm14 = vnez %v4963_v6  ;;  %v1133_v35 = vsub.f32 0.0, %v790_v53  ;;  %v1714_v39 = vsub.f32 0.0, %v1420_v37  ;;  %v1141_v61 = vsub.f32 0.0, %v798_v29  ;;  %1479 = vmax.xlane.f32.xlu1 %v3057_v32  ;;  %v5034_v29 = vld [vmem:[#allocation6_spill] sm:$0xff] }
 0x14d   : > { %v3193_v22 = vsel %vm5021_vm14, %v1140_v34, -inf  ;;  %v3199_v2 = vsel %vm855_vm15, %v3039_v58, -inf  ;;  %vm5022_vm8 = vnez %v4948_v55  ;;  %v1707_v54 = vsub.f32 0.0, %v1413_v21 }
 0x14e   : > { %v3203_v4 = vsel %vm5022_vm8, %v1706_v26, -inf  ;;  %v1715_v11 = vsub.f32 0.0, %v1421_v17  ;;  %vm5023_vm10 = vnez %v4950_v57  ;;  %vm5024_vm13 = vnez %v4965_v7  ;;  %906 = vmax.xlane.f32.xlu0 %v3199_v2  ;;  %v5029_v57 = vld [vmem:[#allocation9_spill] sm:$0xff]  ;;  %v5033_v17 = vld [vmem:[#allocation8_spill] sm:$0xff] }
 0x14f   : > { %v3207_v6 = vsel %vm5023_vm10, %v1133_v35, -inf  ;;  %v3211_v47 = vsel %vm5024_vm13, %v1714_v39, -inf  ;;  %vm5025_vm12 = vnez %v4967_v8  ;;  %vm368_vm0 = vcmask 7168  }
 0x150   : > { %v3215_v43 = vsel %vm5025_vm12, %v1141_v61, -inf  ;;  %vm5027_vm4 = vnez %v4952_v59  ;;  %vm5030_vm2 = vnez %v5029_v57  ;;  %v2507_v7 = vmov -inf   ;;  %v5032_v59 = vld [vmem:[#allocation14_spill] sm:$0xff]  ;;  %vm871_vm12 = vmxor %vm855_vm15, %vm2506_vm3 }
 0x151   : > { %5026 = vst [vmem:[#allocation29_spill] sm:$0xff] %v3215_v43  ;;  %v3221_v55 = vsel %vm5027_vm4, %v1707_v54, -inf  ;;  %v3225_v21 = vsel %vm5030_vm2, %v1715_v11, -inf  ;;  %411 = vst.msk [vmem:[#allocation4 + $0x50] sm:$0xff] %vm368_vm0, %v2507_v7  ;;  %v1395_v8 = vmul.f32 2.0, %v5032_v59  ;;  %vm1437_vm1 = vcmp.eq.s32.totalorder %v2755_v60, %v2666_v45  ;;  %v5040_v11 = vld [vmem:[#allocation17_spill] sm:$0xff] }
 0x152   : > { %5028 = vst [vmem:[#allocation30_spill] sm:$0xff] %v3221_v55  ;;  %5031 = vst [vmem:[#allocation9_spill] sm:$0xff] %v3225_v21  ;;  %vm863_vm5 = vcmp.eq.s32.totalorder %v5033_v17, %v2675_v48  ;;  %v3268_v63 = vsel %vm1437_vm1, %v3049_v31, -inf  ;;  %v1128_v53 = vsub.f32 0.0, %v3001_v24  ;;  %v1409_v37 = vsub.f32 %v2855_v20, %v3009_v38  ;;  %v5036_v38 = vld [vmem:[#allocation22_spill] sm:$0xff] }
 0x153   : > { %369 = vst.msk [vmem:[#allocation2] sm:$0xff] %vm368_vm0, %v2507_v7  ;;  %370 = vst.msk [vmem:[#allocation2 + $0x8] sm:$0xff] %vm368_vm0, %v2507_v7  ;;  %v3274_v3 = vsel %vm863_vm5, %v3060_v10, -inf  ;;  %1495 = vmax.xlane.f32.xlu1 %v3268_v63  ;;  %vm5035_vm6 = vcmp.eq.s32.totalorder %v5034_v29, %v2675_v48  ;;  %vm1430_vm11 = vcmp.eq.s32.totalorder %v2661_v44, %v2666_v45  ;;  %v1136_v34 = vsub.f32 0.0, %v5036_v38 }
 0x154   : > { %371 = vst.msk [vmem:[#allocation2 + $0x10] sm:$0xff] %vm368_vm0, %v2507_v7  ;;  %372 = vst.msk [vmem:[#allocation2 + $0x18] sm:$0xff] %vm368_vm0, %v2507_v7  ;;  %922 = vmax.xlane.f32.xlu0 %v3274_v3  ;;  %v3292_v24 = vsel %vm1430_vm11, %v1409_v37, -inf  ;;  %v1417_v26 = vsub.f32 %v2855_v20, %v1395_v8  ;;  %vm5037_vm7 = vcmp.eq.s32.totalorder %v2755_v60, %v2675_v48  ;;  %v5038_v20 = vld [vmem:[#allocation25_spill] sm:$0xff]  ;;  %v1129_v54 = vsub.f32 0.0, %v3039_v58  ;;  %v5041_v60 = vld [vmem:[#allocation7_spill] sm:$0xff] }
 0x155   : > { %373 = vst.msk [vmem:[#allocation2 + $0x20] sm:$0xff] %vm368_vm0, %v2507_v7  ;;  %374 = vst.msk [vmem:[#allocation2 + $0x28] sm:$0xff] %vm368_vm0, %v2507_v7  ;;  %vm1438_vm8 = vcmp.eq.s32.totalorder %v5033_v17, %v2666_v45  ;;  %v1702_v61 = vsub.f32 0.0, %v5038_v20  ;;  %vm5039_vm10 = vcmp.eq.s32.totalorder %v5034_v29, %v2666_v45  ;;  %v765_v57 = vmul.f32 2.0, %v5040_v11  ;;  %v5043_v20 = vld [vmem:[#allocation27_spill] sm:$0xff] }
 0x156   : > { %375 = vst.msk [vmem:[#allocation2 + $0x30] sm:$0xff] %vm368_vm0, %v2507_v7  ;;  %376 = vst.msk [vmem:[#allocation2 + $0x38] sm:$0xff] %vm368_vm0, %v2507_v7  ;;  %v3309_v39 = vsel %vm1438_vm8, %v1417_v26, -inf  ;;  %v3326_v59 = vsel %vm871_vm12, %v1129_v54, -inf  ;;  %v1710_v58 = vsub.f32 0.0, %v3049_v31  ;;  %v1137_v8 = vsub.f32 0.0, %v3060_v10 }
 0x157   : > { %377 = vst.msk [vmem:[#allocation2 + $0x40] sm:$0xff] %vm368_vm0, %v2507_v7  ;;  %378 = vst.msk [vmem:[#allocation2 + $0x48] sm:$0xff] %vm368_vm0, %v2507_v7  ;;  %v1703_v31 = vsub.f32 0.0, %v1409_v37  ;;  %v787_v10 = vsub.f32 %v2850_v12, %v765_v57  ;;  %v1711_v12 = vsub.f32 0.0, %v1417_v26 }
 0x158   : > { %379 = vst.msk [vmem:[#allocation2 + $0x50] sm:$0xff] %vm368_vm0, %v2507_v7  ;;  %380 = vst.msk [vmem:[#allocation2 + $0x58] sm:$0xff] %vm368_vm0, %v2507_v7  ;;  %1481 = vmax.xlane.f32.xlu0 %v3292_v24 }
 0x159   : > { %381 = vst.msk [vmem:[#allocation2 + $0x60] sm:$0xff] %vm368_vm0, %v2507_v7  ;;  %382 = vst.msk [vmem:[#allocation2 + $0x68] sm:$0xff] %vm368_vm0, %v2507_v7  ;;  %v1130_v26 = vsub.f32 0.0, %v787_v10 }
 0x15a   : > { %383 = vst.msk [vmem:[#allocation2 + $0x70] sm:$0xff] %vm368_vm0, %v2507_v7  ;;  %384 = vst.msk [vmem:[#allocation2 + $0x78] sm:$0xff] %vm368_vm0, %v2507_v7  ;;  %v3408_v11 = vld [vmem:[#allocation2] sm:$0xff] }
 0x15b   : > { %401 = vst.msk [vmem:[#allocation4] sm:$0xff] %vm368_vm0, %v2507_v7  ;;  %402 = vst.msk [vmem:[#allocation4 + $0x8] sm:$0xff] %vm368_vm0, %v2507_v7 }
 0x15c   : > { %403 = vst.msk [vmem:[#allocation4 + $0x10] sm:$0xff] %vm368_vm0, %v2507_v7  ;;  %404 = vst.msk [vmem:[#allocation4 + $0x18] sm:$0xff] %vm368_vm0, %v2507_v7  ;;  %1497 = vmax.xlane.f32.xlu0 %v3309_v39 }
 0x15d   : > { %405 = vst.msk [vmem:[#allocation4 + $0x20] sm:$0xff] %vm368_vm0, %v2507_v7  ;;  %406 = vst.msk [vmem:[#allocation4 + $0x28] sm:$0xff] %vm368_vm0, %v2507_v7 }
 0x15e   : > { %407 = vst.msk [vmem:[#allocation4 + $0x30] sm:$0xff] %vm368_vm0, %v2507_v7  ;;  %408 = vst.msk [vmem:[#allocation4 + $0x38] sm:$0xff] %vm368_vm0, %v2507_v7  ;;  %v3410_v57 = vld [vmem:[#allocation2 + $0x40] sm:$0xff] }
 0x15f   : > { %409 = vst.msk [vmem:[#allocation4 + $0x40] sm:$0xff] %vm368_vm0, %v2507_v7  ;;  %410 = vst.msk [vmem:[#allocation4 + $0x48] sm:$0xff] %vm368_vm0, %v2507_v7 }
 0x160   : > { %412 = vst.msk [vmem:[#allocation4 + $0x58] sm:$0xff] %vm368_vm0, %v2507_v7  ;;  %413 = vst.msk [vmem:[#allocation4 + $0x60] sm:$0xff] %vm368_vm0, %v2507_v7  ;;  %1164 = vmax.xlane.f32.xlu0 %v3326_v59 }
 0x161   : > { %414 = vst.msk [vmem:[#allocation4 + $0x68] sm:$0xff] %vm368_vm0, %v2507_v7  ;;  %415 = vst.msk [vmem:[#allocation4 + $0x70] sm:$0xff] %vm368_vm0, %v2507_v7 }
 0x162   : > { %416 = vst.msk [vmem:[#allocation4 + $0x78] sm:$0xff] %vm368_vm0, %v2507_v7  ;;  %vm870_vm9 = vmxor %vm5035_vm6, %vm2506_vm3 }
 0x163   : > { %v3287_v14 = vsel %vm870_vm9, %v1128_v53, -inf  ;;  %vm878_vm14 = vmxor %vm5037_vm7, %vm2506_vm3  ;;  %5045 = vst [vmem:[#allocation14_spill] sm:$0xff] %v3408_v11 }
 0x164   : > { %1162 = vmax.xlane.f32.xlu1 %v3287_v14  ;;  %v3304_v35 = vsel %vm878_vm14, %v1136_v34, -inf  ;;  %vm1445_vm13 = vmxor %vm5039_vm10, %vm2506_vm3  ;;  %v5042_v34 = vld [vmem:[#allocation26_spill] sm:$0xff]  ;;  %5046 = vst [vmem:[#allocation8_spill] sm:$0xff] %v3410_v57 }
 0x165   : > { %v3324_v7 = vsel %vm1445_vm13, %v1702_v61, -inf  ;;  %vm1453_vm4 = vmxor %vm1437_vm1, %vm2506_vm3  ;;  %vm856_vm1 = vcmp.eq.s32.totalorder %v5041_v60, %v2675_v48  ;;  %v5044_v61 = vld [vmem:[#allocation28_spill] sm:$0xff]  ;;  %v754_v48 = vlaneseq }
 0x166   : > { %vm879_vm15 = vmxor %vm863_vm5, %vm2506_vm3  ;;  %v3340_v53 = vsel %vm1453_vm4, %v1710_v58, -inf  ;;  %v3358_v37 = vsel %vm856_vm1, %v787_v10, -inf }
 0x167   : > { %v3342_v29 = vsel %vm879_vm15, %v1137_v8, -inf  ;;  %vm1446_vm2 = vmxor %vm1430_vm11, %vm2506_vm3  ;;  %v755_v17 = vand.u32 127, %v754_v48  ;;  %v5051_v48 = vld [vmem:[#allocation10_spill] sm:$0xff] }
 0x168   : > { %1178 = vmax.xlane.f32.xlu1 %v3304_v35  ;;  %1180 = vmax.xlane.f32.xlu0 %v3342_v29  ;;  %v3353_v38 = vsel %vm1446_vm2, %v1703_v31, -inf  ;;  %vm1454_vm5 = vmxor %vm1438_vm8, %vm2506_vm3  ;;  %v5049_v31 = vld [vmem:[#allocation11_spill] sm:$0xff] }
 0x169   : > { %v3366_v44 = vsel %vm1454_vm5, %v1711_v12, -inf  ;;  %vm872_vm6 = vmxor %vm856_vm1, %vm2506_vm3  ;;  %v3406_v54 = vcvt.s32.f32 %v755_v17 }
 0x16a   : > { %v3378_v45 = vsel %vm872_vm6, %v1130_v26, -inf  ;;  %v3433_v26 = vld [vmem:[#allocation2 + $0x48] sm:$0xff] }
 0x16b   : > { %5050 = vst [vmem:[#allocation25_spill] sm:$0xff] %v3433_v26 }
 0x16c   : > { %1736 = vmax.xlane.f32.xlu1 %v3324_v7  ;;  %1738 = vmax.xlane.f32.xlu0 %v3353_v38 }
 0x170   : > { %1752 = vmax.xlane.f32.xlu1 %v3340_v53  ;;  %1754 = vmax.xlane.f32.xlu0 %v3366_v44 }
 0x174   : > { %908 = vmax.xlane.f32.xlu1 %v3358_v37  ;;  %910 = vmax.xlane.f32.xlu0 %v5044_v61 }
 0x178   : > { %924 = vmax.xlane.f32.xlu1 %v5042_v34  ;;  %926 = vmax.xlane.f32.xlu0 %v3090_v30 }
 0x17c   : > { %1483 = vmax.xlane.f32.xlu1 %v5043_v20  ;;  %1485 = vmax.xlane.f32.xlu0 %v3100_v62 }
 0x180   : > { %1499 = vmax.xlane.f32.xlu1 %v3085_v19  ;;  %1501 = vmax.xlane.f32.xlu0 %v3111_v42 }
 0x184   : > { %1166 = vmax.xlane.f32.xlu1 %v3378_v45  ;;  %1168 = vmax.xlane.f32.xlu0 %v3120_v0 }
 0x188   : > { %1182 = vmax.xlane.f32.xlu1 %v3106_v33  ;;  %1184 = vmax.xlane.f32.xlu0 %v3131_v49 }
 0x18c   : > { %1740 = vmax.xlane.f32.xlu1 %v3116_v18  ;;  %1742 = vmax.xlane.f32.xlu0 %v3135_v51 }
 0x190   : > { %1756 = vmax.xlane.f32.xlu1 %v3127_v46  ;;  %1758 = vmax.xlane.f32.xlu0 %v3144_v13 }
 0x194   : > { %912 = vmax.xlane.f32.xlu1 %v3140_v16  ;;  %914 = vmax.xlane.f32.xlu0 %v3168_v41 }
 0x198   : > { %928 = vmax.xlane.f32.xlu1 %v3149_v1  ;;  %930 = vmax.xlane.f32.xlu0 %v3185_v52 }
 0x19c   : > { %1487 = vmax.xlane.f32.xlu1 %v3163_v36  ;;  %1489 = vmax.xlane.f32.xlu0 %v3158_v5 }
 0x1a0   : > { %1503 = vmax.xlane.f32.xlu1 %v3180_v50  ;;  %1505 = vmax.xlane.f32.xlu0 %v3173_v9 }
 0x1a4   : > { %1170 = vmax.xlane.f32.xlu1 %v3189_v28  ;;  %1172 = vmax.xlane.f32.xlu0 %v3207_v6 }
 0x1a8   : > { %1186 = vmax.xlane.f32.xlu1 %v3193_v22  ;;  %1188 = vmax.xlane.f32.xlu0 %v3215_v43 }
 0x1ac   : > { %1744 = vmax.xlane.f32.xlu1 %v3203_v4  ;;  %1746 = vmax.xlane.f32.xlu0 %v3221_v55  ;;  %v3523_v55 = vld [vmem:[#allocation4] sm:$0xff] }
 0x1b0   : > { %1760 = vmax.xlane.f32.xlu1 %v3211_v47  ;;  %1762 = vmax.xlane.f32.xlu0 %v3225_v21  ;;  %v3463_v21 = vld [vmem:[#allocation2 + $0x8] sm:$0xff] }
 0x1b1   : > { %5058 = vst [vmem:[#allocation11_spill] sm:$0xff] %v3463_v21 }
 0x1b5   : > { %v3412_v58 = vpop.xlane.xlu1 %916  ;;  %v3414_v8 = vpop.xlane.xlu0 %900 }
 0x1b6   : > { %5047 = vst [vmem:[#allocation6_spill] sm:$0xff] %v3412_v58  ;;  %5048 = vst [vmem:[#allocation22_spill] sm:$0xff] %v3414_v8  ;;  %vm932_vm3 = vcmp.ge.f32.partialorder %v5049_v31, %v3414_v8  ;;  %vm1029_vm9 = vcmp.gt.f32.partialorder %v3414_v8, %v3408_v11  ;;  %vm1037_vm11 = vcmp.gt.f32.partialorder %v3412_v58, %v3410_v57 }
 0x1b7   : > { %v948_v10 = vsel %vm932_vm3, %v3406_v54, 1e+30  ;;  %v1045_v60 = vsel %vm1029_vm9, %v3414_v8, %v3408_v11  ;;  %v1053_v12 = vsel %vm1037_vm11, %v3412_v58, %v3410_v57  ;;  %vm940_vm7 = vcmp.ge.f32.partialorder %v5051_v48, %v3412_v58 }
 0x1b8   : > { %964 = vmin.xlane.f32.xlu1 %v948_v10  ;;  %1062 = vst.msk [vmem:[#allocation2] sm:$0xff] %vm368_vm0, %v1045_v60  ;;  %1070 = vst.msk [vmem:[#allocation2 + $0x40] sm:$0xff] %vm368_vm0, %v1053_v12  ;;  %v956_v11 = vsel %vm940_vm7, %v3406_v54, 1e+30  ;;  %v5054_v60 = vld [vmem:[#allocation13_spill] sm:$0xff] }
 0x1b9   : > { %v3439_v17 = vpop.xlane.xlu0 %918  ;;  %v3441_v31 = vpop.xlane.xlu1 %1475 }
 0x1ba   : > { %5052 = vst [vmem:[#allocation17_spill] sm:$0xff] %v3439_v17  ;;  %5053 = vst [vmem:[#allocation7_spill] sm:$0xff] %v3441_v31  ;;  %vm1038_vm14 = vcmp.gt.f32.partialorder %v3439_v17, %v3433_v26  ;;  %vm1507_vm8 = vcmp.ge.f32.partialorder %v5054_v60, %v3441_v31 }
 0x1bb   : > { %v1054_v10 = vsel %vm1038_vm14, %v3439_v17, %v3433_v26  ;;  %v1523_v57 = vsel %vm1507_vm8, %v3406_v54, 1e+30  ;;  %v2508_v26 = vmov 0.0  }
 0x1bc   : > { %980 = vmin.xlane.f32.xlu1 %v956_v11  ;;  %1071 = vst.msk [vmem:[#allocation2 + $0x48] sm:$0xff] %vm368_vm0, %v1054_v10  ;;  %v5059_v11 = vld [vmem:[#allocation15_spill] sm:$0xff]  ;;  %385 = vst.msk [vmem:[#allocation3] sm:$0xff] %vm368_vm0, %v2508_v26 }
 0x1bd   : > { %v3454_v12 = vpop.xlane.xlu1 %1491  ;;  %v3456_v48 = vpop.xlane.xlu0 %1477  ;;  %386 = vst.msk [vmem:[#allocation3 + $0x8] sm:$0xff] %vm368_vm0, %v2508_v26  ;;  %387 = vst.msk [vmem:[#allocation3 + $0x10] sm:$0xff] %vm368_vm0, %v2508_v26 }
 0x1be   : > { %5055 = vst [vmem:[#allocation26_spill] sm:$0xff] %v3454_v12  ;;  %vm1515_vm10 = vcmp.ge.f32.partialorder %v5059_v11, %v3454_v12  ;;  %388 = vst.msk [vmem:[#allocation3 + $0x18] sm:$0xff] %vm368_vm0, %v2508_v26 }
 0x1bf   : > { %v3459_v58 = vld [vmem:[#allocation2] sm:$0xff]  ;;  %389 = vst.msk [vmem:[#allocation3 + $0x20] sm:$0xff] %vm368_vm0, %v2508_v26  ;;  %390 = vst.msk [vmem:[#allocation3 + $0x28] sm:$0xff] %vm368_vm0, %v2508_v26 }
 0x1c0   : > { %5056 = vst [vmem:[#allocation27_spill] sm:$0xff] %v3459_v58  ;;  %v3461_v8 = vld [vmem:[#allocation2 + $0x40] sm:$0xff]  ;;  %1539 = vmin.xlane.f32.xlu1 %v1523_v57  ;;  %vm1604_vm13 = vcmp.gt.f32.partialorder %v3441_v31, %v3459_v58  ;;  %391 = vst.msk [vmem:[#allocation3 + $0x30] sm:$0xff] %vm368_vm0, %v2508_v26 }
 0x1c1   : > { %5057 = vst [vmem:[#allocation28_spill] sm:$0xff] %v3461_v8  ;;  %vm1612_vm12 = vcmp.gt.f32.partialorder %v3454_v12, %v3461_v8  ;;  %v3471_v10 = vpop.xlane.xlu1 %902  ;;  %v3473_v60 = vpop.xlane.xlu0 %1493  ;;  %v1620_v57 = vsel %vm1604_vm13, %v3441_v31, %v3459_v58  ;;  %392 = vst.msk [vmem:[#allocation3 + $0x38] sm:$0xff] %vm368_vm0, %v2508_v26  ;;  %v5062_v31 = vld [vmem:[#allocation18_spill] sm:$0xff] }
 0x1c2   : > { %5060 = vst [vmem:[#allocation10_spill] sm:$0xff] %v3471_v10  ;;  %5061 = vst [vmem:[#allocation13_spill] sm:$0xff] %v3473_v60  ;;  %v1628_v58 = vsel %vm1612_vm12, %v3454_v12, %v3461_v8  ;;  %vm933_vm4 = vcmp.ge.f32.partialorder %v5062_v31, %v3471_v10  ;;  %vm1030_vm15 = vcmp.gt.f32.partialorder %v3471_v10, %v3463_v21  ;;  %v5066_v8 = vld [vmem:[#allocation12_spill] sm:$0xff] }
 0x1c3   : > { %393 = vst.msk [vmem:[#allocation3 + $0x40] sm:$0xff] %vm368_vm0, %v2508_v26  ;;  %394 = vst.msk [vmem:[#allocation3 + $0x48] sm:$0xff] %vm368_vm0, %v2508_v26  ;;  %v949_v43 = vsel %vm933_vm4, %v3406_v54, 1e+30  ;;  %v1046_v31 = vsel %vm1030_vm15, %v3471_v10, %v3463_v21  ;;  %vm941_vm2 = vcmp.ge.f32.partialorder %v5066_v8, %v3439_v17  ;;  %v5072_v17 = vld [vmem:[#allocation16_spill] sm:$0xff]  ;;  %v5074_v10 = vld [vmem:[#allocation23_spill] sm:$0xff] }
 0x1c4   : > { %395 = vst.msk [vmem:[#allocation3 + $0x50] sm:$0xff] %vm368_vm0, %v2508_v26  ;;  %396 = vst.msk [vmem:[#allocation3 + $0x58] sm:$0xff] %vm368_vm0, %v2508_v26  ;;  %966 = vmin.xlane.f32.xlu0 %v949_v43  ;;  %v5069_v43 = vld [vmem:[#allocation20_spill] sm:$0xff]  ;;  %vm1508_vm7 = vcmp.ge.f32.partialorder %v5072_v17, %v3456_v48 }
 0x1c5   : > { %397 = vst.msk [vmem:[#allocation3 + $0x60] sm:$0xff] %vm368_vm0, %v2508_v26  ;;  %398 = vst.msk [vmem:[#allocation3 + $0x68] sm:$0xff] %vm368_vm0, %v2508_v26  ;;  %v3544_v11 = vpop.xlane.xlu1 %1158  ;;  %v3546_v12 = vpop.xlane.xlu0 %1160  ;;  %v1524_v17 = vsel %vm1508_vm7, %v3406_v54, 1e+30 }
 0x1c6   : > { %399 = vst.msk [vmem:[#allocation3 + $0x70] sm:$0xff] %vm368_vm0, %v2508_v26  ;;  %400 = vst.msk [vmem:[#allocation3 + $0x78] sm:$0xff] %vm368_vm0, %v2508_v26  ;;  %vm1190_vm5 = vcmp.ge.f32.partialorder %v5069_v43, %v3544_v11  ;;  %vm1286_vm6 = vcmp.gt.f32.partialorder %v3544_v11, %v3523_v55  ;;  %v3574_v43 = vld [vmem:[#allocation4 + $0x48] sm:$0xff] }
 0x1c7   : > { %417 = vst.msk [vmem:[#allocation5] sm:$0xff] %vm368_vm0, %v2508_v26  ;;  %418 = vst.msk [vmem:[#allocation5 + $0x8] sm:$0xff] %vm368_vm0, %v2508_v26  ;;  %v1206_v8 = vsel %vm1190_vm5, %v3406_v54, 1e+30 }
 0x1c8   : > { %419 = vst.msk [vmem:[#allocation5 + $0x10] sm:$0xff] %vm368_vm0, %v2508_v26  ;;  %420 = vst.msk [vmem:[#allocation5 + $0x18] sm:$0xff] %vm368_vm0, %v2508_v26 }
 0x1c9   : > { %421 = vst.msk [vmem:[#allocation5 + $0x20] sm:$0xff] %vm368_vm0, %v2508_v26  ;;  %422 = vst.msk [vmem:[#allocation5 + $0x28] sm:$0xff] %vm368_vm0, %v2508_v26 }
 0x1ca   : > { %423 = vst.msk [vmem:[#allocation5 + $0x30] sm:$0xff] %vm368_vm0, %v2508_v26  ;;  %424 = vst.msk [vmem:[#allocation5 + $0x38] sm:$0xff] %vm368_vm0, %v2508_v26 }
 0x1cb   : > { %425 = vst.msk [vmem:[#allocation5 + $0x40] sm:$0xff] %vm368_vm0, %v2508_v26  ;;  %426 = vst.msk [vmem:[#allocation5 + $0x48] sm:$0xff] %vm368_vm0, %v2508_v26 }
 0x1cc   : > { %427 = vst.msk [vmem:[#allocation5 + $0x50] sm:$0xff] %vm368_vm0, %v2508_v26  ;;  %428 = vst.msk [vmem:[#allocation5 + $0x58] sm:$0xff] %vm368_vm0, %v2508_v26 }
 0x1cd   : > { %429 = vst.msk [vmem:[#allocation5 + $0x60] sm:$0xff] %vm368_vm0, %v2508_v26  ;;  %430 = vst.msk [vmem:[#allocation5 + $0x68] sm:$0xff] %vm368_vm0, %v2508_v26 }
 0x1ce   : > { %431 = vst.msk [vmem:[#allocation5 + $0x70] sm:$0xff] %vm368_vm0, %v2508_v26  ;;  %432 = vst.msk [vmem:[#allocation5 + $0x78] sm:$0xff] %vm368_vm0, %v2508_v26  ;;  %v1531_v26 = vsel %vm1515_vm10, %v3406_v54, 1e+30 }
 0x1cf   : > { %1636 = vst.msk [vmem:[#allocation2] sm:$0xff] %vm368_vm0, %v1620_v57  ;;  %1644 = vst.msk [vmem:[#allocation2 + $0x40] sm:$0xff] %vm368_vm0, %v1628_v58  ;;  %v3535_v57 = vld [vmem:[#allocation2 + $0x48] sm:$0xff]  ;;  %1555 = vmin.xlane.f32.xlu1 %v1531_v26  ;;  %v957_v26 = vsel %vm941_vm2, %v3406_v54, 1e+30 }
 0x1d0   : > { %5063 = vst [vmem:[#allocation15_spill] sm:$0xff] %v3523_v55  ;;  %5064 = vst [vmem:[#allocation18_spill] sm:$0xff] %v3535_v57  ;;  %v3537_v58 = vld [vmem:[#allocation4 + $0x8] sm:$0xff]  ;;  %vm4829_vm1 = vcmp.gt.f32.partialorder %v3473_v60, %v3535_v57  ;;  %982 = vmin.xlane.f32.xlu0 %v957_v26 }
 0x1d1   : > { %5065 = vst [vmem:[#allocation31_spill] sm:$0xff] %v3537_v58  ;;  %1063 = vst.msk [vmem:[#allocation2 + $0x8] sm:$0xff] %vm368_vm0, %v1046_v31  ;;  %v1629_v21 = vsel %vm4829_vm1, %v3473_v60, %v3535_v57  ;;  %vm4822_vm3 = vcmp.gt.f32.partialorder %v3546_v12, %v3537_v58  ;;  %v1302_v31 = vsel %vm1286_vm6, %v3544_v11, %v3523_v55  ;;  %v3567_v57 = vld [vmem:[#allocation4 + $0x40] sm:$0xff]  ;;  %v3580_v55 = vpop.xlane.xlu1 %1174 }
 0x1d2   : > { %5067 = vst [vmem:[#allocation12_spill] sm:$0xff] %v3544_v11  ;;  %5068 = vst [vmem:[#allocation32_spill] sm:$0xff] %v3546_v12  ;;  %v3582_v11 = vpop.xlane.xlu0 %1176  ;;  %vm1198_vm8 = vcmp.ge.f32.partialorder %v5074_v10, %v3580_v55  ;;  %vm1294_vm10 = vcmp.gt.f32.partialorder %v3580_v55, %v3567_v57 }
 0x1d3   : > { %1645 = vst.msk [vmem:[#allocation2 + $0x48] sm:$0xff] %vm368_vm0, %v1629_v21  ;;  %5070 = vst [vmem:[#allocation20_spill] sm:$0xff] %v3567_v57  ;;  %v1303_v21 = vsel %vm4822_vm3, %v3546_v12, %v3537_v58  ;;  %1222 = vmin.xlane.f32.xlu1 %v1206_v8  ;;  %vm4821_vm4 = vcmp.gt.f32.partialorder %v3582_v11, %v3574_v43  ;;  %v1214_v8 = vsel %vm1198_vm8, %v3406_v54, 1e+30 }
 0x1d4   : > { %5071 = vst [vmem:[#allocation33_spill] sm:$0xff] %v3574_v43  ;;  %1318 = vst.msk [vmem:[#allocation4] sm:$0xff] %vm368_vm0, %v1302_v31  ;;  %v1310_v26 = vsel %vm1294_vm10, %v3580_v55, %v3567_v57  ;;  %v1311_v10 = vsel %vm4821_vm4, %v3582_v11, %v3574_v43  ;;  %1541 = vmin.xlane.f32.xlu0 %v1524_v17  ;;  %v5081_v43 = vld [vmem:[#allocation21_spill] sm:$0xff] }
 0x1d5   : > { %1319 = vst.msk [vmem:[#allocation4 + $0x8] sm:$0xff] %vm368_vm0, %v1303_v21  ;;  %5073 = vst [vmem:[#allocation16_spill] sm:$0xff] %v3582_v11  ;;  %v5076_v21 = vld [vmem:[#allocation19_spill] sm:$0xff]  ;;  %v3610_v58 = vpop.xlane.xlu1 %1732  ;;  %vm1191_vm8 = vcmp.ge.f32.partialorder %v5081_v43, %v3546_v12  ;;  %v3654_v12 = vld [vmem:[#allocation2 + $0x50] sm:$0xff] }
 0x1d6   : > { %vm1516_vm2 = vcmp.ge.f32.partialorder %v5076_v21, %v3473_v60  ;;  %1326 = vst.msk [vmem:[#allocation4 + $0x40] sm:$0xff] %vm368_vm0, %v1310_v26  ;;  %1327 = vst.msk [vmem:[#allocation4 + $0x48] sm:$0xff] %vm368_vm0, %v1311_v10  ;;  %v3612_v57 = vpop.xlane.xlu0 %1734  ;;  %vm1764_vm7 = vcmp.ge.f32.partialorder %v3013_v23, %v3610_v58 }
 0x1d7   : > { %1238 = vmin.xlane.f32.xlu1 %v1214_v8  ;;  %5077 = vst [vmem:[#allocation19_spill] sm:$0xff] %v3610_v58  ;;  %5078 = vst [vmem:[#allocation34_spill] sm:$0xff] %v3612_v57  ;;  %v1780_v17 = vsel %vm1764_vm7, %v3406_v54, 1e+30  ;;  %v1532_v26 = vsel %vm1516_vm2, %v3406_v54, 1e+30 }
 0x1d8   : > { %v3597_v31 = vld [vmem:[#allocation2 + $0x8] sm:$0xff]  ;;  %1557 = vmin.xlane.f32.xlu0 %v1532_v26  ;;  %v3652_v26 = vld [vmem:[#allocation2 + $0x10] sm:$0xff] }
 0x1d9   : > { %5075 = vst [vmem:[#allocation23_spill] sm:$0xff] %v3597_v31  ;;  %vm1605_vm5 = vcmp.gt.f32.partialorder %v3456_v48, %v3597_v31  ;;  %v3634_v23 = vpop.xlane.xlu1 %1748 }
 0x1da   : > { %v1621_v8 = vsel %vm1605_vm5, %v3456_v48, %v3597_v31  ;;  %vm1772_vm2 = vcmp.ge.f32.partialorder %v3028_v56, %v3634_v23  ;;  %v5084_v56 = vld [vmem:[#allocation24_spill] sm:$0xff]  ;;  %v1335_v48 = vld [vmem:[#allocation5 + $0x8] sm:$0xff] }
 0x1db   : > { %1637 = vst.msk [vmem:[#allocation2 + $0x8] sm:$0xff] %vm368_vm0, %v1621_v8  ;;  %v3624_v10 = vld [vmem:[#allocation4] sm:$0xff]  ;;  %1796 = vmin.xlane.f32.xlu1 %v1780_v17  ;;  %v3636_v8 = vpop.xlane.xlu0 %1750  ;;  %v1788_v60 = vsel %vm1772_vm2, %v3406_v54, 1e+30  ;;  %vm1199_vm7 = vcmp.ge.f32.partialorder %v5084_v56, %v3582_v11 }
 0x1dc   : > { %5079 = vst [vmem:[#allocation35_spill] sm:$0xff] %v3624_v10  ;;  %v3626_v21 = vld [vmem:[#allocation4 + $0x8] sm:$0xff]  ;;  %vm4830_vm4 = vcmp.gt.f32.partialorder %v3610_v58, %v3624_v10  ;;  %5082 = vst [vmem:[#allocation21_spill] sm:$0xff] %v3636_v8 }
 0x1dd   : > { %5080 = vst [vmem:[#allocation36_spill] sm:$0xff] %v3626_v21  ;;  %vm4828_vm3 = vcmp.gt.f32.partialorder %v3612_v57, %v3626_v21  ;;  %v1876_v17 = vsel %vm4830_vm4, %v3610_v58, %v3624_v10  ;;  %v1207_v10 = vsel %vm1191_vm8, %v3406_v54, 1e+30  ;;  %v3658_v58 = vld [vmem:[#allocation4 + $0x40] sm:$0xff]  ;;  %v3660_v31 = vld [vmem:[#allocation4 + $0x48] sm:$0xff] }
 0x1de   : > { %v1877_v43 = vsel %vm4828_vm3, %v3612_v57, %v3626_v21  ;;  %1892 = vst.msk [vmem:[#allocation4] sm:$0xff] %vm368_vm0, %v1876_v17  ;;  %5083 = vst [vmem:[#allocation37_spill] sm:$0xff] %v3660_v31  ;;  %1224 = vmin.xlane.f32.xlu0 %v1207_v10  ;;  %vm4865_vm3 = vcmp.gt.f32.partialorder %v3634_v23, %v3658_v58  ;;  %vm4834_vm1 = vcmp.gt.f32.partialorder %v3636_v8, %v3660_v31  ;;  %v3668_v17 = vpop.xlane.xlu1 %920 }
 0x1df   : > { %1893 = vst.msk [vmem:[#allocation4 + $0x8] sm:$0xff] %vm368_vm0, %v1877_v43  ;;  %1812 = vmin.xlane.f32.xlu1 %v1788_v60  ;;  %v3670_v43 = vpop.xlane.xlu0 %904  ;;  %v1884_v60 = vsel %vm4865_vm3, %v3634_v23, %v3658_v58  ;;  %v1885_v10 = vsel %vm4834_vm1, %v3636_v8, %v3660_v31  ;;  %vm4835_vm4 = vcmp.gt.f32.partialorder %v3668_v17, %v3654_v12  ;;  %v1215_v21 = vsel %vm1199_vm7, %v3406_v54, 1e+30 }
 0x1e0   : > { %vm934_vm8 = vcmp.ge.f32.partialorder %v3045_v27, %v3670_v43  ;;  %1900 = vst.msk [vmem:[#allocation4 + $0x40] sm:$0xff] %vm368_vm0, %v1884_v60  ;;  %vm4836_vm2 = vcmp.gt.f32.partialorder %v3670_v43, %v3652_v26  ;;  %1901 = vst.msk [vmem:[#allocation4 + $0x48] sm:$0xff] %vm368_vm0, %v1885_v10  ;;  %v1055_v60 = vsel %vm4835_vm4, %v3668_v17, %v3654_v12  ;;  %v3702_v10 = vld [vmem:[#allocation2 + $0x18] sm:$0xff] }
 0x1e1   : > { %v950_v56 = vsel %vm934_vm8, %v3406_v54, 1e+30  ;;  %v1047_v27 = vsel %vm4836_vm2, %v3670_v43, %v3652_v26  ;;  %5085 = vst [vmem:[#allocation24_spill] sm:$0xff] %v3702_v10  ;;  %vm942_vm8 = vcmp.ge.f32.partialorder %v3036_v15, %v3668_v17  ;;  %vm1765_vm7 = vcmp.ge.f32.partialorder %v3017_v25, %v3612_v57  ;;  %1072 = vst.msk [vmem:[#allocation2 + $0x50] sm:$0xff] %vm368_vm0, %v1055_v60  ;;  %v3723_v15 = vld [vmem:[#allocation2 + $0x58] sm:$0xff] }
 0x1e2   : > { %1240 = vmin.xlane.f32.xlu0 %v1215_v21  ;;  %1064 = vst.msk [vmem:[#allocation2 + $0x10] sm:$0xff] %vm368_vm0, %v1047_v27  ;;  %v3710_v31 = vpop.xlane.xlu1 %1479  ;;  %v1781_v21 = vsel %vm1765_vm7, %v3406_v54, 1e+30  ;;  %5086 = vst [vmem:[#allocation38_spill] sm:$0xff] %v3723_v15  ;;  %vm1773_vm2 = vcmp.ge.f32.partialorder %v3030_v40, %v3636_v8 }
 0x1e3   : > { %968 = vmin.xlane.f32.xlu1 %v950_v56  ;;  %v3712_v11 = vpop.xlane.xlu0 %906  ;;  %v958_v56 = vsel %vm942_vm8, %v3406_v54, 1e+30  ;;  %vm1509_vm4 = vcmp.ge.f32.partialorder %v3057_v32, %v3710_v31 }
 0x1e4   : > { %vm4838_vm1 = vcmp.gt.f32.partialorder %v3712_v11, %v3702_v10 }
 0x1e5   : > { %v1048_v25 = vsel %vm4838_vm1, %v3712_v11, %v3702_v10  ;;  %v1525_v10 = vsel %vm1509_vm4, %v3406_v54, 1e+30  ;;  %vm935_vm1 = vcmp.ge.f32.partialorder %v3199_v2, %v3712_v11 }
 0x1e6   : > { %1798 = vmin.xlane.f32.xlu0 %v1781_v21  ;;  %1065 = vst.msk [vmem:[#allocation2 + $0x18] sm:$0xff] %vm368_vm0, %v1048_v25  ;;  %v3730_v27 = vpop.xlane.xlu1 %1495  ;;  %v3751_v25 = vld [vmem:[#allocation4 + $0x10] sm:$0xff] }
 0x1e7   : > { %984 = vmin.xlane.f32.xlu1 %v958_v56  ;;  %v3732_v60 = vpop.xlane.xlu0 %922  ;;  %v1789_v56 = vsel %vm1773_vm2, %v3406_v54, 1e+30  ;;  %vm1517_vm7 = vcmp.ge.f32.partialorder %v3268_v63, %v3730_v27  ;;  %5088 = vst [vmem:[#allocation40_spill] sm:$0xff] %v3751_v25 }
 0x1e8   : > { %vm4841_vm8 = vcmp.gt.f32.partialorder %v3732_v60, %v3723_v15  ;;  %v3749_v21 = vld [vmem:[#allocation2 + $0x50] sm:$0xff] }
 0x1e9   : > { %v1056_v32 = vsel %vm4841_vm8, %v3732_v60, %v3723_v15  ;;  %v3747_v40 = vld [vmem:[#allocation2 + $0x10] sm:$0xff]  ;;  %5087 = vst [vmem:[#allocation39_spill] sm:$0xff] %v3749_v21  ;;  %vm4845_vm2 = vcmp.gt.f32.partialorder %v3730_v27, %v3749_v21  ;;  %vm943_vm8 = vcmp.ge.f32.partialorder %v3274_v3, %v3732_v60 }
 0x1ea   : > { %1814 = vmin.xlane.f32.xlu0 %v1789_v56  ;;  %1073 = vst.msk [vmem:[#allocation2 + $0x58] sm:$0xff] %vm368_vm0, %v1056_v32  ;;  %vm4843_vm4 = vcmp.gt.f32.partialorder %v3710_v31, %v3747_v40  ;;  %v1630_v63 = vsel %vm4845_vm2, %v3730_v27, %v3749_v21  ;;  %v951_v56 = vsel %vm935_vm1, %v3406_v54, 1e+30  ;;  %v3774_v32 = vld [vmem:[#allocation4 + $0x50] sm:$0xff] }
 0x1eb   : > { %1543 = vmin.xlane.f32.xlu1 %v1525_v10  ;;  %v3756_v57 = vpop.xlane.xlu0 %1481  ;;  %v1622_v2 = vsel %vm4843_vm4, %v3710_v31, %v3747_v40  ;;  %v1533_v10 = vsel %vm1517_vm7, %v3406_v54, 1e+30  ;;  %1646 = vst.msk [vmem:[#allocation2 + $0x50] sm:$0xff] %vm368_vm0, %v1630_v63 }
 0x1ec   : > { %5089 = vst [vmem:[#allocation41_spill] sm:$0xff] %v3756_v57  ;;  %1638 = vst.msk [vmem:[#allocation2 + $0x10] sm:$0xff] %vm368_vm0, %v1622_v2 }
 0x1ed   : > { %v3780_v15 = vld [vmem:[#allocation2 + $0x18] sm:$0xff] }
 0x1ee   : > { %5090 = vst [vmem:[#allocation42_spill] sm:$0xff] %v3780_v15  ;;  %970 = vmin.xlane.f32.xlu0 %v951_v56  ;;  %vm4848_vm1 = vcmp.gt.f32.partialorder %v3756_v57, %v3780_v15 }
 0x1ef   : > { %1559 = vmin.xlane.f32.xlu1 %v1533_v10  ;;  %v3795_v21 = vpop.xlane.xlu0 %1497  ;;  %v1623_v10 = vsel %vm4848_vm1, %v3756_v57, %v3780_v15  ;;  %v959_v15 = vsel %vm943_vm8, %v3406_v54, 1e+30 }
 0x1f0   : > { %5091 = vst [vmem:[#allocation43_spill] sm:$0xff] %v3795_v21  ;;  %1639 = vst.msk [vmem:[#allocation2 + $0x18] sm:$0xff] %vm368_vm0, %v1623_v10 }
 0x1f1   : > { %v3754_v8 = vpop.xlane.xlu1 %1162 }
 0x1f2   : > { %vm4851_vm4 = vcmp.gt.f32.partialorder %v3754_v8, %v3751_v25  ;;  %vm1192_vm7 = vcmp.ge.f32.partialorder %v3287_v14, %v3754_v8  ;;  %986 = vmin.xlane.f32.xlu0 %v959_v15  ;;  %v3841_v15 = vld [vmem:[#allocation4 + $0x58] sm:$0xff] }
 0x1f3   : > { %v1304_v2 = vsel %vm4851_vm4, %v3754_v8, %v3751_v25  ;;  %v1208_v56 = vsel %vm1192_vm7, %v3406_v54, 1e+30  ;;  %v3816_v25 = vld [vmem:[#allocation2 + $0x58] sm:$0xff]  ;;  %v3829_v3 = vpop.xlane.xlu0 %1164  ;;  %5094 = vst [vmem:[#allocation46_spill] sm:$0xff] %v3841_v15  ;;  %vm1518_vm4 = vcmp.ge.f32.partialorder %v3309_v39, %v3795_v21 }
 0x1f4   : > { %1320 = vst.msk [vmem:[#allocation4 + $0x10] sm:$0xff] %vm368_vm0, %v1304_v2  ;;  %5092 = vst [vmem:[#allocation44_spill] sm:$0xff] %v3816_v25  ;;  %v3818_v2 = vld [vmem:[#allocation4 + $0x18] sm:$0xff]  ;;  %1226 = vmin.xlane.f32.xlu1 %v1208_v56  ;;  %vm4850_vm7 = vcmp.gt.f32.partialorder %v3795_v21, %v3816_v25 }
 0x1f5   : > { %v3793_v63 = vpop.xlane.xlu1 %1178  ;;  %5093 = vst [vmem:[#allocation45_spill] sm:$0xff] %v3818_v2  ;;  %vm4855_vm8 = vcmp.gt.f32.partialorder %v3829_v3, %v3818_v2 }
 0x1f6   : > { %vm4849_vm2 = vcmp.gt.f32.partialorder %v3793_v63, %v3774_v32  ;;  %vm1200_vm1 = vcmp.ge.f32.partialorder %v3304_v35, %v3793_v63  ;;  %v1305_v56 = vsel %vm4855_vm8, %v3829_v3, %v3818_v2  ;;  %v3877_v2 = vld [vmem:[#allocation2 + $0x20] sm:$0xff] }
 0x1f7   : > { %v1312_v14 = vsel %vm4849_vm2, %v3793_v63, %v3774_v32  ;;  %vm1510_vm2 = vcmp.ge.f32.partialorder %v3292_v24, %v3756_v57  ;;  %v1216_v24 = vsel %vm1200_vm1, %v3406_v54, 1e+30  ;;  %1321 = vst.msk [vmem:[#allocation4 + $0x18] sm:$0xff] %vm368_vm0, %v1305_v56  ;;  %v3857_v57 = vpop.xlane.xlu0 %1180  ;;  %v1534_v56 = vsel %vm1518_vm4, %v3406_v54, 1e+30  ;;  %5096 = vst [vmem:[#allocation48_spill] sm:$0xff] %v3877_v2 }
 0x1f8   : > { %1328 = vst.msk [vmem:[#allocation4 + $0x50] sm:$0xff] %vm368_vm0, %v1312_v14  ;;  %v1631_v14 = vsel %vm4850_vm7, %v3795_v21, %v3816_v25  ;;  %v1526_v35 = vsel %vm1510_vm2, %v3406_v54, 1e+30  ;;  %1242 = vmin.xlane.f32.xlu1 %v1216_v24  ;;  %5095 = vst [vmem:[#allocation47_spill] sm:$0xff] %v3857_v57  ;;  %vm4857_vm1 = vcmp.gt.f32.partialorder %v3857_v57, %v3841_v15 }
 0x1f9   : > { %v3827_v10 = vpop.xlane.xlu1 %1736  ;;  %1647 = vst.msk [vmem:[#allocation2 + $0x58] sm:$0xff] %vm368_vm0, %v1631_v14  ;;  %1545 = vmin.xlane.f32.xlu0 %v1526_v35  ;;  %v1313_v24 = vsel %vm4857_vm1, %v3857_v57, %v3841_v15  ;;  %vm1193_vm1 = vcmp.ge.f32.partialorder %v3326_v59, %v3829_v3 }
 0x1fa   : > { %vm1766_vm7 = vcmp.ge.f32.partialorder %v3324_v7, %v3827_v10  ;;  %1329 = vst.msk [vmem:[#allocation4 + $0x58] sm:$0xff] %vm368_vm0, %v1313_v24  ;;  %v1209_v24 = vsel %vm1193_vm1, %v3406_v54, 1e+30 }
 0x1fb   : > { %v3852_v14 = vld [vmem:[#allocation4 + $0x10] sm:$0xff]  ;;  %v1782_v35 = vsel %vm1766_vm7, %v3406_v54, 1e+30 }
 0x1fc   : > { %vm4856_vm2 = vcmp.gt.f32.partialorder %v3827_v10, %v3852_v14  ;;  %1800 = vmin.xlane.f32.xlu1 %v1782_v35  ;;  %v3906_v35 = vld [vmem:[#allocation2 + $0x60] sm:$0xff] }
 0x1fd   : > { %v3855_v25 = vpop.xlane.xlu1 %1752  ;;  %v1878_v39 = vsel %vm4856_vm2, %v3827_v10, %v3852_v14  ;;  %1561 = vmin.xlane.f32.xlu0 %v1534_v56  ;;  %5097 = vst [vmem:[#allocation49_spill] sm:$0xff] %v3906_v35 }
 0x1fe   : > { %1894 = vst.msk [vmem:[#allocation4 + $0x10] sm:$0xff] %vm368_vm0, %v1878_v39  ;;  %vm1774_vm2 = vcmp.ge.f32.partialorder %v3340_v53, %v3855_v25  ;;  %v3892_v39 = vpop.xlane.xlu0 %1738  ;;  %v3908_v56 = vld [vmem:[#allocation4 + $0x18] sm:$0xff] }
 0x1ff   : > { %v3868_v7 = vld [vmem:[#allocation4 + $0x50] sm:$0xff]  ;;  %v1790_v53 = vsel %vm1774_vm2, %v3406_v54, 1e+30  ;;  %5098 = vst [vmem:[#allocation50_spill] sm:$0xff] %v3908_v56  ;;  %vm1767_vm3 = vcmp.ge.f32.partialorder %v3353_v38, %v3892_v39 }
 0x200   : > { %vm4860_vm8 = vcmp.gt.f32.partialorder %v3855_v25, %v3868_v7  ;;  %1816 = vmin.xlane.f32.xlu1 %v1790_v53 }
 0x201   : > { %v1886_v15 = vsel %vm4860_vm8, %v3855_v25, %v3868_v7  ;;  %v3894_v21 = vpop.xlane.xlu1 %908  ;;  %1228 = vmin.xlane.f32.xlu0 %v1209_v24  ;;  %vm1201_vm8 = vcmp.ge.f32.partialorder %v3342_v29, %v3857_v57  ;;  %v3938_v57 = vld [vmem:[#allocation2 + $0x28] sm:$0xff] }
 0x202   : > { %1902 = vst.msk [vmem:[#allocation4 + $0x50] sm:$0xff] %vm368_vm0, %v1886_v15  ;;  %vm4861_vm4 = vcmp.gt.f32.partialorder %v3894_v21, %v3877_v2  ;;  %vm936_vm7 = vcmp.ge.f32.partialorder %v3358_v37, %v3894_v21  ;;  %v3917_v15 = vpop.xlane.xlu0 %1754  ;;  %v3929_v37 = vld [vmem:[#allocation4 + $0x58] sm:$0xff]  ;;  %v1217_v24 = vsel %vm1201_vm8, %v3406_v54, 1e+30  ;;  %5101 = vst [vmem:[#allocation53_spill] sm:$0xff] %v3938_v57 }
 0x203   : > { %v1049_v59 = vsel %vm4861_vm4, %v3894_v21, %v3877_v2  ;;  %vm4864_vm4 = vcmp.gt.f32.partialorder %v3892_v39, %v3908_v56  ;;  %5099 = vst [vmem:[#allocation51_spill] sm:$0xff] %v3917_v15  ;;  %5100 = vst [vmem:[#allocation52_spill] sm:$0xff] %v3929_v37  ;;  %v952_v53 = vsel %vm936_vm7, %v3406_v54, 1e+30  ;;  %vm4868_vm1 = vcmp.gt.f32.partialorder %v3917_v15, %v3929_v37 }
 0x204   : > { %1066 = vst.msk [vmem:[#allocation2 + $0x20] sm:$0xff] %vm368_vm0, %v1049_v59  ;;  %v1879_v59 = vsel %vm4864_vm4, %v3892_v39, %v3908_v56  ;;  %972 = vmin.xlane.f32.xlu1 %v952_v53  ;;  %v1783_v53 = vsel %vm1767_vm3, %v3406_v54, 1e+30 }
 0x205   : > { %v3919_v2 = vpop.xlane.xlu1 %924  ;;  %1895 = vst.msk [vmem:[#allocation4 + $0x18] sm:$0xff] %vm368_vm0, %v1879_v59  ;;  %1244 = vmin.xlane.f32.xlu0 %v1217_v24  ;;  %v1887_v59 = vsel %vm4868_vm1, %v3917_v15, %v3929_v37  ;;  %v3968_v24 = vld [vmem:[#allocation2 + $0x68] sm:$0xff] }
 0x206   : > { %vm4869_vm2 = vcmp.gt.f32.partialorder %v3919_v2, %v3906_v35  ;;  %vm944_vm4 = vcmp.ge.f32.partialorder %v5042_v34, %v3919_v2  ;;  %1903 = vst.msk [vmem:[#allocation4 + $0x58] sm:$0xff] %vm368_vm0, %v1887_v59  ;;  %5102 = vst [vmem:[#allocation54_spill] sm:$0xff] %v3968_v24 }
 0x207   : > { %v1057_v29 = vsel %vm4869_vm2, %v3919_v2, %v3906_v35  ;;  %v3954_v35 = vpop.xlane.xlu0 %910  ;;  %v960_v34 = vsel %vm944_vm4, %v3406_v54, 1e+30  ;;  %vm1775_vm2 = vcmp.ge.f32.partialorder %v3366_v44, %v3917_v15 }
 0x208   : > { %1074 = vst.msk [vmem:[#allocation2 + $0x60] sm:$0xff] %vm368_vm0, %v1057_v29  ;;  %vm4872_vm8 = vcmp.gt.f32.partialorder %v3954_v35, %v3938_v57  ;;  %988 = vmin.xlane.f32.xlu1 %v960_v34  ;;  %v1791_v34 = vsel %vm1775_vm2, %v3406_v54, 1e+30 }
 0x209   : > { %v3952_v56 = vpop.xlane.xlu1 %1483  ;;  %v1050_v38 = vsel %vm4872_vm8, %v3954_v35, %v3938_v57  ;;  %1802 = vmin.xlane.f32.xlu0 %v1783_v53  ;;  %v3998_v53 = vld [vmem:[#allocation4 + $0x20] sm:$0xff] }
 0x20a   : > { %1067 = vst.msk [vmem:[#allocation2 + $0x28] sm:$0xff] %vm368_vm0, %v1050_v38  ;;  %vm1511_vm1 = vcmp.ge.f32.partialorder %v5043_v20, %v3952_v56  ;;  %5103 = vst [vmem:[#allocation55_spill] sm:$0xff] %v3998_v53 }
 0x20b   : > { %v3959_v29 = vld [vmem:[#allocation2 + $0x20] sm:$0xff]  ;;  %v3984_v37 = vpop.xlane.xlu0 %926  ;;  %v1527_v20 = vsel %vm1511_vm1, %v3406_v54, 1e+30 }
 0x20c   : > { %vm4873_vm7 = vcmp.gt.f32.partialorder %v3952_v56, %v3959_v29  ;;  %vm4876_vm3 = vcmp.gt.f32.partialorder %v3984_v37, %v3968_v24  ;;  %1547 = vmin.xlane.f32.xlu1 %v1527_v20 }
 0x20d   : > { %v1624_v59 = vsel %vm4873_vm7, %v3952_v56, %v3959_v29  ;;  %v3982_v57 = vpop.xlane.xlu1 %1499  ;;  %v1058_v44 = vsel %vm4876_vm3, %v3984_v37, %v3968_v24  ;;  %1818 = vmin.xlane.f32.xlu0 %v1791_v34  ;;  %vm937_vm7 = vcmp.ge.f32.partialorder %v5044_v61, %v3954_v35  ;;  %v4028_v34 = vld [vmem:[#allocation4 + $0x60] sm:$0xff] }
 0x20e   : > { %1640 = vst.msk [vmem:[#allocation2 + $0x20] sm:$0xff] %vm368_vm0, %v1624_v59  ;;  %1075 = vst.msk [vmem:[#allocation2 + $0x68] sm:$0xff] %vm368_vm0, %v1058_v44  ;;  %vm1519_vm8 = vcmp.ge.f32.partialorder %v3085_v19, %v3982_v57  ;;  %v953_v20 = vsel %vm937_vm7, %v3406_v54, 1e+30 }
 0x20f   : > { %v3989_v38 = vld [vmem:[#allocation2 + $0x60] sm:$0xff]  ;;  %v4014_v15 = vpop.xlane.xlu0 %1485  ;;  %v1535_v44 = vsel %vm1519_vm8, %v3406_v54, 1e+30  ;;  %5106 = vst [vmem:[#allocation58_spill] sm:$0xff] %v4028_v34 }
 0x210   : > { %vm4885_vm4 = vcmp.gt.f32.partialorder %v3982_v57, %v3989_v38  ;;  %5104 = vst [vmem:[#allocation56_spill] sm:$0xff] %v4014_v15  ;;  %1563 = vmin.xlane.f32.xlu1 %v1535_v44 }
 0x211   : > { %v1632_v59 = vsel %vm4885_vm4, %v3982_v57, %v3989_v38  ;;  %v4012_v24 = vpop.xlane.xlu1 %1166  ;;  %v4024_v61 = vld [vmem:[#allocation2 + $0x28] sm:$0xff]  ;;  %974 = vmin.xlane.f32.xlu0 %v953_v20 }
 0x212   : > { %1648 = vst.msk [vmem:[#allocation2 + $0x60] sm:$0xff] %vm368_vm0, %v1632_v59  ;;  %vm4877_vm2 = vcmp.gt.f32.partialorder %v4012_v24, %v3998_v53  ;;  %5105 = vst [vmem:[#allocation57_spill] sm:$0xff] %v4024_v61  ;;  %vm4880_vm1 = vcmp.gt.f32.partialorder %v4014_v15, %v4024_v61  ;;  %vm1194_vm3 = vcmp.ge.f32.partialorder %v3378_v45, %v4012_v24 }
 0x213   : > { %v1306_v19 = vsel %vm4877_vm2, %v4012_v24, %v3998_v53  ;;  %vm945_vm2 = vcmp.ge.f32.partialorder %v3090_v30, %v3984_v37  ;;  %v1625_v59 = vsel %vm4880_vm1, %v4014_v15, %v4024_v61  ;;  %v1210_v44 = vsel %vm1194_vm3, %v3406_v54, 1e+30  ;;  %v4058_v61 = vld [vmem:[#allocation4 + $0x28] sm:$0xff] }
 0x214   : > { %1322 = vst.msk [vmem:[#allocation4 + $0x20] sm:$0xff] %vm368_vm0, %v1306_v19  ;;  %v4044_v19 = vpop.xlane.xlu0 %1501  ;;  %1641 = vst.msk [vmem:[#allocation2 + $0x28] sm:$0xff] %vm368_vm0, %v1625_v59  ;;  %v961_v20 = vsel %vm945_vm2, %v3406_v54, 1e+30  ;;  %1230 = vmin.xlane.f32.xlu1 %v1210_v44 }
 0x215   : > { %v4042_v53 = vpop.xlane.xlu1 %1182  ;;  %5107 = vst [vmem:[#allocation59_spill] sm:$0xff] %v4044_v19  ;;  %v4054_v45 = vld [vmem:[#allocation2 + $0x68] sm:$0xff]  ;;  %5109 = vst [vmem:[#allocation61_spill] sm:$0xff] %v4058_v61  ;;  %990 = vmin.xlane.f32.xlu0 %v961_v20  ;;  %vm1520_vm4 = vcmp.ge.f32.partialorder %v3111_v42, %v4044_v19 }
 0x216   : > { %vm4881_vm8 = vcmp.gt.f32.partialorder %v4042_v53, %v4028_v34  ;;  %5108 = vst [vmem:[#allocation60_spill] sm:$0xff] %v4054_v45  ;;  %vm4884_vm7 = vcmp.gt.f32.partialorder %v4044_v19, %v4054_v45  ;;  %vm1202_vm1 = vcmp.ge.f32.partialorder %v3106_v33, %v4042_v53 }
 0x217   : > { %v1314_v30 = vsel %vm4881_vm8, %v4042_v53, %v4028_v34  ;;  %vm1512_vm8 = vcmp.ge.f32.partialorder %v3100_v62, %v4014_v15  ;;  %v1633_v59 = vsel %vm4884_vm7, %v4044_v19, %v4054_v45  ;;  %v1218_v33 = vsel %vm1202_vm1, %v3406_v54, 1e+30  ;;  %v4088_v45 = vld [vmem:[#allocation4 + $0x68] sm:$0xff] }
 0x218   : > { %1330 = vst.msk [vmem:[#allocation4 + $0x60] sm:$0xff] %vm368_vm0, %v1314_v30  ;;  %v4074_v30 = vpop.xlane.xlu0 %1168  ;;  %1649 = vst.msk [vmem:[#allocation2 + $0x68] sm:$0xff] %vm368_vm0, %v1633_v59  ;;  %v1528_v20 = vsel %vm1512_vm8, %v3406_v54, 1e+30  ;;  %1246 = vmin.xlane.f32.xlu1 %v1218_v33  ;;  %v1536_v33 = vsel %vm1520_vm4, %v3406_v54, 1e+30 }
 0x219   : > { %v4072_v34 = vpop.xlane.xlu1 %1740  ;;  %vm4888_vm3 = vcmp.gt.f32.partialorder %v4074_v30, %v4058_v61  ;;  %5110 = vst [vmem:[#allocation62_spill] sm:$0xff] %v4088_v45  ;;  %1549 = vmin.xlane.f32.xlu0 %v1528_v20  ;;  %v4118_v20 = vld [vmem:[#allocation2 + $0x30] sm:$0xff] }
 0x21a   : > { %v1307_v62 = vsel %vm4888_vm3, %v4074_v30, %v4058_v61  ;;  %vm1768_vm7 = vcmp.ge.f32.partialorder %v3116_v18, %v4072_v34  ;;  %5112 = vst [vmem:[#allocation64_spill] sm:$0xff] %v4118_v20 }
 0x21b   : > { %v4079_v44 = vld [vmem:[#allocation4 + $0x20] sm:$0xff]  ;;  %1323 = vst.msk [vmem:[#allocation4 + $0x28] sm:$0xff] %vm368_vm0, %v1307_v62  ;;  %v1784_v18 = vsel %vm1768_vm7, %v3406_v54, 1e+30 }
 0x21c   : > { %vm4889_vm2 = vcmp.gt.f32.partialorder %v4072_v34, %v4079_v44  ;;  %v4104_v15 = vpop.xlane.xlu0 %1184  ;;  %1804 = vmin.xlane.f32.xlu1 %v1784_v18 }
 0x21d   : > { %v1880_v59 = vsel %vm4889_vm2, %v4072_v34, %v4079_v44  ;;  %v4102_v61 = vpop.xlane.xlu1 %1756  ;;  %vm4892_vm1 = vcmp.gt.f32.partialorder %v4104_v15, %v4088_v45  ;;  %1565 = vmin.xlane.f32.xlu0 %v1536_v33  ;;  %vm1195_vm2 = vcmp.ge.f32.partialorder %v3120_v0, %v4074_v30  ;;  %v4148_v33 = vld [vmem:[#allocation2 + $0x70] sm:$0xff] }
 0x21e   : > { %1896 = vst.msk [vmem:[#allocation4 + $0x20] sm:$0xff] %vm368_vm0, %v1880_v59  ;;  %v1315_v42 = vsel %vm4892_vm1, %v4104_v15, %v4088_v45  ;;  %vm1776_vm3 = vcmp.ge.f32.partialorder %v3127_v46, %v4102_v61  ;;  %v1211_v18 = vsel %vm1195_vm2, %v3406_v54, 1e+30  ;;  %5114 = vst [vmem:[#allocation66_spill] sm:$0xff] %v4148_v33 }
 0x21f   : > { %v4109_v62 = vld [vmem:[#allocation4 + $0x60] sm:$0xff]  ;;  %1331 = vst.msk [vmem:[#allocation4 + $0x68] sm:$0xff] %vm368_vm0, %v1315_v42  ;;  %v1792_v46 = vsel %vm1776_vm3, %v3406_v54, 1e+30 }
 0x220   : > { %5111 = vst [vmem:[#allocation63_spill] sm:$0xff] %v4109_v62  ;;  %vm4893_vm8 = vcmp.gt.f32.partialorder %v4102_v61, %v4109_v62  ;;  %v4132_v45 = vpop.xlane.xlu0 %1742  ;;  %1820 = vmin.xlane.f32.xlu1 %v1792_v46 }
 0x221   : > { %v1888_v59 = vsel %vm4893_vm8, %v4102_v61, %v4109_v62  ;;  %v4134_v19 = vpop.xlane.xlu1 %912  ;;  %1232 = vmin.xlane.f32.xlu0 %v1211_v18  ;;  %vm1203_vm8 = vcmp.ge.f32.partialorder %v3131_v49, %v4104_v15  ;;  %v4178_v18 = vld [vmem:[#allocation2 + $0x38] sm:$0xff] }
 0x222   : > { %1904 = vst.msk [vmem:[#allocation4 + $0x60] sm:$0xff] %vm368_vm0, %v1888_v59  ;;  %vm4897_vm4 = vcmp.gt.f32.partialorder %v4134_v19, %v4118_v20  ;;  %v4139_v42 = vld [vmem:[#allocation4 + $0x28] sm:$0xff]  ;;  %vm938_vm1 = vcmp.ge.f32.partialorder %v3140_v16, %v4134_v19  ;;  %v1219_v46 = vsel %vm1203_vm8, %v3406_v54, 1e+30  ;;  %5117 = vst [vmem:[#allocation69_spill] sm:$0xff] %v4178_v18 }
 0x223   : > { %5113 = vst [vmem:[#allocation65_spill] sm:$0xff] %v4139_v42  ;;  %v1051_v0 = vsel %vm4897_vm4, %v4134_v19, %v4118_v20  ;;  %vm4896_vm7 = vcmp.gt.f32.partialorder %v4132_v45, %v4139_v42  ;;  %v954_v16 = vsel %vm938_vm1, %v3406_v54, 1e+30  ;;  %vm1769_vm4 = vcmp.ge.f32.partialorder %v3135_v51, %v4132_v45 }
 0x224   : > { %1068 = vst.msk [vmem:[#allocation2 + $0x30] sm:$0xff] %vm368_vm0, %v1051_v0  ;;  %v1881_v59 = vsel %vm4896_vm7, %v4132_v45, %v4139_v42  ;;  %v4162_v20 = vpop.xlane.xlu0 %1758  ;;  %976 = vmin.xlane.f32.xlu1 %v954_v16  ;;  %v1785_v16 = vsel %vm1769_vm4, %v3406_v54, 1e+30 }
 0x225   : > { %5115 = vst [vmem:[#allocation67_spill] sm:$0xff] %v4162_v20  ;;  %v4164_v62 = vpop.xlane.xlu1 %928  ;;  %1897 = vst.msk [vmem:[#allocation4 + $0x28] sm:$0xff] %vm368_vm0, %v1881_v59  ;;  %1248 = vmin.xlane.f32.xlu0 %v1219_v46  ;;  %v4208_v46 = vld [vmem:[#allocation2 + $0x78] sm:$0xff] }
 0x226   : > { %vm4901_vm3 = vcmp.gt.f32.partialorder %v4164_v62, %v4148_v33  ;;  %v4169_v0 = vld [vmem:[#allocation4 + $0x68] sm:$0xff]  ;;  %vm946_vm7 = vcmp.ge.f32.partialorder %v3149_v1, %v4164_v62  ;;  %5118 = vst [vmem:[#allocation70_spill] sm:$0xff] %v4208_v46 }
 0x227   : > { %5116 = vst [vmem:[#allocation68_spill] sm:$0xff] %v4169_v0  ;;  %v1059_v49 = vsel %vm4901_vm3, %v4164_v62, %v4148_v33  ;;  %vm4900_vm2 = vcmp.gt.f32.partialorder %v4162_v20, %v4169_v0  ;;  %v962_v1 = vsel %vm946_vm7, %v3406_v54, 1e+30  ;;  %vm1777_vm3 = vcmp.ge.f32.partialorder %v3144_v13, %v4162_v20 }
 0x228   : > { %1076 = vst.msk [vmem:[#allocation2 + $0x70] sm:$0xff] %vm368_vm0, %v1059_v49  ;;  %v1889_v59 = vsel %vm4900_vm2, %v4162_v20, %v4169_v0  ;;  %v4194_v33 = vpop.xlane.xlu0 %914  ;;  %992 = vmin.xlane.f32.xlu1 %v962_v1  ;;  %v1793_v1 = vsel %vm1777_vm3, %v3406_v54, 1e+30 }
 0x229   : > { %v4192_v42 = vpop.xlane.xlu1 %1487  ;;  %1905 = vst.msk [vmem:[#allocation4 + $0x68] sm:$0xff] %vm368_vm0, %v1889_v59  ;;  %vm4904_vm1 = vcmp.gt.f32.partialorder %v4194_v33, %v4178_v18  ;;  %1806 = vmin.xlane.f32.xlu0 %v1785_v16  ;;  %v4238_v16 = vld [vmem:[#allocation4 + $0x30] sm:$0xff] }
 0x22a   : > { %v1052_v51 = vsel %vm4904_vm1, %v4194_v33, %v4178_v18  ;;  %vm1513_vm2 = vcmp.ge.f32.partialorder %v3163_v36, %v4192_v42  ;;  %5120 = vst [vmem:[#allocation72_spill] sm:$0xff] %v4238_v16 }
 0x22b   : > { %v4199_v49 = vld [vmem:[#allocation2 + $0x30] sm:$0xff]  ;;  %1069 = vst.msk [vmem:[#allocation2 + $0x38] sm:$0xff] %vm368_vm0, %v1052_v51  ;;  %v1529_v36 = vsel %vm1513_vm2, %v3406_v54, 1e+30 }
 0x22c   : > { %vm4905_vm8 = vcmp.gt.f32.partialorder %v4192_v42, %v4199_v49  ;;  %v4224_v0 = vpop.xlane.xlu0 %930  ;;  %1551 = vmin.xlane.f32.xlu1 %v1529_v36 }
 0x22d   : > { %v1626_v59 = vsel %vm4905_vm8, %v4192_v42, %v4199_v49  ;;  %v4222_v18 = vpop.xlane.xlu1 %1503  ;;  %5119 = vst [vmem:[#allocation71_spill] sm:$0xff] %v4224_v0  ;;  %vm4908_vm4 = vcmp.gt.f32.partialorder %v4224_v0, %v4208_v46  ;;  %1822 = vmin.xlane.f32.xlu0 %v1793_v1  ;;  %vm939_vm8 = vcmp.ge.f32.partialorder %v3168_v41, %v4194_v33  ;;  %v4268_v1 = vld [vmem:[#allocation4 + $0x70] sm:$0xff] }
 0x22e   : > { %1642 = vst.msk [vmem:[#allocation2 + $0x30] sm:$0xff] %vm368_vm0, %v1626_v59  ;;  %v1060_v13 = vsel %vm4908_vm4, %v4224_v0, %v4208_v46  ;;  %vm1521_vm1 = vcmp.ge.f32.partialorder %v3180_v50, %v4222_v18  ;;  %v955_v36 = vsel %vm939_vm8, %v3406_v54, 1e+30  ;;  %5124 = vst [vmem:[#allocation76_spill] sm:$0xff] %v4268_v1 }
 0x22f   : > { %v4229_v51 = vld [vmem:[#allocation2 + $0x70] sm:$0xff]  ;;  %1077 = vst.msk [vmem:[#allocation2 + $0x78] sm:$0xff] %vm368_vm0, %v1060_v13  ;;  %v1537_v13 = vsel %vm1521_vm1, %v3406_v54, 1e+30 }
 0x230   : > { %vm4917_vm7 = vcmp.gt.f32.partialorder %v4222_v18, %v4229_v51  ;;  %v4254_v20 = vpop.xlane.xlu0 %1489  ;;  %1567 = vmin.xlane.f32.xlu1 %v1537_v13 }
 0x231   : > { %v1634_v59 = vsel %vm4917_vm7, %v4222_v18, %v4229_v51  ;;  %v4252_v46 = vpop.xlane.xlu1 %1170  ;;  %5122 = vst [vmem:[#allocation74_spill] sm:$0xff] %v4254_v20  ;;  %978 = vmin.xlane.f32.xlu0 %v955_v36 }
 0x232   : > { %5121 = vst [vmem:[#allocation73_spill] sm:$0xff] %v4252_v46  ;;  %1650 = vst.msk [vmem:[#allocation2 + $0x70] sm:$0xff] %vm368_vm0, %v1634_v59  ;;  %vm4909_vm3 = vcmp.gt.f32.partialorder %v4252_v46, %v4238_v16  ;;  %v4264_v50 = vld [vmem:[#allocation2 + $0x38] sm:$0xff]  ;;  %vm1196_vm4 = vcmp.ge.f32.partialorder %v3189_v28, %v4252_v46 }
 0x233   : > { %v1308_v41 = vsel %vm4909_vm3, %v4252_v46, %v4238_v16  ;;  %5123 = vst [vmem:[#allocation75_spill] sm:$0xff] %v4264_v50  ;;  %vm4912_vm2 = vcmp.gt.f32.partialorder %v4254_v20, %v4264_v50  ;;  %vm947_vm3 = vcmp.ge.f32.partialorder %v3185_v52, %v4224_v0  ;;  %v1212_v13 = vsel %vm1196_vm4, %v3406_v54, 1e+30 }
 0x234   : > { %1324 = vst.msk [vmem:[#allocation4 + $0x30] sm:$0xff] %vm368_vm0, %v1308_v41  ;;  %v1627_v59 = vsel %vm4912_vm2, %v4254_v20, %v4264_v50  ;;  %v4284_v41 = vpop.xlane.xlu0 %1505  ;;  %v963_v36 = vsel %vm947_vm3, %v3406_v54, 1e+30  ;;  %v4298_v50 = vld [vmem:[#allocation4 + $0x38] sm:$0xff]  ;;  %1234 = vmin.xlane.f32.xlu1 %v1212_v13 }
 0x235   : > { %v4282_v16 = vpop.xlane.xlu1 %1186  ;;  %5126 = vst [vmem:[#allocation78_spill] sm:$0xff] %v4284_v41  ;;  %1643 = vst.msk [vmem:[#allocation2 + $0x38] sm:$0xff] %vm368_vm0, %v1627_v59  ;;  %994 = vmin.xlane.f32.xlu0 %v963_v36  ;;  %vm1522_vm7 = vcmp.ge.f32.partialorder %v3173_v9, %v4284_v41 }
 0x236   : > { %5125 = vst [vmem:[#allocation77_spill] sm:$0xff] %v4282_v16  ;;  %vm4913_vm1 = vcmp.gt.f32.partialorder %v4282_v16, %v4268_v1  ;;  %v4294_v28 = vld [vmem:[#allocation2 + $0x78] sm:$0xff]  ;;  %5128 = vst [vmem:[#allocation80_spill] sm:$0xff] %v4298_v50  ;;  %vm1204_vm2 = vcmp.ge.f32.partialorder %v3193_v22, %v4282_v16 }
 0x237   : > { %v1316_v52 = vsel %vm4913_vm1, %v4282_v16, %v4268_v1  ;;  %5127 = vst [vmem:[#allocation79_spill] sm:$0xff] %v4294_v28  ;;  %vm4916_vm8 = vcmp.gt.f32.partialorder %v4284_v41, %v4294_v28  ;;  %vm1514_vm1 = vcmp.ge.f32.partialorder %v3158_v5, %v4254_v20  ;;  %v1220_v22 = vsel %vm1204_vm2, %v3406_v54, 1e+30 }
 0x238   : > { %1332 = vst.msk [vmem:[#allocation4 + $0x70] sm:$0xff] %vm368_vm0, %v1316_v52  ;;  %v1635_v59 = vsel %vm4916_vm8, %v4284_v41, %v4294_v28  ;;  %v4314_v52 = vpop.xlane.xlu0 %1172  ;;  %v1530_v36 = vsel %vm1514_vm1, %v3406_v54, 1e+30  ;;  %v4328_v28 = vld [vmem:[#allocation4 + $0x78] sm:$0xff]  ;;  %1250 = vmin.xlane.f32.xlu1 %v1220_v22  ;;  %v1538_v22 = vsel %vm1522_vm7, %v3406_v54, 1e+30 }
 0x239   : > { %v4312_v1 = vpop.xlane.xlu1 %1744  ;;  %5130 = vst [vmem:[#allocation82_spill] sm:$0xff] %v4314_v52  ;;  %1651 = vst.msk [vmem:[#allocation2 + $0x78] sm:$0xff] %vm368_vm0, %v1635_v59  ;;  %vm4920_vm4 = vcmp.gt.f32.partialorder %v4314_v52, %v4298_v50  ;;  %1553 = vmin.xlane.f32.xlu0 %v1530_v36 }
 0x23a   : > { %5129 = vst [vmem:[#allocation81_spill] sm:$0xff] %v4312_v1  ;;  %v1309_v5 = vsel %vm4920_vm4, %v4314_v52, %v4298_v50  ;;  %5132 = vst [vmem:[#allocation84_spill] sm:$0xff] %v4328_v28  ;;  %vm1770_vm8 = vcmp.ge.f32.partialorder %v3203_v4, %v4312_v1 }
 0x23b   : > { %v4319_v13 = vld [vmem:[#allocation4 + $0x30] sm:$0xff]  ;;  %1325 = vst.msk [vmem:[#allocation4 + $0x38] sm:$0xff] %vm368_vm0, %v1309_v5  ;;  %v1786_v4 = vsel %vm1770_vm8, %v3406_v54, 1e+30 }
 0x23c   : > { %5131 = vst [vmem:[#allocation83_spill] sm:$0xff] %v4319_v13  ;;  %vm4921_vm3 = vcmp.gt.f32.partialorder %v4312_v1, %v4319_v13  ;;  %v4344_v20 = vpop.xlane.xlu0 %1188  ;;  %1808 = vmin.xlane.f32.xlu1 %v1786_v4 }
 0x23d   : > { %v1882_v59 = vsel %vm4921_vm3, %v4312_v1, %v4319_v13  ;;  %v4342_v50 = vpop.xlane.xlu1 %1760  ;;  %5134 = vst [vmem:[#allocation86_spill] sm:$0xff] %v4344_v20  ;;  %vm1301_vm2 = vcmp.gt.f32.partialorder %v4344_v20, %v4328_v28  ;;  %1569 = vmin.xlane.f32.xlu0 %v1538_v22  ;;  %vm1197_vm3 = vcmp.ge.f32.partialorder %v3207_v6, %v4314_v52  ;;  %v5138_v6 = vld [vmem:[#allocation29_spill] sm:$0xff] }
 0x23e   : > { %5133 = vst [vmem:[#allocation85_spill] sm:$0xff] %v4342_v50  ;;  %1898 = vst.msk [vmem:[#allocation4 + $0x30] sm:$0xff] %vm368_vm0, %v1882_v59  ;;  %v1317_v9 = vsel %vm1301_vm2, %v4344_v20, %v4328_v28  ;;  %vm1778_vm4 = vcmp.ge.f32.partialorder %v3211_v47, %v4342_v50  ;;  %v1213_v4 = vsel %vm1197_vm3, %v3406_v54, 1e+30  ;;  %vm1205_vm8 = vcmp.ge.f32.partialorder %v5138_v6, %v4344_v20 }
 0x23f   : > { %v4349_v5 = vld [vmem:[#allocation4 + $0x70] sm:$0xff]  ;;  %1333 = vst.msk [vmem:[#allocation4 + $0x78] sm:$0xff] %vm368_vm0, %v1317_v9  ;;  %v1794_v9 = vsel %vm1778_vm4, %v3406_v54, 1e+30 }
 0x240   : > { %5135 = vst [vmem:[#allocation87_spill] sm:$0xff] %v4349_v5  ;;  %vm1874_vm1 = vcmp.gt.f32.partialorder %v4342_v50, %v4349_v5  ;;  %v4370_v59 = vpop.xlane.xlu0 %1746  ;;  %1824 = vmin.xlane.f32.xlu1 %v1794_v9  ;;  %v5141_v9 = vld [vmem:[#allocation30_spill] sm:$0xff] }
 0x241   : > { %v1890_v36 = vsel %vm1874_vm1, %v4342_v50, %v4349_v5  ;;  %5136 = vst [vmem:[#allocation88_spill] sm:$0xff] %v4370_v59  ;;  %1236 = vmin.xlane.f32.xlu0 %v1213_v4  ;;  %v1221_v5 = vsel %vm1205_vm8, %v3406_v54, 1e+30  ;;  %vm1771_vm3 = vcmp.ge.f32.partialorder %v5141_v9, %v4370_v59 }
 0x242   : > { %1906 = vst.msk [vmem:[#allocation4 + $0x70] sm:$0xff] %vm368_vm0, %v1890_v36  ;;  %v4373_v28 = vld [vmem:[#allocation4 + $0x38] sm:$0xff]  ;;  %v1787_v6 = vsel %vm1771_vm3, %v3406_v54, 1e+30 }
 0x243   : > { %5137 = vst [vmem:[#allocation89_spill] sm:$0xff] %v4373_v28  ;;  %vm1867_vm7 = vcmp.gt.f32.partialorder %v4370_v59, %v4373_v28 }
 0x244   : > { %v1883_v47 = vsel %vm1867_vm7, %v4370_v59, %v4373_v28  ;;  %v4389_v36 = vpop.xlane.xlu0 %1762 }
 0x245   : > { %1899 = vst.msk [vmem:[#allocation4 + $0x38] sm:$0xff] %vm368_vm0, %v1883_v47  ;;  %5140 = vst [vmem:[#allocation90_spill] sm:$0xff] %v4389_v36  ;;  %1252 = vmin.xlane.f32.xlu0 %v1221_v5  ;;  %v5142_v47 = vld [vmem:[#allocation9_spill] sm:$0xff]  ;;  %v1078_v5 = vld [vmem:[#allocation3] sm:$0xff]  ;;  %v965_v20 = vpop.xlane.xlu1 %964 }
 0x246   : > { %v4387_v22 = vld [vmem:[#allocation4 + $0x78] sm:$0xff]  ;;  %vm1779_vm8 = vcmp.ge.f32.partialorder %v5142_v47, %v4389_v36  ;;  %v1094_v50 = vsel %vm1029_vm9, %v965_v20, %v1078_v5 }
 0x247   : > { %5139 = vst [vmem:[#allocation29_spill] sm:$0xff] %v4387_v22  ;;  %vm1875_vm4 = vcmp.gt.f32.partialorder %v4389_v36, %v4387_v22  ;;  %v1795_v28 = vsel %vm1779_vm8, %v3406_v54, 1e+30  ;;  %1110 = vst.msk [vmem:[#allocation3] sm:$0xff] %vm368_vm0, %v1094_v50 }
 0x248   : > { %v1891_v4 = vsel %vm1875_vm4, %v4389_v36, %v4387_v22  ;;  %v1086_v22 = vld [vmem:[#allocation3 + $0x40] sm:$0xff] }
 0x249   : > { %1907 = vst.msk [vmem:[#allocation4 + $0x78] sm:$0xff] %vm368_vm0, %v1891_v4  ;;  %1810 = vmin.xlane.f32.xlu0 %v1787_v6  ;;  %v981_v52 = vpop.xlane.xlu1 %980 }
 0x24a   : > { %v1102_v6 = vsel %vm1037_vm11, %v981_v52, %v1086_v22  ;;  %v1334_v52 = vld [vmem:[#allocation5] sm:$0xff]  ;;  %v1087_v22 = vld [vmem:[#allocation3 + $0x48] sm:$0xff] }
 0x24b   : > { %1118 = vst.msk [vmem:[#allocation3 + $0x40] sm:$0xff] %vm368_vm0, %v1102_v6 }
 0x24d   : > { %1826 = vmin.xlane.f32.xlu0 %v1795_v28  ;;  %v1540_v47 = vpop.xlane.xlu1 %1539  ;;  %v1079_v28 = vld [vmem:[#allocation3 + $0x8] sm:$0xff] }
 0x24e   : > { %v1652_v36 = vld [vmem:[#allocation3] sm:$0xff]  ;;  %v1572_v54 = vadd.f32 128.0, %v1540_v47 }
 0x250   : > { %v1668_v16 = vsel %vm1604_vm13, %v1572_v54, %v1652_v36  ;;  %vm5168_vm13 = vcmp.gt.f32.partialorder %v3634_v23, %v3658_v58  ;;  %v1088_v58 = vld [vmem:[#allocation3 + $0x50] sm:$0xff] }
 0x251   : > { %1684 = vst.msk [vmem:[#allocation3] sm:$0xff] %vm368_vm0, %v1668_v16  ;;  %v967_v50 = vpop.xlane.xlu0 %966 }
 0x252   : > { %v1660_v59 = vld [vmem:[#allocation3 + $0x40] sm:$0xff]  ;;  %v1095_v41 = vsel %vm1030_vm15, %v967_v50, %v1079_v28 }
 0x253   : > { %1111 = vst.msk [vmem:[#allocation3 + $0x8] sm:$0xff] %vm368_vm0, %v1095_v41  ;;  %v1342_v28 = vld [vmem:[#allocation5 + $0x40] sm:$0xff] }
 0x258   : > { %v1959_v50 = vld [vmem:[#allocation3] sm:$0xff] }
 0x25a   : > { %v1653_v6 = vld [vmem:[#allocation3 + $0x8] sm:$0xff] }
 0x25c   : > { %v1556_v20 = vpop.xlane.xlu1 %1555 }
 0x25d   : > { %v1580_v5 = vadd.f32 128.0, %v1556_v20  ;;  %v983_v16 = vpop.xlane.xlu0 %982 }
 0x25e   : > { %v1103_v0 = vsel %vm1038_vm14, %v983_v16, %v1087_v22 }
 0x25f   : > { %v1676_v47 = vsel %vm1612_vm12, %v1580_v5, %v1660_v59  ;;  %1119 = vst.msk [vmem:[#allocation3 + $0x48] sm:$0xff] %vm368_vm0, %v1103_v0  ;;  %v1975_v59 = vmax.f32 %v1959_v50, 0.0  ;;  %vm5169_vm12 = vcmp.gt.f32.partialorder %v3670_v43, %v3652_v26 }
 0x260   : > { %1692 = vst.msk [vmem:[#allocation3 + $0x40] sm:$0xff] %vm368_vm0, %v1676_v47  ;;  %v1223_v1 = vpop.xlane.xlu1 %1222 }
 0x261   : > { %v1350_v54 = vsel %vm1286_vm6, %v1223_v1, %v1334_v52  ;;  %v1542_v9 = vpop.xlane.xlu0 %1541  ;;  %v1991_v47 = vmin.f32 %v1975_v59, 255.0  ;;  %vm5173_vm6 = vcmp.gt.f32.partialorder %v3668_v17, %v3654_v12 }
 0x262   : > { %1366 = vst.msk [vmem:[#allocation5] sm:$0xff] %vm368_vm0, %v1350_v54  ;;  %v1573_v52 = vadd.f32 128.0, %v1542_v9  ;;  %v5160_v9 = vld [vmem:[#allocation35_spill] sm:$0xff] }
 0x263   : > { %v2363_v16 = vtrunc.f32 %v1991_v47 }
 0x264   : > { %v1239_v5 = vpop.xlane.xlu1 %1238  ;;  %v1669_v1 = vsel %vm1605_vm5, %v1573_v52, %v1653_v6  ;;  %v5163_v6 = vld [vmem:[#allocation18_spill] sm:$0xff]  ;;  %vm5177_vm5 = vcmp.gt.f32.partialorder %v3710_v31, %v3747_v40  ;;  %v5181_v31 = vld [vmem:[#allocation24_spill] sm:$0xff] }
 0x265   : > { %v1358_v4 = vsel %vm1294_vm10, %v1239_v5, %v1342_v28  ;;  %1685 = vst.msk [vmem:[#allocation3 + $0x8] sm:$0xff] %vm368_vm0, %v1669_v1  ;;  %v1558_v54 = vpop.xlane.xlu0 %1557  ;;  %v2364_v50 = vcvt.f32.s32 %v2363_v16  ;;  %v5159_v5 = vld [vmem:[#allocation19_spill] sm:$0xff]  ;;  %vm5182_vm8 = vcmp.gt.f32.partialorder %v3712_v11, %v5181_v31  ;;  %v5185_v11 = vld [vmem:[#allocation40_spill] sm:$0xff] }
 0x266   : > { %1374 = vst.msk [vmem:[#allocation5 + $0x40] sm:$0xff] %vm368_vm0, %v1358_v4  ;;  %v1661_v0 = vld [vmem:[#allocation3 + $0x48] sm:$0xff]  ;;  %v1581_v28 = vadd.f32 128.0, %v1558_v54  ;;  %vm5161_vm9 = vcmp.gt.f32.partialorder %v5159_v5, %v5160_v9  ;;  %v5162_v4 = vld [vmem:[#allocation13_spill] sm:$0xff] }
 0x267   : > { %v1967_v46 = vld [vmem:[#allocation3 + $0x40] sm:$0xff]  ;;  %vm5164_vm11 = vcmp.gt.f32.partialorder %v5162_v4, %v5163_v6  ;;  %2023 = vst.msk [vmem:[%s4446_s11] sm:$0xff] %vm368_vm0, %v2364_v50  ;;  %v5171_v4 = vld [vmem:[#allocation33_spill] sm:$0xff] }
 0x268   : > { %v1983_v13 = vmax.f32 %v1967_v46, 0.0  ;;  %v1797_v36 = vpop.xlane.xlu1 %1796  ;;  %v1677_v52 = vsel %vm5164_vm11, %v1581_v28, %v1661_v0  ;;  %v1343_v0 = vld [vmem:[#allocation5 + $0x48] sm:$0xff]  ;;  %vm5186_vm11 = vcmp.gt.f32.partialorder %v3754_v8, %v5185_v11  ;;  %v1337_v11 = vld [vmem:[#allocation5 + $0x18] sm:$0xff] }
 0x269   : > { %v1908_v55 = vld [vmem:[#allocation5] sm:$0xff]  ;;  %v1828_v20 = vadd.f32 128.0, %v1797_v36  ;;  %1693 = vst.msk [vmem:[#allocation3 + $0x48] sm:$0xff] %vm368_vm0, %v1677_v52  ;;  %v5166_v36 = vld [vmem:[#allocation31_spill] sm:$0xff] }
 0x26a   : > { %v1999_v59 = vmin.f32 %v1983_v13, 255.0  ;;  %v5165_v13 = vld [vmem:[#allocation32_spill] sm:$0xff] }
 0x26b   : > { %v1924_v41 = vsel %vm5161_vm9, %v1828_v20, %v1908_v55  ;;  %v1225_v22 = vpop.xlane.xlu0 %1224  ;;  %vm5167_vm14 = vcmp.gt.f32.partialorder %v5165_v13, %v5166_v36  ;;  %v1080_v20 = vld [vmem:[#allocation3 + $0x10] sm:$0xff] }
 0x26c   : > { %v2379_v47 = vtrunc.f32 %v1999_v59  ;;  %1940 = vst.msk [vmem:[#allocation5] sm:$0xff] %vm368_vm0, %v1924_v41  ;;  %v1813_v46 = vpop.xlane.xlu1 %1812  ;;  %v1351_v54 = vsel %vm5167_vm14, %v1225_v22, %v1335_v48  ;;  %v1960_v28 = vld [vmem:[#allocation3 + $0x8] sm:$0xff]  ;;  %v5170_v41 = vld [vmem:[#allocation16_spill] sm:$0xff] }
 0x26d   : > { %v1916_v1 = vld [vmem:[#allocation5 + $0x40] sm:$0xff]  ;;  %v1836_v16 = vadd.f32 128.0, %v1813_v46  ;;  %1367 = vst.msk [vmem:[#allocation5 + $0x8] sm:$0xff] %vm368_vm0, %v1351_v54  ;;  %v1976_v59 = vmax.f32 %v1960_v28, 0.0  ;;  %vm5172_vm15 = vcmp.gt.f32.partialorder %v5170_v41, %v5171_v4 }
 0x26e   : > { %v2380_v55 = vcvt.f32.s32 %v2379_v47  ;;  %v5174_v28 = vld [vmem:[#allocation34_spill] sm:$0xff] }
 0x26f   : > { %v1932_v50 = vsel %vm5168_vm13, %v1836_v16, %v1916_v1  ;;  %v1241_v9 = vpop.xlane.xlu0 %1240  ;;  %v1992_v52 = vmin.f32 %v1976_v59, 255.0  ;;  %vm5189_vm13 = vcmp.gt.f32.partialorder %v3793_v63, %v3774_v32 }
 0x270   : > { %2031 = vst.msk [vmem:[%s4446_s11 + $0x40] sm:$0xff] %vm368_vm0, %v2380_v55  ;;  %1948 = vst.msk [vmem:[#allocation5 + $0x40] sm:$0xff] %vm368_vm0, %v1932_v50  ;;  %v969_v5 = vpop.xlane.xlu1 %968  ;;  %v1359_v6 = vsel %vm5172_vm15, %v1241_v9, %v1343_v0  ;;  %v1968_v47 = vld [vmem:[#allocation3 + $0x48] sm:$0xff]  ;;  %v5175_v50 = vld [vmem:[#allocation36_spill] sm:$0xff]  ;;  %vm5193_vm15 = vcmp.gt.f32.partialorder %v3827_v10, %v3852_v14 }
 0x271   : > { %v1096_v48 = vsel %vm5169_vm12, %v969_v5, %v1080_v20  ;;  %1375 = vst.msk [vmem:[#allocation5 + $0x48] sm:$0xff] %vm368_vm0, %v1359_v6  ;;  %v2365_v46 = vtrunc.f32 %v1992_v52  ;;  %v1984_v1 = vmax.f32 %v1968_v47, 0.0  ;;  %vm5176_vm10 = vcmp.gt.f32.partialorder %v5174_v28, %v5175_v50  ;;  %v1089_v28 = vld [vmem:[#allocation3 + $0x58] sm:$0xff] }
 0x272   : > { %1112 = vst.msk [vmem:[#allocation3 + $0x10] sm:$0xff] %vm368_vm0, %v1096_v48  ;;  %v5197_v10 = vld [vmem:[#allocation45_spill] sm:$0xff] }
 0x273   : > { %v2039_v23 = vld [vmem:[#allocation5] sm:$0xff]  ;;  %v1799_v13 = vpop.xlane.xlu0 %1798  ;;  %v2366_v54 = vcvt.f32.s32 %v2365_v46  ;;  %v2000_v20 = vmin.f32 %v1984_v1, 255.0  ;;  %v1081_v46 = vld [vmem:[#allocation3 + $0x18] sm:$0xff] }
 0x274   : > { %v2055_v22 = vmax.f32 %v2039_v23, 0.0  ;;  %v985_v16 = vpop.xlane.xlu1 %984  ;;  %v1909_v43 = vld [vmem:[#allocation5 + $0x8] sm:$0xff]  ;;  %v1829_v36 = vadd.f32 128.0, %v1799_v13  ;;  %v5178_v1 = vld [vmem:[#allocation21_spill] sm:$0xff] }
 0x275   : > { %v1104_v26 = vsel %vm5173_vm6, %v985_v16, %v1088_v58  ;;  %2024 = vst.msk [vmem:[%s4446_s11 + $0x8] sm:$0xff] %vm368_vm0, %v2366_v54  ;;  %v2381_v9 = vtrunc.f32 %v2000_v20  ;;  %v5179_v16 = vld [vmem:[#allocation37_spill] sm:$0xff] }
 0x276   : > { %v2071_v55 = vmin.f32 %v2055_v22, 255.0  ;;  %1120 = vst.msk [vmem:[#allocation3 + $0x50] sm:$0xff] %vm368_vm0, %v1104_v26  ;;  %v1925_v59 = vsel %vm5176_vm10, %v1829_v36, %v1909_v43  ;;  %vm5180_vm3 = vcmp.gt.f32.partialorder %v5178_v1, %v5179_v16  ;;  %vm5198_vm10 = vcmp.gt.f32.partialorder %v3829_v3, %v5197_v10  ;;  %v5200_v3 = vld [vmem:[#allocation48_spill] sm:$0xff] }
 0x277   : > { %v2047_v0 = vld [vmem:[#allocation5 + $0x40] sm:$0xff]  ;;  %1941 = vst.msk [vmem:[#allocation5 + $0x8] sm:$0xff] %vm368_vm0, %v1925_v59  ;;  %v1815_v17 = vpop.xlane.xlu0 %1814  ;;  %v2382_v23 = vcvt.f32.s32 %v2381_v9  ;;  %v5183_v59 = vld [vmem:[#allocation39_spill] sm:$0xff] }
 0x278   : > { %v2395_v5 = vtrunc.f32 %v2071_v55  ;;  %v2063_v48 = vmax.f32 %v2047_v0, 0.0  ;;  %v1544_v12 = vpop.xlane.xlu1 %1543  ;;  %v1917_v6 = vld [vmem:[#allocation5 + $0x48] sm:$0xff]  ;;  %v1837_v52 = vadd.f32 128.0, %v1815_v17  ;;  %v1336_v0 = vld [vmem:[#allocation5 + $0x10] sm:$0xff]  ;;  %vm5184_vm9 = vcmp.gt.f32.partialorder %v3730_v27, %v5183_v59 }
 0x279   : > { %v1654_v41 = vld [vmem:[#allocation3 + $0x10] sm:$0xff]  ;;  %v1574_v4 = vadd.f32 128.0, %v1544_v12  ;;  %2032 = vst.msk [vmem:[%s4446_s11 + $0x48] sm:$0xff] %vm368_vm0, %v2382_v23 }
 0x27a   : > { %v2396_v58 = vcvt.f32.s32 %v2395_v5  ;;  %v2079_v47 = vmin.f32 %v2063_v48, 255.0  ;;  %v1933_v13 = vsel %vm5180_vm3, %v1837_v52, %v1917_v6  ;;  %v1344_v27 = vld [vmem:[#allocation5 + $0x50] sm:$0xff]  ;;  %vm5201_vm3 = vcmp.gt.f32.partialorder %v3894_v21, %v5200_v3  ;;  %v5205_v21 = vld [vmem:[#allocation49_spill] sm:$0xff] }
 0x27b   : > { %v1670_v22 = vsel %vm5177_vm5, %v1574_v4, %v1654_v41  ;;  %1949 = vst.msk [vmem:[#allocation5 + $0x48] sm:$0xff] %vm368_vm0, %v1933_v13  ;;  %v971_v36 = vpop.xlane.xlu0 %970  ;;  %v5187_v41 = vld [vmem:[#allocation38_spill] sm:$0xff]  ;;  %vm5199_vm5 = vcmp.gt.f32.partialorder %v3855_v25, %v3868_v7 }
 0x27c   : > { %2103 = vst.msk [vmem:[%s4490_s14] sm:$0xff] %vm368_vm0, %v2396_v58  ;;  %v2411_v26 = vtrunc.f32 %v2079_v47  ;;  %1686 = vst.msk [vmem:[#allocation3 + $0x10] sm:$0xff] %vm368_vm0, %v1670_v22  ;;  %v1560_v43 = vpop.xlane.xlu1 %1559  ;;  %v1097_v40 = vsel %vm5182_vm8, %v971_v36, %v1081_v46  ;;  %vm5188_vm14 = vcmp.gt.f32.partialorder %v3732_v60, %v5187_v41  ;;  %v5194_v41 = vld [vmem:[#allocation43_spill] sm:$0xff]  ;;  %v1090_v25 = vld [vmem:[#allocation3 + $0x60] sm:$0xff] }
 0x27d   : > { %v1662_v54 = vld [vmem:[#allocation3 + $0x50] sm:$0xff]  ;;  %v1582_v55 = vadd.f32 128.0, %v1560_v43  ;;  %1113 = vst.msk [vmem:[#allocation3 + $0x18] sm:$0xff] %vm368_vm0, %v1097_v40 }
 0x27e   : > { %v2412_v20 = vcvt.f32.s32 %v2411_v26  ;;  %v2040_v50 = vld [vmem:[#allocation5 + $0x8] sm:$0xff] }
 0x27f   : > { %v1678_v5 = vsel %vm5184_vm9, %v1582_v55, %v1662_v54  ;;  %v2056_v9 = vmax.f32 %v2040_v50, 0.0  ;;  %v987_v12 = vpop.xlane.xlu0 %986  ;;  %v5190_v54 = vld [vmem:[#allocation41_spill] sm:$0xff]  ;;  %v5191_v55 = vld [vmem:[#allocation42_spill] sm:$0xff]  ;;  %vm5206_vm9 = vcmp.gt.f32.partialorder %v3919_v2, %v5205_v21 }
 0x280   : > { %2111 = vst.msk [vmem:[%s4490_s14 + $0x40] sm:$0xff] %vm368_vm0, %v2412_v20  ;;  %1694 = vst.msk [vmem:[#allocation3 + $0x50] sm:$0xff] %vm368_vm0, %v1678_v5  ;;  %v1105_v4 = vsel %vm5188_vm14, %v987_v12, %v1089_v28  ;;  %vm5192_vm12 = vcmp.gt.f32.partialorder %v5190_v54, %v5191_v55  ;;  %v5203_v54 = vld [vmem:[#allocation46_spill] sm:$0xff]  ;;  %vm5209_vm14 = vcmp.gt.f32.partialorder %v3952_v56, %v3959_v29  ;;  %v5213_v56 = vld [vmem:[#allocation53_spill] sm:$0xff] }
 0x281   : > { %v1227_v48 = vpop.xlane.xlu1 %1226  ;;  %v2072_v6 = vmin.f32 %v2056_v9, 255.0  ;;  %1121 = vst.msk [vmem:[#allocation3 + $0x58] sm:$0xff] %vm368_vm0, %v1105_v4  ;;  %v5195_v4 = vld [vmem:[#allocation44_spill] sm:$0xff] }
 0x282   : > { %v1352_v17 = vsel %vm5186_vm11, %v1227_v48, %v1336_v0  ;;  %v2048_v58 = vld [vmem:[#allocation5 + $0x48] sm:$0xff]  ;;  %vm5196_vm6 = vcmp.gt.f32.partialorder %v5194_v41, %v5195_v4 }
 0x283   : > { %1368 = vst.msk [vmem:[#allocation5 + $0x10] sm:$0xff] %vm368_vm0, %v1352_v17  ;;  %v1961_v52 = vld [vmem:[#allocation3 + $0x10] sm:$0xff]  ;;  %v2397_v23 = vtrunc.f32 %v2072_v6  ;;  %v2064_v46 = vmax.f32 %v2048_v58, 0.0 }
 0x284   : > { %v1977_v47 = vmax.f32 %v1961_v52, 0.0  ;;  %v1655_v60 = vld [vmem:[#allocation3 + $0x18] sm:$0xff] }
 0x285   : > { %v1243_v22 = vpop.xlane.xlu1 %1242  ;;  %v2398_v13 = vcvt.f32.s32 %v2397_v23  ;;  %v2080_v43 = vmin.f32 %v2064_v46, 255.0 }
 0x286   : > { %v1546_v1 = vpop.xlane.xlu0 %1545  ;;  %v1360_v8 = vsel %vm5189_vm13, %v1243_v22, %v1344_v27  ;;  %v1993_v26 = vmin.f32 %v1977_v47, 255.0  ;;  %v1082_v22 = vld [vmem:[#allocation3 + $0x20] sm:$0xff] }
 0x287   : > { %v1575_v16 = vadd.f32 128.0, %v1546_v1  ;;  %1376 = vst.msk [vmem:[#allocation5 + $0x50] sm:$0xff] %vm368_vm0, %v1360_v8  ;;  %v1969_v36 = vld [vmem:[#allocation3 + $0x50] sm:$0xff]  ;;  %2104 = vst.msk [vmem:[%s4490_s14 + $0x8] sm:$0xff] %vm368_vm0, %v2398_v13  ;;  %v2413_v20 = vtrunc.f32 %v2080_v43  ;;  %v1345_v1 = vld [vmem:[#allocation5 + $0x58] sm:$0xff] }
 0x288   : > { %v2367_v40 = vtrunc.f32 %v1993_v26  ;;  %v1985_v32 = vmax.f32 %v1969_v36, 0.0  ;;  %v1663_v59 = vld [vmem:[#allocation3 + $0x58] sm:$0xff]  ;;  %v5202_v36 = vld [vmem:[#allocation47_spill] sm:$0xff] }
 0x289   : > { %v1671_v31 = vsel %vm5192_vm12, %v1575_v16, %v1655_v60  ;;  %v1801_v63 = vpop.xlane.xlu1 %1800  ;;  %v2414_v48 = vcvt.f32.s32 %v2413_v20  ;;  %vm5204_vm8 = vcmp.gt.f32.partialorder %v5202_v36, %v5203_v54  ;;  %vm5214_vm12 = vcmp.gt.f32.partialorder %v3954_v35, %v5213_v56  ;;  %v5216_v35 = vld [vmem:[#allocation55_spill] sm:$0xff] }
 0x28a   : > { %1687 = vst.msk [vmem:[#allocation3 + $0x18] sm:$0xff] %vm368_vm0, %v1671_v31  ;;  %v1562_v0 = vpop.xlane.xlu0 %1561  ;;  %v1910_v28 = vld [vmem:[#allocation5 + $0x10] sm:$0xff]  ;;  %v1830_v50 = vadd.f32 128.0, %v1801_v63  ;;  %v2368_v9 = vcvt.f32.s32 %v2367_v40  ;;  %v2001_v12 = vmin.f32 %v1985_v32, 255.0 }
 0x28b   : > { %v1583_v5 = vadd.f32 128.0, %v1562_v0  ;;  %2112 = vst.msk [vmem:[%s4490_s14 + $0x48] sm:$0xff] %vm368_vm0, %v2414_v48 }
 0x28c   : > { %v1926_v17 = vsel %vm5193_vm15, %v1830_v50, %v1910_v28  ;;  %2025 = vst.msk [vmem:[%s4446_s11 + $0x10] sm:$0xff] %vm368_vm0, %v2368_v9  ;;  %v2383_v27 = vtrunc.f32 %v2001_v12  ;;  %vm5215_vm15 = vcmp.gt.f32.partialorder %v3982_v57, %v3989_v38  ;;  %v1346_v57 = vld [vmem:[#allocation5 + $0x60] sm:$0xff] }
 0x28d   : > { %v1679_v6 = vsel %vm5196_vm6, %v1583_v5, %v1663_v59  ;;  %1942 = vst.msk [vmem:[#allocation5 + $0x10] sm:$0xff] %vm368_vm0, %v1926_v17  ;;  %v1817_v52 = vpop.xlane.xlu1 %1816  ;;  %v5207_v17 = vld [vmem:[#allocation50_spill] sm:$0xff]  ;;  %vm5217_vm6 = vcmp.gt.f32.partialorder %v4012_v24, %v5216_v35 }
 0x28e   : > { %1695 = vst.msk [vmem:[#allocation3 + $0x58] sm:$0xff] %vm368_vm0, %v1679_v6  ;;  %v1229_v58 = vpop.xlane.xlu0 %1228  ;;  %v1918_v23 = vld [vmem:[#allocation5 + $0x50] sm:$0xff]  ;;  %v1838_v47 = vadd.f32 128.0, %v1817_v52  ;;  %v2384_v46 = vcvt.f32.s32 %v2383_v27  ;;  %vm5208_vm11 = vcmp.gt.f32.partialorder %v3892_v39, %v5207_v17  ;;  %v1083_v39 = vld [vmem:[#allocation3 + $0x28] sm:$0xff]  ;;  %v5220_v24 = vld [vmem:[#allocation58_spill] sm:$0xff] }
 0x28f   : > { %v1353_v14 = vsel %vm5198_vm10, %v1229_v58, %v1337_v11 }
 0x290   : > { %1369 = vst.msk [vmem:[#allocation5 + $0x18] sm:$0xff] %vm368_vm0, %v1353_v14  ;;  %v1934_v60 = vsel %vm5199_vm5, %v1838_v47, %v1918_v23  ;;  %2033 = vst.msk [vmem:[%s4446_s11 + $0x50] sm:$0xff] %vm368_vm0, %v2384_v46  ;;  %vm5221_vm5 = vcmp.gt.f32.partialorder %v4042_v53, %v5220_v24 }
 0x291   : > { %v1962_v8 = vld [vmem:[#allocation3 + $0x18] sm:$0xff]  ;;  %1950 = vst.msk [vmem:[#allocation5 + $0x50] sm:$0xff] %vm368_vm0, %v1934_v60  ;;  %v973_v13 = vpop.xlane.xlu1 %972  ;;  %v5211_v60 = vld [vmem:[#allocation52_spill] sm:$0xff] }
 0x292   : > { %v1978_v16 = vmax.f32 %v1962_v8, 0.0  ;;  %v1245_v26 = vpop.xlane.xlu0 %1244  ;;  %v1098_v43 = vsel %vm5201_vm3, %v973_v13, %v1082_v22  ;;  %v5210_v8 = vld [vmem:[#allocation51_spill] sm:$0xff] }
 0x293   : > { %v1361_v55 = vsel %vm5204_vm8, %v1245_v26, %v1345_v1  ;;  %1114 = vst.msk [vmem:[#allocation3 + $0x20] sm:$0xff] %vm368_vm0, %v1098_v43  ;;  %vm5212_vm13 = vcmp.gt.f32.partialorder %v5210_v8, %v5211_v60  ;;  %vm5225_vm8 = vcmp.gt.f32.partialorder %v4072_v34, %v4079_v44  ;;  %v5229_v34 = vld [vmem:[#allocation61_spill] sm:$0xff] }
 0x294   : > { %v1994_v31 = vmin.f32 %v1978_v16, 255.0  ;;  %1377 = vst.msk [vmem:[#allocation5 + $0x58] sm:$0xff] %vm368_vm0, %v1361_v55  ;;  %v2041_v7 = vld [vmem:[#allocation5 + $0x10] sm:$0xff]  ;;  %v1338_v55 = vld [vmem:[#allocation5 + $0x20] sm:$0xff] }
 0x295   : > { %v1970_v40 = vld [vmem:[#allocation3 + $0x58] sm:$0xff]  ;;  %v2057_v32 = vmax.f32 %v2041_v7, 0.0  ;;  %v989_v0 = vpop.xlane.xlu1 %988 }
 0x296   : > { %v2369_v20 = vtrunc.f32 %v1994_v31  ;;  %v1986_v63 = vmax.f32 %v1970_v40, 0.0  ;;  %v1803_v28 = vpop.xlane.xlu0 %1802  ;;  %v1106_v50 = vsel %vm5206_vm9, %v989_v0, %v1090_v25  ;;  %v1091_v31 = vld [vmem:[#allocation3 + $0x68] sm:$0xff]  ;;  %v5218_v0 = vld [vmem:[#allocation54_spill] sm:$0xff] }
 0x297   : > { %v1911_v59 = vld [vmem:[#allocation5 + $0x18] sm:$0xff]  ;;  %v1831_v5 = vadd.f32 128.0, %v1803_v28  ;;  %v2073_v48 = vmin.f32 %v2057_v32, 255.0  ;;  %1122 = vst.msk [vmem:[#allocation3 + $0x60] sm:$0xff] %vm368_vm0, %v1106_v50  ;;  %vm5219_vm10 = vcmp.gt.f32.partialorder %v3984_v37, %v5218_v0 }
 0x298   : > { %v2370_v9 = vcvt.f32.s32 %v2369_v20  ;;  %v2002_v12 = vmin.f32 %v1986_v63, 255.0  ;;  %v2049_v11 = vld [vmem:[#allocation5 + $0x50] sm:$0xff] }
 0x299   : > { %v1927_v41 = vsel %vm5208_vm11, %v1831_v5, %v1911_v59  ;;  %v2399_v4 = vtrunc.f32 %v2073_v48  ;;  %v2065_v2 = vmax.f32 %v2049_v11, 0.0  ;;  %v1548_v27 = vpop.xlane.xlu1 %1547  ;;  %vm5230_vm11 = vcmp.gt.f32.partialorder %v4074_v30, %v5229_v34  ;;  %v5233_v30 = vld [vmem:[#allocation64_spill] sm:$0xff] }
 0x29a   : > { %2026 = vst.msk [vmem:[%s4446_s11 + $0x18] sm:$0xff] %vm368_vm0, %v2370_v9  ;;  %v2385_v6 = vtrunc.f32 %v2002_v12  ;;  %1943 = vst.msk [vmem:[#allocation5 + $0x18] sm:$0xff] %vm368_vm0, %v1927_v41  ;;  %v1819_v52 = vpop.xlane.xlu0 %1818  ;;  %v1656_v58 = vld [vmem:[#allocation3 + $0x20] sm:$0xff]  ;;  %v1576_v23 = vadd.f32 128.0, %v1548_v27  ;;  %v5222_v27 = vld [vmem:[#allocation56_spill] sm:$0xff] }
 0x29b   : > { %v1919_v47 = vld [vmem:[#allocation5 + $0x58] sm:$0xff]  ;;  %v1839_v10 = vadd.f32 128.0, %v1819_v52  ;;  %v2400_v14 = vcvt.f32.s32 %v2399_v4  ;;  %v2081_v22 = vmin.f32 %v2065_v2, 255.0 }
 0x29c   : > { %v2386_v46 = vcvt.f32.s32 %v2385_v6  ;;  %v1672_v1 = vsel %vm5209_vm14, %v1576_v23, %v1656_v58  ;;  %v5223_v52 = vld [vmem:[#allocation57_spill] sm:$0xff] }
 0x29d   : > { %v1935_v16 = vsel %vm5212_vm13, %v1839_v10, %v1919_v47  ;;  %2105 = vst.msk [vmem:[%s4490_s14 + $0x10] sm:$0xff] %vm368_vm0, %v2400_v14  ;;  %v2415_v13 = vtrunc.f32 %v2081_v22  ;;  %1688 = vst.msk [vmem:[#allocation3 + $0x20] sm:$0xff] %vm368_vm0, %v1672_v1  ;;  %v1564_v26 = vpop.xlane.xlu1 %1563  ;;  %vm5224_vm3 = vcmp.gt.f32.partialorder %v5222_v27, %v5223_v52  ;;  %vm5234_vm13 = vcmp.gt.f32.partialorder %v4134_v19, %v5233_v30  ;;  %v5237_v19 = vld [vmem:[#allocation66_spill] sm:$0xff]  ;;  %v5239_v27 = vld [vmem:[#allocation65_spill] sm:$0xff] }
 0x29e   : > { %2034 = vst.msk [vmem:[%s4446_s11 + $0x58] sm:$0xff] %vm368_vm0, %v2386_v46  ;;  %1951 = vst.msk [vmem:[#allocation5 + $0x58] sm:$0xff] %vm368_vm0, %v1935_v16  ;;  %v975_v3 = vpop.xlane.xlu0 %974  ;;  %v1664_v43 = vld [vmem:[#allocation3 + $0x60] sm:$0xff]  ;;  %v1584_v36 = vadd.f32 128.0, %v1564_v26 }
 0x29f   : > { %v1099_v29 = vsel %vm5214_vm12, %v975_v3, %v1083_v39  ;;  %v2416_v54 = vcvt.f32.s32 %v2415_v13  ;;  %v1339_v13 = vld [vmem:[#allocation5 + $0x28] sm:$0xff] }
 0x2a0   : > { %1115 = vst.msk [vmem:[#allocation3 + $0x28] sm:$0xff] %vm368_vm0, %v1099_v29  ;;  %v1680_v7 = vsel %vm5215_vm15, %v1584_v36, %v1664_v43  ;;  %v5226_v3 = vld [vmem:[#allocation59_spill] sm:$0xff]  ;;  %v5227_v43 = vld [vmem:[#allocation60_spill] sm:$0xff]  ;;  %vm5238_vm15 = vcmp.gt.f32.partialorder %v4164_v62, %v5237_v19 }
 0x2a1   : > { %v2042_v25 = vld [vmem:[#allocation5 + $0x18] sm:$0xff]  ;;  %2113 = vst.msk [vmem:[%s4490_s14 + $0x50] sm:$0xff] %vm368_vm0, %v2416_v54  ;;  %1696 = vst.msk [vmem:[#allocation3 + $0x60] sm:$0xff] %vm368_vm0, %v1680_v7  ;;  %v1231_v20 = vpop.xlane.xlu1 %1230  ;;  %vm5228_vm9 = vcmp.gt.f32.partialorder %v5226_v3, %v5227_v43  ;;  %v1084_v7 = vld [vmem:[#allocation3 + $0x30] sm:$0xff] }
 0x2a2   : > { %v2058_v40 = vmax.f32 %v2042_v25, 0.0  ;;  %v991_v32 = vpop.xlane.xlu0 %990  ;;  %v1354_v63 = vsel %vm5217_vm6, %v1231_v20, %v1338_v55  ;;  %vm5240_vm6 = vcmp.gt.f32.partialorder %v4132_v45, %v5239_v27  ;;  %v1085_v45 = vld [vmem:[#allocation3 + $0x38] sm:$0xff] }
 0x2a3   : > { %v1107_v28 = vsel %vm5219_vm10, %v991_v32, %v1091_v31  ;;  %1370 = vst.msk [vmem:[#allocation5 + $0x20] sm:$0xff] %vm368_vm0, %v1354_v63  ;;  %v5231_v32 = vld [vmem:[#allocation63_spill] sm:$0xff]  ;;  %vm5241_vm10 = vcmp.gt.f32.partialorder %v4192_v42, %v4199_v49  ;;  %v5245_v42 = vld [vmem:[#allocation69_spill] sm:$0xff] }
 0x2a4   : > { %v2074_v21 = vmin.f32 %v2058_v40, 255.0  ;;  %1123 = vst.msk [vmem:[#allocation3 + $0x68] sm:$0xff] %vm368_vm0, %v1107_v28  ;;  %v1963_v38 = vld [vmem:[#allocation3 + $0x20] sm:$0xff]  ;;  %v1347_v40 = vld [vmem:[#allocation5 + $0x68] sm:$0xff]  ;;  %vm5232_vm14 = vcmp.gt.f32.partialorder %v4102_v61, %v5231_v32  ;;  %v1092_v61 = vld [vmem:[#allocation3 + $0x70] sm:$0xff] }
 0x2a5   : > { %v2050_v50 = vld [vmem:[#allocation5 + $0x58] sm:$0xff]  ;;  %v1979_v5 = vmax.f32 %v1963_v38, 0.0  ;;  %v1247_v48 = vpop.xlane.xlu1 %1246 }
 0x2a6   : > { %v2401_v59 = vtrunc.f32 %v2074_v21  ;;  %v2066_v9 = vmax.f32 %v2050_v50, 0.0  ;;  %v1550_v12 = vpop.xlane.xlu0 %1549  ;;  %v1362_v11 = vsel %vm5221_vm5, %v1247_v48, %v1346_v57  ;;  %v5235_v57 = vld [vmem:[#allocation62_spill] sm:$0xff] }
 0x2a7   : > { %v1657_v37 = vld [vmem:[#allocation3 + $0x28] sm:$0xff]  ;;  %v1577_v17 = vadd.f32 128.0, %v1550_v12  ;;  %v1995_v4 = vmin.f32 %v1979_v5, 255.0  ;;  %1378 = vst.msk [vmem:[#allocation5 + $0x60] sm:$0xff] %vm368_vm0, %v1362_v11  ;;  %vm5236_vm12 = vcmp.gt.f32.partialorder %v4104_v15, %v5235_v57 }
 0x2a8   : > { %v2402_v41 = vcvt.f32.s32 %v2401_v59  ;;  %v2082_v6 = vmin.f32 %v2066_v9, 255.0  ;;  %v1971_v2 = vld [vmem:[#allocation3 + $0x60] sm:$0xff] }
 0x2a9   : > { %v1673_v58 = vsel %vm5224_vm3, %v1577_v17, %v1657_v37  ;;  %v2371_v23 = vtrunc.f32 %v1995_v4  ;;  %v1987_v53 = vmax.f32 %v1971_v2, 0.0  ;;  %v1805_v10 = vpop.xlane.xlu1 %1804  ;;  %vm5246_vm3 = vcmp.gt.f32.partialorder %v4194_v33, %v5245_v42  ;;  %v5249_v33 = vld [vmem:[#allocation72_spill] sm:$0xff] }
 0x2aa   : > { %2106 = vst.msk [vmem:[%s4490_s14 + $0x18] sm:$0xff] %vm368_vm0, %v2402_v41  ;;  %v2417_v47 = vtrunc.f32 %v2082_v6  ;;  %1689 = vst.msk [vmem:[#allocation3 + $0x28] sm:$0xff] %vm368_vm0, %v1673_v58  ;;  %v1566_v14 = vpop.xlane.xlu0 %1565  ;;  %v1912_v46 = vld [vmem:[#allocation5 + $0x20] sm:$0xff]  ;;  %v1832_v22 = vadd.f32 128.0, %v1805_v10 }
 0x2ab   : > { %v1665_v39 = vld [vmem:[#allocation3 + $0x68] sm:$0xff]  ;;  %v1585_v1 = vadd.f32 128.0, %v1566_v14  ;;  %v2372_v8 = vcvt.f32.s32 %v2371_v23  ;;  %v2003_v16 = vmin.f32 %v1987_v53, 255.0 }
 0x2ac   : > { %v2418_v60 = vcvt.f32.s32 %v2417_v47  ;;  %v1928_v26 = vsel %vm5225_vm8, %v1832_v22, %v1912_v46  ;;  %vm5247_vm8 = vcmp.gt.f32.partialorder %v4222_v18, %v4229_v51  ;;  %v1348_v18 = vld [vmem:[#allocation5 + $0x70] sm:$0xff] }
 0x2ad   : > { %v1681_v36 = vsel %vm5228_vm9, %v1585_v1, %v1665_v39  ;;  %2027 = vst.msk [vmem:[%s4446_s11 + $0x20] sm:$0xff] %vm368_vm0, %v2372_v8  ;;  %v2387_v56 = vtrunc.f32 %v2003_v16  ;;  %1944 = vst.msk [vmem:[#allocation5 + $0x20] sm:$0xff] %vm368_vm0, %v1928_v26  ;;  %v1821_v29 = vpop.xlane.xlu1 %1820  ;;  %v5242_v16 = vld [vmem:[#allocation67_spill] sm:$0xff] }
 0x2ae   : > { %2114 = vst.msk [vmem:[%s4490_s14 + $0x58] sm:$0xff] %vm368_vm0, %v2418_v60  ;;  %1697 = vst.msk [vmem:[#allocation3 + $0x68] sm:$0xff] %vm368_vm0, %v1681_v36  ;;  %v1233_v54 = vpop.xlane.xlu0 %1232  ;;  %v1920_v55 = vld [vmem:[#allocation5 + $0x60] sm:$0xff]  ;;  %v1840_v31 = vadd.f32 128.0, %v1821_v29 }
 0x2af   : > { %v1355_v44 = vsel %vm5230_vm11, %v1233_v54, %v1339_v13  ;;  %v2388_v25 = vcvt.f32.s32 %v2387_v56  ;;  %v5243_v13 = vld [vmem:[#allocation68_spill] sm:$0xff] }
 0x2b0   : > { %1371 = vst.msk [vmem:[#allocation5 + $0x28] sm:$0xff] %vm368_vm0, %v1355_v44  ;;  %v1936_v35 = vsel %vm5232_vm14, %v1840_v31, %v1920_v55  ;;  %vm5244_vm5 = vcmp.gt.f32.partialorder %v5242_v16, %v5243_v13  ;;  %v1340_v55 = vld [vmem:[#allocation5 + $0x30] sm:$0xff]  ;;  %v1093_v31 = vld [vmem:[#allocation3 + $0x78] sm:$0xff] }
 0x2b1   : > { %v1964_v20 = vld [vmem:[#allocation3 + $0x28] sm:$0xff]  ;;  %2035 = vst.msk [vmem:[%s4446_s11 + $0x60] sm:$0xff] %vm368_vm0, %v2388_v25  ;;  %1952 = vst.msk [vmem:[#allocation5 + $0x60] sm:$0xff] %vm368_vm0, %v1936_v35  ;;  %v977_v0 = vpop.xlane.xlu1 %976 }
 0x2b2   : > { %v1980_v63 = vmax.f32 %v1964_v20, 0.0  ;;  %v1249_v28 = vpop.xlane.xlu0 %1248  ;;  %v1100_v21 = vsel %vm5234_vm13, %v977_v0, %v1084_v7  ;;  %v5248_v20 = vld [vmem:[#allocation73_spill] sm:$0xff]  ;;  %v5251_v35 = vld [vmem:[#allocation71_spill] sm:$0xff] }
 0x2b3   : > { %v1363_v38 = vsel %vm5236_vm12, %v1249_v28, %v1347_v40  ;;  %1116 = vst.msk [vmem:[#allocation3 + $0x30] sm:$0xff] %vm368_vm0, %v1100_v21  ;;  %vm5250_vm9 = vcmp.gt.f32.partialorder %v5248_v20, %v5249_v33 }
 0x2b4   : > { %v1996_v50 = vmin.f32 %v1980_v63, 255.0  ;;  %1379 = vst.msk [vmem:[#allocation5 + $0x68] sm:$0xff] %vm368_vm0, %v1363_v38  ;;  %v2043_v59 = vld [vmem:[#allocation5 + $0x20] sm:$0xff] }
 0x2b5   : > { %v1972_v5 = vld [vmem:[#allocation3 + $0x68] sm:$0xff]  ;;  %v2059_v48 = vmax.f32 %v2043_v59, 0.0  ;;  %v993_v24 = vpop.xlane.xlu1 %992  ;;  %v5252_v63 = vld [vmem:[#allocation70_spill] sm:$0xff]  ;;  %v5254_v59 = vld [vmem:[#allocation77_spill] sm:$0xff] }
 0x2b6   : > { %v2373_v9 = vtrunc.f32 %v1996_v50  ;;  %v1988_v12 = vmax.f32 %v1972_v5, 0.0  ;;  %v1807_v11 = vpop.xlane.xlu0 %1806  ;;  %v1108_v37 = vsel %vm5238_vm15, %v993_v24, %v1092_v61  ;;  %vm5253_vm11 = vcmp.gt.f32.partialorder %v5251_v35, %v5252_v63  ;;  %v5255_v5 = vld [vmem:[#allocation76_spill] sm:$0xff] }
 0x2b7   : > { %v1913_v15 = vld [vmem:[#allocation5 + $0x28] sm:$0xff]  ;;  %v1833_v17 = vadd.f32 128.0, %v1807_v11  ;;  %v2075_v4 = vmin.f32 %v2059_v48, 255.0  ;;  %1124 = vst.msk [vmem:[#allocation3 + $0x70] sm:$0xff] %vm368_vm0, %v1108_v37  ;;  %vm5256_vm14 = vcmp.gt.f32.partialorder %v5254_v59, %v5255_v5 }
 0x2b8   : > { %v2374_v41 = vcvt.f32.s32 %v2373_v9  ;;  %v2004_v6 = vmin.f32 %v1988_v12, 255.0  ;;  %v2051_v2 = vld [vmem:[#allocation5 + $0x60] sm:$0xff] }
 0x2b9   : > { %v1929_v52 = vsel %vm5240_vm6, %v1833_v17, %v1913_v15  ;;  %v2403_v58 = vtrunc.f32 %v2075_v4  ;;  %v2067_v62 = vmax.f32 %v2051_v2, 0.0  ;;  %v1552_v47 = vpop.xlane.xlu1 %1551  ;;  %v5257_v15 = vld [vmem:[#allocation74_spill] sm:$0xff]  ;;  %v5258_v17 = vld [vmem:[#allocation75_spill] sm:$0xff] }
 0x2ba   : > { %2028 = vst.msk [vmem:[%s4446_s11 + $0x28] sm:$0xff] %vm368_vm0, %v2374_v41  ;;  %v2389_v23 = vtrunc.f32 %v2004_v6  ;;  %1945 = vst.msk [vmem:[#allocation5 + $0x28] sm:$0xff] %vm368_vm0, %v1929_v52  ;;  %v1823_v53 = vpop.xlane.xlu0 %1822  ;;  %v1658_v10 = vld [vmem:[#allocation3 + $0x30] sm:$0xff]  ;;  %v1578_v14 = vadd.f32 128.0, %v1552_v47  ;;  %vm5259_vm13 = vcmp.gt.f32.partialorder %v5257_v15, %v5258_v17 }
 0x2bb   : > { %v1921_v46 = vld [vmem:[#allocation5 + $0x68] sm:$0xff]  ;;  %v1841_v22 = vadd.f32 128.0, %v1823_v53  ;;  %v2404_v39 = vcvt.f32.s32 %v2403_v58  ;;  %v2083_v8 = vmin.f32 %v2067_v62, 255.0 }
 0x2bc   : > { %v2390_v1 = vcvt.f32.s32 %v2389_v23  ;;  %v1674_v60 = vsel %vm5241_vm10, %v1578_v14, %v1658_v10 }
 0x2bd   : > { %v1937_v26 = vsel %vm5244_vm5, %v1841_v22, %v1921_v46  ;;  %2107 = vst.msk [vmem:[%s4490_s14 + $0x20] sm:$0xff] %vm368_vm0, %v2404_v39  ;;  %v2419_v3 = vtrunc.f32 %v2083_v8  ;;  %1690 = vst.msk [vmem:[#allocation3 + $0x30] sm:$0xff] %vm368_vm0, %v1674_v60  ;;  %v1568_v43 = vpop.xlane.xlu1 %1567  ;;  %v1341_v46 = vld [vmem:[#allocation5 + $0x38] sm:$0xff]  ;;  %v5261_v39 = vld [vmem:[#allocation83_spill] sm:$0xff] }
 0x2be   : > { %2036 = vst.msk [vmem:[%s4446_s11 + $0x68] sm:$0xff] %vm368_vm0, %v2390_v1  ;;  %1953 = vst.msk [vmem:[#allocation5 + $0x68] sm:$0xff] %vm368_vm0, %v1937_v26  ;;  %v979_v36 = vpop.xlane.xlu0 %978  ;;  %v1666_v56 = vld [vmem:[#allocation3 + $0x70] sm:$0xff]  ;;  %v1586_v29 = vadd.f32 128.0, %v1568_v43  ;;  %v5260_v22 = vld [vmem:[#allocation81_spill] sm:$0xff] }
 0x2bf   : > { %v1101_v49 = vsel %vm5246_vm3, %v979_v36, %v1085_v45  ;;  %v2420_v54 = vcvt.f32.s32 %v2419_v3  ;;  %vm5262_vm12 = vcmp.gt.f32.partialorder %v5260_v22, %v5261_v39  ;;  %v5263_v8 = vld [vmem:[#allocation78_spill] sm:$0xff]  ;;  %v5264_v45 = vld [vmem:[#allocation79_spill] sm:$0xff] }
 0x2c0   : > { %1117 = vst.msk [vmem:[#allocation3 + $0x38] sm:$0xff] %vm368_vm0, %v1101_v49  ;;  %v1682_v44 = vsel %vm5247_vm8, %v1586_v29, %v1666_v56  ;;  %vm5265_vm15 = vcmp.gt.f32.partialorder %v5263_v8, %v5264_v45  ;;  %v5266_v36 = vld [vmem:[#allocation82_spill] sm:$0xff]  ;;  %v5267_v56 = vld [vmem:[#allocation80_spill] sm:$0xff]  ;;  %v1349_v49 = vld [vmem:[#allocation5 + $0x78] sm:$0xff] }
 0x2c1   : > { %v2044_v34 = vld [vmem:[#allocation5 + $0x28] sm:$0xff]  ;;  %2115 = vst.msk [vmem:[%s4490_s14 + $0x60] sm:$0xff] %vm368_vm0, %v2420_v54  ;;  %1698 = vst.msk [vmem:[#allocation3 + $0x70] sm:$0xff] %vm368_vm0, %v1682_v44  ;;  %v1235_v7 = vpop.xlane.xlu1 %1234  ;;  %vm5268_vm6 = vcmp.gt.f32.partialorder %v5266_v36, %v5267_v56 }
 0x2c2   : > { %v2060_v25 = vmax.f32 %v2044_v34, 0.0  ;;  %v995_v40 = vpop.xlane.xlu0 %994  ;;  %v1356_v32 = vsel %vm5250_vm9, %v1235_v7, %v1340_v55 }
 0x2c3   : > { %v1109_v0 = vsel %vm5253_vm11, %v995_v40, %v1093_v31  ;;  %1372 = vst.msk [vmem:[#allocation5 + $0x30] sm:$0xff] %vm368_vm0, %v1356_v32 }
 0x2c4   : > { %v2076_v28 = vmin.f32 %v2060_v25, 255.0  ;;  %1125 = vst.msk [vmem:[#allocation3 + $0x78] sm:$0xff] %vm368_vm0, %v1109_v0  ;;  %v1965_v51 = vld [vmem:[#allocation3 + $0x30] sm:$0xff] }
 0x2c5   : > { %v2052_v30 = vld [vmem:[#allocation5 + $0x68] sm:$0xff]  ;;  %v1981_v57 = vmax.f32 %v1965_v51, 0.0  ;;  %v1251_v50 = vpop.xlane.xlu1 %1250 }
 0x2c6   : > { %v2405_v21 = vtrunc.f32 %v2076_v28  ;;  %v2068_v38 = vmax.f32 %v2052_v30, 0.0  ;;  %v1554_v61 = vpop.xlane.xlu0 %1553  ;;  %v1364_v9 = vsel %vm5256_vm14, %v1251_v50, %v1348_v18 }
 0x2c7   : > { %v1659_v48 = vld [vmem:[#allocation3 + $0x38] sm:$0xff]  ;;  %v1579_v12 = vadd.f32 128.0, %v1554_v61  ;;  %v1997_v11 = vmin.f32 %v1981_v57, 255.0  ;;  %1380 = vst.msk [vmem:[#allocation5 + $0x70] sm:$0xff] %vm368_vm0, %v1364_v9 }
 0x2c8   : > { %v2406_v24 = vcvt.f32.s32 %v2405_v21  ;;  %v2084_v19 = vmin.f32 %v2068_v38, 255.0  ;;  %v1973_v37 = vld [vmem:[#allocation3 + $0x70] sm:$0xff] }
 0x2c9   : > { %v1675_v41 = vsel %vm5259_vm13, %v1579_v12, %v1659_v48  ;;  %v2375_v4 = vtrunc.f32 %v1997_v11  ;;  %v1989_v2 = vmax.f32 %v1973_v37, 0.0  ;;  %v1809_v27 = vpop.xlane.xlu1 %1808 }
 0x2ca   : > { %2108 = vst.msk [vmem:[%s4490_s14 + $0x28] sm:$0xff] %vm368_vm0, %v2406_v24  ;;  %v2421_v6 = vtrunc.f32 %v2084_v19  ;;  %1691 = vst.msk [vmem:[#allocation3 + $0x38] sm:$0xff] %vm368_vm0, %v1675_v41  ;;  %v1570_v52 = vpop.xlane.xlu0 %1569  ;;  %v1914_v58 = vld [vmem:[#allocation5 + $0x30] sm:$0xff]  ;;  %v1834_v23 = vadd.f32 128.0, %v1809_v27 }
 0x2cb   : > { %v1667_v62 = vld [vmem:[#allocation3 + $0x78] sm:$0xff]  ;;  %v1587_v47 = vadd.f32 128.0, %v1570_v52  ;;  %v2376_v53 = vcvt.f32.s32 %v2375_v4  ;;  %v2005_v14 = vmin.f32 %v1989_v2, 255.0 }
 0x2cc   : > { %v2422_v10 = vcvt.f32.s32 %v2421_v6  ;;  %v1930_v1 = vsel %vm5262_vm12, %v1834_v23, %v1914_v58 }
 0x2cd   : > { %v1683_v60 = vsel %vm5265_vm15, %v1587_v47, %v1667_v62  ;;  %2029 = vst.msk [vmem:[%s4446_s11 + $0x30] sm:$0xff] %vm368_vm0, %v2376_v53  ;;  %v2391_v16 = vtrunc.f32 %v2005_v14  ;;  %1946 = vst.msk [vmem:[#allocation5 + $0x30] sm:$0xff] %vm368_vm0, %v1930_v1  ;;  %v1825_v13 = vpop.xlane.xlu1 %1824 }
 0x2ce   : > { %2116 = vst.msk [vmem:[%s4490_s14 + $0x68] sm:$0xff] %vm368_vm0, %v2422_v10  ;;  %1699 = vst.msk [vmem:[#allocation3 + $0x78] sm:$0xff] %vm368_vm0, %v1683_v60  ;;  %v1237_v26 = vpop.xlane.xlu0 %1236  ;;  %v1922_v3 = vld [vmem:[#allocation5 + $0x70] sm:$0xff]  ;;  %v1842_v43 = vadd.f32 128.0, %v1825_v13 }
 0x2cf   : > { %v1357_v29 = vsel %vm5268_vm6, %v1237_v26, %v1341_v46  ;;  %v2392_v42 = vcvt.f32.s32 %v2391_v16 }
 0x2d0   : > { %1373 = vst.msk [vmem:[#allocation5 + $0x38] sm:$0xff] %vm368_vm0, %v1357_v29  ;;  %v1938_v34 = vsel %vm1874_vm1, %v1842_v43, %v1922_v3 }
 0x2d1   : > { %v1966_v54 = vld [vmem:[#allocation3 + $0x38] sm:$0xff]  ;;  %2037 = vst.msk [vmem:[%s4446_s11 + $0x70] sm:$0xff] %vm368_vm0, %v2392_v42  ;;  %1954 = vst.msk [vmem:[#allocation5 + $0x70] sm:$0xff] %vm368_vm0, %v1938_v34 }
 0x2d2   : > { %v1982_v44 = vmax.f32 %v1966_v54, 0.0  ;;  %v1253_v25 = vpop.xlane.xlu0 %1252 }
 0x2d3   : > { %v1365_v20 = vsel %vm1301_vm2, %v1253_v25, %v1349_v49 }
 0x2d4   : > { %v1998_v33 = vmin.f32 %v1982_v44, 255.0  ;;  %1381 = vst.msk [vmem:[#allocation5 + $0x78] sm:$0xff] %vm368_vm0, %v1365_v20  ;;  %v2045_v32 = vld [vmem:[#allocation5 + $0x30] sm:$0xff] }
 0x2d5   : > { %v1974_v35 = vld [vmem:[#allocation3 + $0x78] sm:$0xff]  ;;  %v2061_v0 = vmax.f32 %v2045_v32, 0.0 }
 0x2d6   : > { %v2377_v63 = vtrunc.f32 %v1998_v33  ;;  %v1990_v28 = vmax.f32 %v1974_v35, 0.0  ;;  %v1811_v18 = vpop.xlane.xlu0 %1810 }
 0x2d7   : > { %v1915_v51 = vld [vmem:[#allocation5 + $0x38] sm:$0xff]  ;;  %v1835_v30 = vadd.f32 128.0, %v1811_v18  ;;  %v2077_v57 = vmin.f32 %v2061_v0, 255.0 }
 0x2d8   : > { %v2378_v21 = vcvt.f32.s32 %v2377_v63  ;;  %v2006_v38 = vmin.f32 %v1990_v28, 255.0  ;;  %v2053_v50 = vld [vmem:[#allocation5 + $0x70] sm:$0xff] }
 0x2d9   : > { %v1931_v5 = vsel %vm1867_vm7, %v1835_v30, %v1915_v51  ;;  %v2407_v9 = vtrunc.f32 %v2077_v57  ;;  %v2069_v12 = vmax.f32 %v2053_v50, 0.0 }
 0x2da   : > { %2030 = vst.msk [vmem:[%s4446_s11 + $0x38] sm:$0xff] %vm368_vm0, %v2378_v21  ;;  %v2393_v48 = vtrunc.f32 %v2006_v38  ;;  %1947 = vst.msk [vmem:[#allocation5 + $0x38] sm:$0xff] %vm368_vm0, %v1931_v5  ;;  %v1827_v24 = vpop.xlane.xlu0 %1826 }
 0x2db   : > { %v1923_v11 = vld [vmem:[#allocation5 + $0x78] sm:$0xff]  ;;  %v1843_v19 = vadd.f32 128.0, %v1827_v24  ;;  %v2408_v37 = vcvt.f32.s32 %v2407_v9  ;;  %v2085_v17 = vmin.f32 %v2069_v12, 255.0 }
 0x2dc   : > { %v2394_v15 = vcvt.f32.s32 %v2393_v48 }
 0x2dd   : > { %v1939_v6 = vsel %vm1875_vm4, %v1843_v19, %v1923_v11  ;;  %2109 = vst.msk [vmem:[%s4490_s14 + $0x30] sm:$0xff] %vm368_vm0, %v2408_v37  ;;  %v2423_v2 = vtrunc.f32 %v2085_v17 }
 0x2de   : > { %2038 = vst.msk [vmem:[%s4446_s11 + $0x78] sm:$0xff] %vm368_vm0, %v2394_v15  ;;  %1955 = vst.msk [vmem:[#allocation5 + $0x78] sm:$0xff] %vm368_vm0, %v1939_v6 }
 0x2df   : > { %v2424_v27 = vcvt.f32.s32 %v2423_v2 }
 0x2e1   : > { %v2046_v52 = vld [vmem:[#allocation5 + $0x38] sm:$0xff]  ;;  %2117 = vst.msk [vmem:[%s4490_s14 + $0x70] sm:$0xff] %vm368_vm0, %v2424_v27 }
 0x2e2   : > { %v2062_v58 = vmax.f32 %v2046_v52, 0.0 }
 0x2e4   : > { %v2078_v23 = vmin.f32 %v2062_v58, 255.0 }
 0x2e5   : > { %v2054_v62 = vld [vmem:[#allocation5 + $0x78] sm:$0xff] }
 0x2e6   : > { %v2409_v47 = vtrunc.f32 %v2078_v23  ;;  %v2070_v53 = vmax.f32 %v2054_v62, 0.0 }
 0x2e8   : > { %v2410_v10 = vcvt.f32.s32 %v2409_v47  ;;  %v2086_v14 = vmin.f32 %v2070_v53, 255.0 }
 0x2ea   : > { %2110 = vst.msk [vmem:[%s4490_s14 + $0x38] sm:$0xff] %vm368_vm0, %v2410_v10  ;;  %v2425_v46 = vtrunc.f32 %v2086_v14 }
 0x2ec   : > { %v2426_v22 = vcvt.f32.s32 %v2425_v46 }
 0x2ee   : > { %2118 = vst.msk [vmem:[%s4490_s14 + $0x78] sm:$0xff] %vm368_vm0, %v2426_v22 }
 0x2ef PF: > { %s17_s23 = sadd.s32 1, %s2503_s23   ;;  %s5277_s21 = smov %s2499_s22 }
 0x2f0   : > { %p14_p5 = scmp.ge.s32.totalorder %s17_s23, 4   ;;  %s5278_s22 = smov %s5280_s24 }
 0x2f2   :  { %16 = sbr.rel (!%p14_p5) target bundleno = 2 (0x2), region = 102 }

</bundles_post_ra>
